<compile_context>
chip_gen: v7x
topology: tpu7x:2x2x1
jax: 0.10.0
libtpu: 0.0.40
codegen_flags: <defaults>
</compile_context>

<pallas_src>
import math

import jax
import jax.numpy as jnp
from jax import lax
from jax.experimental import pallas as pl
from jax.experimental.pallas import tpu as pltpu

# ----------------------------- config (small, consistent with the module) ---
B = 2
SEQ_LEN = 16          # L (time steps == c_in of the inverted embedding)
PRED_LEN = 8
VARIATES = 8          # N (Mamba scan length / tokens)
OUT_VARS = 4
D_MODEL = 32
D_FF = 64
E_LAYERS = 2
D_STATE = 8
EXPAND = 2
D_INNER = EXPAND * D_MODEL           # 64
D_CONV = 4
DT_RANK = math.ceil(D_MODEL / 16)    # 2
CI2 = 2 * D_INNER                    # 128 (fwd|bwd channel lanes)
PW = 2 * D_INNER + 4 * D_STATE       # 160 (folded dual-direction x_proj width)
SLAB_ROWS = 9
USE_NORM = True


# ----------------------------- single fused forward kernel -------------------
def _sdmamba_kernel(x_ref, head_ref, w_in_ref, conv_w_ref, w_xp_ref, At_ref,
                    w_out_ref, w_c1_ref, w_c2_ref, slab_ref,
                    enc_norm_ref, proj_ref, ow_ref, o_ref):
    Nv, L, D, Ci, S, K, FF = VARIATES, SEQ_LEN, D_MODEL, D_INNER, D_STATE, D_CONV, D_FF
    C2 = 2 * Ci
    f32 = jnp.float32

    # ---- constants from iota (hoisted, cheap) -------------------------------
    lane1 = lax.broadcasted_iota(jnp.int32, (1, C2), 1) < Ci        # fwd-lane mask
    r8 = lax.broadcasted_iota(jnp.int32, (Nv, Nv), 0)
    c8 = lax.broadcasted_iota(jnp.int32, (Nv, Nv), 1)
    rev = (r8 + c8 == Nv - 1).astype(f32)                           # anti-identity
    shift_dn = [(r8 - c8 == j).astype(f32) for j in range(1, K)]    # causal shift
    shift_up = [(c8 - r8 == j).astype(f32) for j in range(1, K)]    # anti-causal
    r32 = lax.broadcasted_iota(jnp.int32, (4 * S, 4 * S), 0)
    c32 = lax.broadcasted_iota(jnp.int32, (4 * S, 4 * S), 1)
    eye32 = (r32 == c32).astype(f32)
    row8 = lax.broadcasted_iota(jnp.int32, (Nv, C2), 0)             # output row ids

    # ---- head: series (instance) norm over L + inverted embedding -----------
    xv = x_ref[0]                                                   # (Nv, L)
    if USE_NORM:
        mu = jnp.mean(xv, axis=1, keepdims=True)                    # (Nv, 1)
        xc = xv - mu
        var = jnp.mean(xc * xc, axis=1, keepdims=True)              # unbiased=False
        std = jnp.sqrt(var + 1e-5)
        xn = xc * lax.rsqrt(var + 1e-5)
    else:
        xn, mu, std = xv, None, None
    hw = head_ref[...]                                              # (L+1, D)
    enc = jnp.dot(xn, hw[0:L, :], preferred_element_type=f32) + hw[L:L + 1, :]

    def layernorm(v, g, b):
        m = jnp.mean(v, axis=-1, keepdims=True)
        vc = v - m
        vv = jnp.mean(vc * vc, axis=-1, keepdims=True)
        return vc * lax.rsqrt(vv + 1e-5) * g + b

    # ---- encoder layers (fully resident, unrolled) ---------------------------
    for l in range(E_LAYERS):
        slab = slab_ref[l]                                          # (9, PW)
        conv_b = slab[0:1, 0:C2]
        b_xp = slab[1:2, :]
        Dsk = slab[2:3, 0:C2]
        n1_g, n1_b = slab[3:4, 0:D], slab[4:5, 0:D]
        n2_g, n2_b = slab[5:6, 0:D], slab[6:7, 0:D]
        fb1 = slab[7:8, 0:FF]
        fb2 = slab[8:9, 0:D]

        # merged fwd/bwd in_proj, columns pre-permuted to [x_f|x_b|z_f|z_b]
        xz = jnp.dot(enc, w_in_ref[l], preferred_element_type=f32)  # (Nv, 4*Ci)
        xi = xz[:, 0:C2]
        zg = xz[:, C2:2 * C2]
        sz = zg * jax.nn.sigmoid(zg)                                # SiLU(z)

        # depthwise conv: causal on fwd lanes, anti-causal on bwd lanes.
        # Shift-by-j realised as (8,8)@(8,128) matmuls (implicit zero padding);
        # tap order was reversed host-side so cw[j] pairs with a shift of j.
        cw = conv_w_ref[l]                                          # (K, 128)
        acc = xi * cw[0:1, :]
        for j in range(1, K):
            dn = jnp.dot(shift_dn[j - 1], xi, preferred_element_type=f32)
            up = jnp.dot(shift_up[j - 1], xi, preferred_element_type=f32)
            acc = acc + jnp.where(lane1, dn, up) * cw[j:j + 1, :]
        xcv = acc + conv_b
        xcv = xcv * jax.nn.sigmoid(xcv)                             # SiLU

        # folded x_proj + dt_proj, both directions, one block-diagonal matmul
        p = jnp.dot(xcv, w_xp_ref[l], preferred_element_type=f32) + b_xp  # (Nv,160)
        dt = jax.nn.softplus(p[:, 0:C2])                            # (Nv, 128)
        du = dt * xcv                                               # dt * u
        At = At_ref[l]                                              # (S, 128)

        # ---- precompute (off the recurrence critical path) ------------------
        # bwd direction runs position-reversed -> reversed rows on bwd lanes
        dt_sel = jnp.where(lane1, dt, jnp.dot(rev, dt, preferred_element_type=f32))
        du_sel = jnp.where(lane1, du, jnp.dot(rev, du, preferred_element_type=f32))
        # one EUP burst for every exp() used by the scan
        dA_all = jnp.exp(jnp.concatenate(
            [dt_sel[s:s + 1, :] * At for s in range(Nv)], axis=0))  # (Nv*S, 128)
        # B/C rows -> state-index columns (one masked lane reduction per pos)
        bc = p[:, C2:C2 + 4 * S]                                    # (Nv, 32)
        bc_cols = [jnp.sum(bc[s:s + 1, :] * eye32, axis=1, keepdims=True)
                   for s in range(Nv)]                              # each (32, 1)

        # ---- interleaved fwd/bwd selective scan: 8 steps, state (8,128) -----
        h = jnp.zeros((S, C2), f32)
        y_scan = jnp.zeros((Nv, C2), f32)
        for s in range(Nv):
            pb = Nv - 1 - s
            b_col = jnp.where(lane1, bc_cols[s][0:S, :], bc_cols[pb][S:2 * S, :])
            c_col = jnp.where(lane1, bc_cols[s][2 * S:3 * S, :],
                              bc_cols[pb][3 * S:4 * S, :])
            h = dA_all[s * S:(s + 1) * S, :] * h + b_col * du_sel[s:s + 1, :]
            y_row = jnp.sum(h * c_col, axis=0, keepdims=True)       # (1, 128)
            y_scan = jnp.where(row8 == s, y_row, y_scan)
        # bwd lanes were written in reverse position order -> un-reverse them
        y = jnp.where(lane1, y_scan,
                      jnp.dot(rev, y_scan, preferred_element_type=f32))
        y = (y + xcv * Dsk) * sz                                    # D-skip + gate

        # merged fwd+bwd out_proj, residual, norm1, FFN, norm2
        res = enc + jnp.dot(y, w_out_ref[l], preferred_element_type=f32)
        x1 = layernorm(res, n1_g, n1_b)
        hid = jnp.maximum(
            jnp.dot(x1, w_c1_ref[l], preferred_element_type=f32) + fb1, 0.0)
        h2 = jnp.dot(hid, w_c2_ref[l], preferred_element_type=f32) + fb2
        enc = layernorm(x1 + h2, n2_g, n2_b)

    # ---- tail: encoder norm + projector + de-norm + output linear -----------
    en = enc_norm_ref[...]
    xe = layernorm(enc, en[0:1, :], en[1:2, :])                     # (Nv, D)
    pw = proj_ref[...]                                              # (D+1, P)
    dec = jnp.dot(xe, pw[0:D, :], preferred_element_type=f32) + pw[D:D + 1, :]
    if USE_NORM:
        dec = dec * std + mu                                        # per-variate denorm
    ow = ow_ref[...]                                                # (V, Nv+1)
    o_ref[0] = (jnp.dot(ow[:, 0:Nv], dec, preferred_element_type=f32)
                + ow[:, Nv:Nv + 1])                                 # (V, P)


def sdmamba_forward(x_enc, fp):
    Bb = x_enc.shape[0]
    x_t = jnp.transpose(x_enc, (0, 2, 1))                           # (B, N, L)

    def full(a):
        nd = a.ndim
        return pl.BlockSpec(a.shape, lambda b, _nd=nd: (0,) * _nd)

    out = pl.pallas_call(
        _sdmamba_kernel,
        out_shape=jax.ShapeDtypeStruct((Bb, OUT_VARS, PRED_LEN), jnp.float32),
        grid=(Bb,),
        in_specs=[
            pl.BlockSpec((1, VARIATES, SEQ_LEN), lambda b: (b, 0, 0)),   # x (variate-major)
            full(fp["head"]),       # embedding weight+bias
            full(fp["w_in"]),       # (E, D, 4*Ci)
            full(fp["conv_w"]),     # (E, K, 2*Ci)   taps reversed, fwd|bwd
            full(fp["w_xp"]),       # (E, 2*Ci, PW)  block-diag folded x_proj
            full(fp["At"]),         # (E, S, 2*Ci)
            full(fp["w_out"]),      # (E, 2*Ci, D)   stacked fwd;bwd
            full(fp["w_c1"]),       # (E, D, FF)
            full(fp["w_c2"]),       # (E, FF, D)
            full(fp["slab"]),       # (E, 9, PW)     packed small constants
            full(fp["enc_norm"]),   # (2, D)
            full(fp["proj"]),       # (D+1, P)
            full(fp["out_w"]),      # (V, N+1)
        ],
        out_specs=pl.BlockSpec((1, OUT_VARS, PRED_LEN), lambda b: (b, 0, 0)),
        compiler_params=pltpu.CompilerParams(dimension_semantics=("parallel",)),
    )(x_t, fp["head"], fp["w_in"], fp["conv_w"], fp["w_xp"], fp["At"],
      fp["w_out"], fp["w_c1"], fp["w_c2"], fp["slab"],
      fp["enc_norm"], fp["proj"], fp["out_w"])
    return jnp.transpose(out, (0, 2, 1))                            # (B, P, V)


# ----------------------------- deterministic parameter init -------------------
def init_params(key):
    keys = iter(jax.random.split(key, 256))

    def nrm(shape, scale=0.05):
        return (scale * jax.random.normal(next(keys), shape)).astype(jnp.float32)

    def mamba_params():
        return dict(
            in_proj_w=nrm((D_MODEL, 2 * D_INNER)),
            conv_w=nrm((D_CONV, D_INNER)),
            conv_b=nrm((D_INNER,)),
            x_proj_w=nrm((D_INNER, DT_RANK + 2 * D_STATE)),
            dt_proj_w=nrm((DT_RANK, D_INNER), scale=0.5),
            dt_proj_b=nrm((D_INNER,), scale=0.5),
            A_log=jnp.log(jnp.broadcast_to(
                jnp.arange(1, D_STATE + 1, dtype=jnp.float32),
                (D_INNER, D_STATE))),
            D=jnp.ones((D_INNER,), jnp.float32),
            out_proj_w=nrm((D_INNER, D_MODEL)),
        )

    layers = []
    for _ in range(E_LAYERS):
        layers.append(dict(
            mamba_f=mamba_params(),
            mamba_b=mamba_params(),
            conv1_w=nrm((D_MODEL, D_FF)), conv1_b=nrm((D_FF,)),
            conv2_w=nrm((D_FF, D_MODEL)), conv2_b=nrm((D_MODEL,)),
            norm1_g=jnp.ones((D_MODEL,), jnp.float32),
            norm1_b=jnp.zeros((D_MODEL,), jnp.float32),
            norm2_g=jnp.ones((D_MODEL,), jnp.float32),
            norm2_b=jnp.zeros((D_MODEL,), jnp.float32),
        ))

    return dict(
        emb_w=nrm((SEQ_LEN, D_MODEL)), emb_b=nrm((D_MODEL,)),
        layers=layers,
        enc_norm_g=jnp.ones((D_MODEL,), jnp.float32),
        enc_norm_b=jnp.zeros((D_MODEL,), jnp.float32),
        proj_w=nrm((D_MODEL, PRED_LEN)), proj_b=nrm((PRED_LEN,)),
        out_w=nrm((VARIATES, OUT_VARS)), out_b=nrm((OUT_VARS,)),
    )


# ----------------------------- host-side weight fusion / packing --------------
def prepare_params(p):
    Ci, S = D_INNER, D_STATE

    def fuse_dir(mp):
        At = jnp.transpose(-jnp.exp(mp["A_log"]))                    # (S, Ci)
        w_dt = mp["x_proj_w"][:, :DT_RANK] @ mp["dt_proj_w"]         # (Ci, Ci)
        w_B = mp["x_proj_w"][:, DT_RANK:DT_RANK + S]                 # (Ci, S)
        w_C = mp["x_proj_w"][:, DT_RANK + S:]                        # (Ci, S)
        return At, w_dt, w_B, w_C

    def pad_row(v):
        return jnp.pad(v, (0, PW - v.shape[0])).reshape(1, PW)

    def fuse_layer(lp):
        mf, mb = lp["mamba_f"], lp["mamba_b"]
        At_f, wdt_f, wB_f, wC_f = fuse_dir(mf)
        At_b, wdt_b, wB_b, wC_b = fuse_dir(mb)
        z = lambda r, c: jnp.zeros((r, c), jnp.float32)
        # output columns: [dt_f | dt_b | B_f | B_b | C_f | C_b]
        w_xp = jnp.concatenate([
            jnp.concatenate([wdt_f, z(Ci, Ci), wB_f, z(Ci, S), wC_f, z(Ci, S)], axis=1),
            jnp.concatenate([z(Ci, Ci), wdt_b, z(Ci, S), wB_b, z(Ci, S), wC_b], axis=1),
        ], axis=0)                                                   # (128, 160)
        b_xp = jnp.concatenate([mf["dt_proj_b"], mb["dt_proj_b"],
                                jnp.zeros((4 * S,), jnp.float32)])
        # in_proj columns re-ordered to [x_f | x_b | z_f | z_b]
        w_in = jnp.concatenate(
            [mf["in_proj_w"][:, :Ci], mb["in_proj_w"][:, :Ci],
             mf["in_proj_w"][:, Ci:], mb["in_proj_w"][:, Ci:]], axis=1)
        # conv taps reversed so tap j pairs with a shift of j inside the kernel
        conv_w = jnp.concatenate([mf["conv_w"][::-1, :], mb["conv_w"][::-1, :]], axis=1)
        conv_b = jnp.concatenate([mf["conv_b"], mb["conv_b"]])
        Dsk = jnp.concatenate([mf["D"], mb["D"]])
        w_out = jnp.concatenate([mf["out_proj_w"], mb["out_proj_w"]], axis=0)
        slab = jnp.concatenate([
            pad_row(conv_b), pad_row(b_xp), pad_row(Dsk),
            pad_row(lp["norm1_g"]), pad_row(lp["norm1_b"]),
            pad_row(lp["norm2_g"]), pad_row(lp["norm2_b"]),
            pad_row(lp["conv1_b"]), pad_row(lp["conv2_b"]),
        ], axis=0)                                                   # (9, PW)
        return dict(w_in=w_in, conv_w=conv_w, w_xp=w_xp,
                    At=jnp.concatenate([At_f, At_b], axis=1),
                    w_out=w_out, w_c1=lp["conv1_w"], w_c2=lp["conv2_w"], slab=slab)

    Ls = [fuse_layer(lp) for lp in p["layers"]]
    stack = lambda k: jnp.stack([l[k] for l in Ls], axis=0)
    return dict(
        head=jnp.concatenate([p["emb_w"], p["emb_b"].reshape(1, D_MODEL)], axis=0),
        w_in=stack("w_in"), conv_w=stack("conv_w"), w_xp=stack("w_xp"),
        At=stack("At"), w_out=stack("w_out"),
        w_c1=stack("w_c1"), w_c2=stack("w_c2"), slab=stack("slab"),
        enc_norm=jnp.stack([p["enc_norm_g"], p["enc_norm_b"]], axis=0),
        proj=jnp.concatenate([p["proj_w"], p["proj_b"].reshape(1, PRED_LEN)], axis=0),
        out_w=jnp.concatenate([p["out_w"].T, p["out_b"].reshape(OUT_VARS, 1)], axis=1),
    )


if __name__ == "__main__":
    key = jax.random.PRNGKey(0)
    pkey, xkey = jax.random.split(key)
    params = prepare_params(init_params(pkey))
    x_enc = jax.random.normal(xkey, (B, SEQ_LEN, VARIATES), dtype=jnp.float32)

    fwd = jax.jit(lambda x: sdmamba_forward(x, params))
    out = fwd(x_enc)
    jax.block_until_ready(out)
    assert out.shape == (B, PRED_LEN, OUT_VARS), out.shape
    assert bool(jnp.all(jnp.isfinite(out)))
    # (dec_out[:, -pred_len:, :], 0) -> dec_out already has pred_len rows
    print("KERNEL_OK")
</pallas_src>

<mosaic_0001>
module attributes {stable_mosaic.version = 11 : i64} {
  func.func @_sdmamba_kernel(%arg0: i32, %arg1: memref<1x8x16xf32, #tpu.memory_space<vmem>>, %arg2: memref<17x32xf32, #tpu.memory_space<vmem>>, %arg3: memref<2x32x256xf32, #tpu.memory_space<vmem>>, %arg4: memref<2x4x128xf32, #tpu.memory_space<vmem>>, %arg5: memref<2x128x160xf32, #tpu.memory_space<vmem>>, %arg6: memref<2x8x128xf32, #tpu.memory_space<vmem>>, %arg7: memref<2x128x32xf32, #tpu.memory_space<vmem>>, %arg8: memref<2x32x64xf32, #tpu.memory_space<vmem>>, %arg9: memref<2x64x32xf32, #tpu.memory_space<vmem>>, %arg10: memref<2x9x160xf32, #tpu.memory_space<vmem>>, %arg11: memref<2x32xf32, #tpu.memory_space<vmem>>, %arg12: memref<33x8xf32, #tpu.memory_space<vmem>>, %arg13: memref<4x9xf32, #tpu.memory_space<vmem>>, %arg14: memref<1x4x8xf32, #tpu.memory_space<vmem>>) attributes {dimension_semantics = [#tpu.dimension_semantics<parallel>], iteration_bounds = array<i64: 2>, scalar_prefetch = 0 : i64, scratch_operands = 0 : i64, tpu.core_type = #tpu.core_type<tc>, window_params = [{transform_indices = @transform_0, window_bounds = array<i64: 1, 8, 16>}, {pipeline_mode = #tpu.pipeline_mode<synchronous>, transform_indices = @transform_1, window_bounds = array<i64: 17, 32>}, {pipeline_mode = #tpu.pipeline_mode<synchronous>, transform_indices = @transform_2, window_bounds = array<i64: 2, 32, 256>}, {pipeline_mode = #tpu.pipeline_mode<synchronous>, transform_indices = @transform_3, window_bounds = array<i64: 2, 4, 128>}, {pipeline_mode = #tpu.pipeline_mode<synchronous>, transform_indices = @transform_4, window_bounds = array<i64: 2, 128, 160>}, {pipeline_mode = #tpu.pipeline_mode<synchronous>, transform_indices = @transform_5, window_bounds = array<i64: 2, 8, 128>}, {pipeline_mode = #tpu.pipeline_mode<synchronous>, transform_indices = @transform_6, window_bounds = array<i64: 2, 128, 32>}, {pipeline_mode = #tpu.pipeline_mode<synchronous>, transform_indices = @transform_7, window_bounds = array<i64: 2, 32, 64>}, {pipeline_mode = #tpu.pipeline_mode<synchronous>, transform_indices = @transform_8, window_bounds = array<i64: 2, 64, 32>}, {pipeline_mode = #tpu.pipeline_mode<synchronous>, transform_indices = @transform_9, window_bounds = array<i64: 2, 9, 160>}, {pipeline_mode = #tpu.pipeline_mode<synchronous>, transform_indices = @transform_10, window_bounds = array<i64: 2, 32>}, {pipeline_mode = #tpu.pipeline_mode<synchronous>, transform_indices = @transform_11, window_bounds = array<i64: 33, 8>}, {pipeline_mode = #tpu.pipeline_mode<synchronous>, transform_indices = @transform_12, window_bounds = array<i64: 4, 9>}, {transform_indices = @transform_13, window_bounds = array<i64: 1, 4, 8>}]} {
    %0 = tpu.iota {dimensions = array<i32: 1>} : vector<1x128xi32>
    %c64_i32 = arith.constant 64 : i32
    %1 = vector.broadcast %c64_i32 : i32 to vector<1x128xi32>
    %2 = arith.cmpi slt, %0, %1 : vector<1x128xi32>
    %3 = tpu.iota {dimensions = array<i32: 0>} : vector<8x8xi32>
    %4 = tpu.iota {dimensions = array<i32: 1>} : vector<8x8xi32>
    %5 = arith.addi %3, %4 : vector<8x8xi32>
    %c7_i32 = arith.constant 7 : i32
    %6 = vector.broadcast %c7_i32 : i32 to vector<8x8xi32>
    %7 = arith.cmpi eq, %5, %6 : vector<8x8xi32>
    %8 = arith.extui %7 : vector<8x8xi1> to vector<8x8xi32>
    %9 = arith.sitofp %8 : vector<8x8xi32> to vector<8x8xf32>
    %10 = arith.subi %3, %4 : vector<8x8xi32>
    %c1_i32 = arith.constant 1 : i32
    %11 = vector.broadcast %c1_i32 : i32 to vector<8x8xi32>
    %12 = arith.cmpi eq, %10, %11 : vector<8x8xi32>
    %13 = arith.extui %12 : vector<8x8xi1> to vector<8x8xi32>
    %14 = arith.sitofp %13 : vector<8x8xi32> to vector<8x8xf32>
    %15 = arith.subi %3, %4 : vector<8x8xi32>
    %c2_i32 = arith.constant 2 : i32
    %16 = vector.broadcast %c2_i32 : i32 to vector<8x8xi32>
    %17 = arith.cmpi eq, %15, %16 : vector<8x8xi32>
    %18 = arith.extui %17 : vector<8x8xi1> to vector<8x8xi32>
    %19 = arith.sitofp %18 : vector<8x8xi32> to vector<8x8xf32>
    %20 = arith.subi %3, %4 : vector<8x8xi32>
    %c3_i32 = arith.constant 3 : i32
    %21 = vector.broadcast %c3_i32 : i32 to vector<8x8xi32>
    %22 = arith.cmpi eq, %20, %21 : vector<8x8xi32>
    %23 = arith.extui %22 : vector<8x8xi1> to vector<8x8xi32>
    %24 = arith.sitofp %23 : vector<8x8xi32> to vector<8x8xf32>
    %25 = arith.subi %4, %3 : vector<8x8xi32>
    %c1_i32_0 = arith.constant 1 : i32
    %26 = vector.broadcast %c1_i32_0 : i32 to vector<8x8xi32>
    %27 = arith.cmpi eq, %25, %26 : vector<8x8xi32>
    %28 = arith.extui %27 : vector<8x8xi1> to vector<8x8xi32>
    %29 = arith.sitofp %28 : vector<8x8xi32> to vector<8x8xf32>
    %30 = arith.subi %4, %3 : vector<8x8xi32>
    %c2_i32_1 = arith.constant 2 : i32
    %31 = vector.broadcast %c2_i32_1 : i32 to vector<8x8xi32>
    %32 = arith.cmpi eq, %30, %31 : vector<8x8xi32>
    %33 = arith.extui %32 : vector<8x8xi1> to vector<8x8xi32>
    %34 = arith.sitofp %33 : vector<8x8xi32> to vector<8x8xf32>
    %35 = arith.subi %4, %3 : vector<8x8xi32>
    %c3_i32_2 = arith.constant 3 : i32
    %36 = vector.broadcast %c3_i32_2 : i32 to vector<8x8xi32>
    %37 = arith.cmpi eq, %35, %36 : vector<8x8xi32>
    %38 = arith.extui %37 : vector<8x8xi1> to vector<8x8xi32>
    %39 = arith.sitofp %38 : vector<8x8xi32> to vector<8x8xf32>
    %40 = tpu.iota {dimensions = array<i32: 0>} : vector<32x32xi32>
    %41 = tpu.iota {dimensions = array<i32: 1>} : vector<32x32xi32>
    %42 = arith.cmpi eq, %40, %41 : vector<32x32xi32>
    %43 = arith.extui %42 : vector<32x32xi1> to vector<32x32xi32>
    %44 = arith.sitofp %43 : vector<32x32xi32> to vector<32x32xf32>
    %45 = tpu.iota {dimensions = array<i32: 0>} : vector<8x128xi32>
    %c0 = arith.constant 0 : index
    %c0_3 = arith.constant 0 : index
    %c0_4 = arith.constant 0 : index
    %46 = vector.load %arg1[%c0, %c0_3, %c0_4] : memref<1x8x16xf32, #tpu.memory_space<vmem>>, vector<1x8x16xf32>
    %47 = vector.shape_cast %46 : vector<1x8x16xf32> to vector<8x16xf32>
    %cst = arith.constant dense<0.000000e+00> : vector<8xf32>
    %48 = vector.multi_reduction <add>, %47, %cst [1] : vector<8x16xf32> to vector<8xf32>
    %49 = vector.shape_cast %48 : vector<8xf32> to vector<8x1xf32>
    %cst_5 = arith.constant 1.600000e+01 : f32
    %50 = vector.broadcast %cst_5 : f32 to vector<8x1xf32>
    %51 = arith.divf %49, %50 : vector<8x1xf32>
    %52 = vector.broadcast %51 : vector<8x1xf32> to vector<8x16xf32>
    %53 = arith.subf %47, %52 : vector<8x16xf32>
    %54 = arith.mulf %53, %53 : vector<8x16xf32>
    %cst_6 = arith.constant dense<0.000000e+00> : vector<8xf32>
    %55 = vector.multi_reduction <add>, %54, %cst_6 [1] : vector<8x16xf32> to vector<8xf32>
    %56 = vector.shape_cast %55 : vector<8xf32> to vector<8x1xf32>
    %cst_7 = arith.constant 1.600000e+01 : f32
    %57 = vector.broadcast %cst_7 : f32 to vector<8x1xf32>
    %58 = arith.divf %56, %57 : vector<8x1xf32>
    %cst_8 = arith.constant 9.99999974E-6 : f32
    %59 = vector.broadcast %cst_8 : f32 to vector<8x1xf32>
    %60 = arith.addf %58, %59 : vector<8x1xf32>
    %61 = math.sqrt %60 : vector<8x1xf32>
    %cst_9 = arith.constant 9.99999974E-6 : f32
    %62 = vector.broadcast %cst_9 : f32 to vector<8x1xf32>
    %63 = arith.addf %58, %62 : vector<8x1xf32>
    %64 = math.rsqrt %63 : vector<8x1xf32>
    %65 = vector.broadcast %64 : vector<8x1xf32> to vector<8x16xf32>
    %66 = arith.mulf %53, %65 : vector<8x16xf32>
    %c0_10 = arith.constant 0 : index
    %c0_11 = arith.constant 0 : index
    %67 = vector.load %arg2[%c0_10, %c0_11] : memref<17x32xf32, #tpu.memory_space<vmem>>, vector<17x32xf32>
    %68 = vector.extract_strided_slice %67 {offsets = [0, 0], sizes = [16, 32], strides = [1, 1]} : vector<17x32xf32> to vector<16x32xf32>
    %cst_12 = arith.constant dense<0.000000e+00> : vector<8x32xf32>
    %69 = tpu.matmul %66, %68, %cst_12 {dimension_numbers = #tpu.dot_dimension_numbers<[1], [0], [0], [1], [0, 0, 1, 1], [], []>} : vector<8x16xf32>, vector<16x32xf32>, vector<8x32xf32> -> vector<8x32xf32>
    %70 = vector.extract_strided_slice %67 {offsets = [16, 0], sizes = [1, 32], strides = [1, 1]} : vector<17x32xf32> to vector<1x32xf32>
    %71 = vector.broadcast %70 : vector<1x32xf32> to vector<8x32xf32>
    %72 = arith.addf %69, %71 : vector<8x32xf32>
    %c0_13 = arith.constant 0 : index
    %c0_14 = arith.constant 0 : index
    %c0_15 = arith.constant 0 : index
    %73 = vector.load %arg10[%c0_13, %c0_14, %c0_15] : memref<2x9x160xf32, #tpu.memory_space<vmem>>, vector<1x9x160xf32>
    %74 = vector.shape_cast %73 : vector<1x9x160xf32> to vector<9x160xf32>
    %75 = vector.extract_strided_slice %74 {offsets = [0, 0], sizes = [1, 128], strides = [1, 1]} : vector<9x160xf32> to vector<1x128xf32>
    %76 = vector.extract_strided_slice %74 {offsets = [1, 0], sizes = [1, 160], strides = [1, 1]} : vector<9x160xf32> to vector<1x160xf32>
    %77 = vector.extract_strided_slice %74 {offsets = [2, 0], sizes = [1, 128], strides = [1, 1]} : vector<9x160xf32> to vector<1x128xf32>
    %78 = vector.extract_strided_slice %74 {offsets = [3, 0], sizes = [1, 32], strides = [1, 1]} : vector<9x160xf32> to vector<1x32xf32>
    %79 = vector.extract_strided_slice %74 {offsets = [4, 0], sizes = [1, 32], strides = [1, 1]} : vector<9x160xf32> to vector<1x32xf32>
    %80 = vector.extract_strided_slice %74 {offsets = [5, 0], sizes = [1, 32], strides = [1, 1]} : vector<9x160xf32> to vector<1x32xf32>
    %81 = vector.extract_strided_slice %74 {offsets = [6, 0], sizes = [1, 32], strides = [1, 1]} : vector<9x160xf32> to vector<1x32xf32>
    %82 = vector.extract_strided_slice %74 {offsets = [7, 0], sizes = [1, 64], strides = [1, 1]} : vector<9x160xf32> to vector<1x64xf32>
    %83 = vector.extract_strided_slice %74 {offsets = [8, 0], sizes = [1, 32], strides = [1, 1]} : vector<9x160xf32> to vector<1x32xf32>
    %c0_16 = arith.constant 0 : index
    %c0_17 = arith.constant 0 : index
    %c0_18 = arith.constant 0 : index
    %84 = vector.load %arg3[%c0_16, %c0_17, %c0_18] : memref<2x32x256xf32, #tpu.memory_space<vmem>>, vector<1x32x256xf32>
    %85 = vector.shape_cast %84 : vector<1x32x256xf32> to vector<32x256xf32>
    %cst_19 = arith.constant dense<0.000000e+00> : vector<8x256xf32>
    %86 = tpu.matmul %72, %85, %cst_19 {dimension_numbers = #tpu.dot_dimension_numbers<[1], [0], [0], [1], [0, 0, 1, 1], [], []>} : vector<8x32xf32>, vector<32x256xf32>, vector<8x256xf32> -> vector<8x256xf32>
    %87 = vector.extract_strided_slice %86 {offsets = [0, 0], sizes = [8, 128], strides = [1, 1]} : vector<8x256xf32> to vector<8x128xf32>
    %88 = vector.extract_strided_slice %86 {offsets = [0, 128], sizes = [8, 128], strides = [1, 1]} : vector<8x256xf32> to vector<8x128xf32>
    %89 = arith.negf %88 : vector<8x128xf32>
    %90 = math.exp %89 : vector<8x128xf32>
    %cst_20 = arith.constant 1.000000e+00 : f32
    %91 = vector.broadcast %cst_20 : f32 to vector<8x128xf32>
    %92 = arith.addf %91, %90 : vector<8x128xf32>
    %93 = arith.divf %91, %92 : vector<8x128xf32>
    %94 = arith.mulf %88, %93 : vector<8x128xf32>
    %c0_21 = arith.constant 0 : index
    %c0_22 = arith.constant 0 : index
    %c0_23 = arith.constant 0 : index
    %95 = vector.load %arg4[%c0_21, %c0_22, %c0_23] : memref<2x4x128xf32, #tpu.memory_space<vmem>>, vector<1x4x128xf32>
    %96 = vector.shape_cast %95 : vector<1x4x128xf32> to vector<4x128xf32>
    %97 = vector.extract_strided_slice %96 {offsets = [0, 0], sizes = [1, 128], strides = [1, 1]} : vector<4x128xf32> to vector<1x128xf32>
    %98 = vector.broadcast %97 : vector<1x128xf32> to vector<8x128xf32>
    %99 = arith.mulf %87, %98 : vector<8x128xf32>
    %cst_24 = arith.constant dense<0.000000e+00> : vector<8x128xf32>
    %100 = tpu.matmul %14, %87, %cst_24 {dimension_numbers = #tpu.dot_dimension_numbers<[1], [0], [0], [1], [0, 0, 1, 1], [], []>} : vector<8x8xf32>, vector<8x128xf32>, vector<8x128xf32> -> vector<8x128xf32>
    %cst_25 = arith.constant dense<0.000000e+00> : vector<8x128xf32>
    %101 = tpu.matmul %29, %87, %cst_25 {dimension_numbers = #tpu.dot_dimension_numbers<[1], [0], [0], [1], [0, 0, 1, 1], [], []>} : vector<8x8xf32>, vector<8x128xf32>, vector<8x128xf32> -> vector<8x128xf32>
    %102 = vector.shape_cast %2 : vector<1x128xi1> to vector<1x128xi1>
    %103 = vector.broadcast %102 : vector<1x128xi1> to vector<8x128xi1>
    %104 = arith.select %103, %100, %101 : vector<8x128xi1>, vector<8x128xf32>
    %105 = vector.extract_strided_slice %96 {offsets = [1, 0], sizes = [1, 128], strides = [1, 1]} : vector<4x128xf32> to vector<1x128xf32>
    %106 = vector.broadcast %105 : vector<1x128xf32> to vector<8x128xf32>
    %107 = arith.mulf %104, %106 : vector<8x128xf32>
    %108 = arith.addf %99, %107 : vector<8x128xf32>
    %cst_26 = arith.constant dense<0.000000e+00> : vector<8x128xf32>
    %109 = tpu.matmul %19, %87, %cst_26 {dimension_numbers = #tpu.dot_dimension_numbers<[1], [0], [0], [1], [0, 0, 1, 1], [], []>} : vector<8x8xf32>, vector<8x128xf32>, vector<8x128xf32> -> vector<8x128xf32>
    %cst_27 = arith.constant dense<0.000000e+00> : vector<8x128xf32>
    %110 = tpu.matmul %34, %87, %cst_27 {dimension_numbers = #tpu.dot_dimension_numbers<[1], [0], [0], [1], [0, 0, 1, 1], [], []>} : vector<8x8xf32>, vector<8x128xf32>, vector<8x128xf32> -> vector<8x128xf32>
    %111 = vector.shape_cast %2 : vector<1x128xi1> to vector<1x128xi1>
    %112 = vector.broadcast %111 : vector<1x128xi1> to vector<8x128xi1>
    %113 = arith.select %112, %109, %110 : vector<8x128xi1>, vector<8x128xf32>
    %114 = vector.extract_strided_slice %96 {offsets = [2, 0], sizes = [1, 128], strides = [1, 1]} : vector<4x128xf32> to vector<1x128xf32>
    %115 = vector.broadcast %114 : vector<1x128xf32> to vector<8x128xf32>
    %116 = arith.mulf %113, %115 : vector<8x128xf32>
    %117 = arith.addf %108, %116 : vector<8x128xf32>
    %cst_28 = arith.constant dense<0.000000e+00> : vector<8x128xf32>
    %118 = tpu.matmul %24, %87, %cst_28 {dimension_numbers = #tpu.dot_dimension_numbers<[1], [0], [0], [1], [0, 0, 1, 1], [], []>} : vector<8x8xf32>, vector<8x128xf32>, vector<8x128xf32> -> vector<8x128xf32>
    %cst_29 = arith.constant dense<0.000000e+00> : vector<8x128xf32>
    %119 = tpu.matmul %39, %87, %cst_29 {dimension_numbers = #tpu.dot_dimension_numbers<[1], [0], [0], [1], [0, 0, 1, 1], [], []>} : vector<8x8xf32>, vector<8x128xf32>, vector<8x128xf32> -> vector<8x128xf32>
    %120 = vector.shape_cast %2 : vector<1x128xi1> to vector<1x128xi1>
    %121 = vector.broadcast %120 : vector<1x128xi1> to vector<8x128xi1>
    %122 = arith.select %121, %118, %119 : vector<8x128xi1>, vector<8x128xf32>
    %123 = vector.extract_strided_slice %96 {offsets = [3, 0], sizes = [1, 128], strides = [1, 1]} : vector<4x128xf32> to vector<1x128xf32>
    %124 = vector.broadcast %123 : vector<1x128xf32> to vector<8x128xf32>
    %125 = arith.mulf %122, %124 : vector<8x128xf32>
    %126 = arith.addf %117, %125 : vector<8x128xf32>
    %127 = vector.broadcast %75 : vector<1x128xf32> to vector<8x128xf32>
    %128 = arith.addf %126, %127 : vector<8x128xf32>
    %129 = arith.negf %128 : vector<8x128xf32>
    %130 = math.exp %129 : vector<8x128xf32>
    %cst_30 = arith.constant 1.000000e+00 : f32
    %131 = vector.broadcast %cst_30 : f32 to vector<8x128xf32>
    %132 = arith.addf %131, %130 : vector<8x128xf32>
    %133 = arith.divf %131, %132 : vector<8x128xf32>
    %134 = arith.mulf %128, %133 : vector<8x128xf32>
    %c0_31 = arith.constant 0 : index
    %c0_32 = arith.constant 0 : index
    %c0_33 = arith.constant 0 : index
    %135 = vector.load %arg5[%c0_31, %c0_32, %c0_33] : memref<2x128x160xf32, #tpu.memory_space<vmem>>, vector<1x128x160xf32>
    %136 = vector.shape_cast %135 : vector<1x128x160xf32> to vector<128x160xf32>
    %cst_34 = arith.constant dense<0.000000e+00> : vector<8x160xf32>
    %137 = tpu.matmul %134, %136, %cst_34 {dimension_numbers = #tpu.dot_dimension_numbers<[1], [0], [0], [1], [0, 0, 1, 1], [], []>} : vector<8x128xf32>, vector<128x160xf32>, vector<8x160xf32> -> vector<8x160xf32>
    %138 = vector.broadcast %76 : vector<1x160xf32> to vector<8x160xf32>
    %139 = arith.addf %137, %138 : vector<8x160xf32>
    %140 = vector.extract_strided_slice %139 {offsets = [0, 0], sizes = [8, 128], strides = [1, 1]} : vector<8x160xf32> to vector<8x128xf32>
    %cst_35 = arith.constant 0.000000e+00 : f32
    %141 = vector.broadcast %cst_35 : f32 to vector<8x128xf32>
    %142 = arith.maximumf %140, %141 : vector<8x128xf32>
    %143 = vector.broadcast %cst_35 : f32 to vector<8x128xf32>
    %144 = arith.subf %140, %143 : vector<8x128xf32>
    %145 = arith.cmpf one, %144, %144 : vector<8x128xf32>
    %146 = vector.broadcast %cst_35 : f32 to vector<8x128xf32>
    %147 = arith.addf %140, %146 : vector<8x128xf32>
    %148 = math.absf %144 : vector<8x128xf32>
    %cst_36 = arith.constant 0.000000e+00 : f32
    %149 = vector.broadcast %cst_36 : f32 to vector<8x128xf32>
    %150 = arith.subf %149, %148 : vector<8x128xf32>
    %151 = math.exp %150 : vector<8x128xf32>
    %152 = math.log1p %151 : vector<8x128xf32>
    %153 = arith.addf %142, %152 : vector<8x128xf32>
    %154 = arith.select %145, %147, %153 : vector<8x128xi1>, vector<8x128xf32>
    %155 = arith.mulf %154, %134 : vector<8x128xf32>
    %c0_37 = arith.constant 0 : index
    %c0_38 = arith.constant 0 : index
    %c0_39 = arith.constant 0 : index
    %156 = vector.load %arg6[%c0_37, %c0_38, %c0_39] : memref<2x8x128xf32, #tpu.memory_space<vmem>>, vector<1x8x128xf32>
    %157 = vector.shape_cast %156 : vector<1x8x128xf32> to vector<8x128xf32>
    %cst_40 = arith.constant dense<0.000000e+00> : vector<8x128xf32>
    %158 = tpu.matmul %9, %154, %cst_40 {dimension_numbers = #tpu.dot_dimension_numbers<[1], [0], [0], [1], [0, 0, 1, 1], [], []>} : vector<8x8xf32>, vector<8x128xf32>, vector<8x128xf32> -> vector<8x128xf32>
    %159 = vector.shape_cast %2 : vector<1x128xi1> to vector<1x128xi1>
    %160 = vector.broadcast %159 : vector<1x128xi1> to vector<8x128xi1>
    %161 = arith.select %160, %154, %158 : vector<8x128xi1>, vector<8x128xf32>
    %cst_41 = arith.constant dense<0.000000e+00> : vector<8x128xf32>
    %162 = tpu.matmul %9, %155, %cst_41 {dimension_numbers = #tpu.dot_dimension_numbers<[1], [0], [0], [1], [0, 0, 1, 1], [], []>} : vector<8x8xf32>, vector<8x128xf32>, vector<8x128xf32> -> vector<8x128xf32>
    %163 = vector.shape_cast %2 : vector<1x128xi1> to vector<1x128xi1>
    %164 = vector.broadcast %163 : vector<1x128xi1> to vector<8x128xi1>
    %165 = arith.select %164, %155, %162 : vector<8x128xi1>, vector<8x128xf32>
    %166 = vector.extract_strided_slice %161 {offsets = [0, 0], sizes = [1, 128], strides = [1, 1]} : vector<8x128xf32> to vector<1x128xf32>
    %167 = vector.broadcast %166 : vector<1x128xf32> to vector<8x128xf32>
    %168 = arith.mulf %167, %157 : vector<8x128xf32>
    %169 = vector.extract_strided_slice %161 {offsets = [1, 0], sizes = [1, 128], strides = [1, 1]} : vector<8x128xf32> to vector<1x128xf32>
    %170 = vector.broadcast %169 : vector<1x128xf32> to vector<8x128xf32>
    %171 = arith.mulf %170, %157 : vector<8x128xf32>
    %172 = vector.extract_strided_slice %161 {offsets = [2, 0], sizes = [1, 128], strides = [1, 1]} : vector<8x128xf32> to vector<1x128xf32>
    %173 = vector.broadcast %172 : vector<1x128xf32> to vector<8x128xf32>
    %174 = arith.mulf %173, %157 : vector<8x128xf32>
    %175 = vector.extract_strided_slice %161 {offsets = [3, 0], sizes = [1, 128], strides = [1, 1]} : vector<8x128xf32> to vector<1x128xf32>
    %176 = vector.broadcast %175 : vector<1x128xf32> to vector<8x128xf32>
    %177 = arith.mulf %176, %157 : vector<8x128xf32>
    %178 = vector.extract_strided_slice %161 {offsets = [4, 0], sizes = [1, 128], strides = [1, 1]} : vector<8x128xf32> to vector<1x128xf32>
    %179 = vector.broadcast %178 : vector<1x128xf32> to vector<8x128xf32>
    %180 = arith.mulf %179, %157 : vector<8x128xf32>
    %181 = vector.extract_strided_slice %161 {offsets = [5, 0], sizes = [1, 128], strides = [1, 1]} : vector<8x128xf32> to vector<1x128xf32>
    %182 = vector.broadcast %181 : vector<1x128xf32> to vector<8x128xf32>
    %183 = arith.mulf %182, %157 : vector<8x128xf32>
    %184 = vector.extract_strided_slice %161 {offsets = [6, 0], sizes = [1, 128], strides = [1, 1]} : vector<8x128xf32> to vector<1x128xf32>
    %185 = vector.broadcast %184 : vector<1x128xf32> to vector<8x128xf32>
    %186 = arith.mulf %185, %157 : vector<8x128xf32>
    %187 = vector.extract_strided_slice %161 {offsets = [7, 0], sizes = [1, 128], strides = [1, 1]} : vector<8x128xf32> to vector<1x128xf32>
    %188 = vector.broadcast %187 : vector<1x128xf32> to vector<8x128xf32>
    %189 = arith.mulf %188, %157 : vector<8x128xf32>
    %190 = tpu.concatenate %168, %171, %174, %177, %180, %183, %186, %189 in 0 : vector<8x128xf32>, vector<8x128xf32>, vector<8x128xf32>, vector<8x128xf32>, vector<8x128xf32>, vector<8x128xf32>, vector<8x128xf32>, vector<8x128xf32> -> vector<64x128xf32>
    %191 = math.exp %190 : vector<64x128xf32>
    %192 = vector.extract_strided_slice %139 {offsets = [0, 128], sizes = [8, 32], strides = [1, 1]} : vector<8x160xf32> to vector<8x32xf32>
    %193 = vector.extract_strided_slice %192 {offsets = [0, 0], sizes = [1, 32], strides = [1, 1]} : vector<8x32xf32> to vector<1x32xf32>
    %194 = vector.broadcast %193 : vector<1x32xf32> to vector<32x32xf32>
    %195 = arith.mulf %194, %44 : vector<32x32xf32>
    %cst_42 = arith.constant dense<0.000000e+00> : vector<32xf32>
    %196 = vector.multi_reduction <add>, %195, %cst_42 [1] : vector<32x32xf32> to vector<32xf32>
    %197 = vector.shape_cast %196 : vector<32xf32> to vector<32x1xf32>
    %198 = vector.extract_strided_slice %192 {offsets = [1, 0], sizes = [1, 32], strides = [1, 1]} : vector<8x32xf32> to vector<1x32xf32>
    %199 = vector.broadcast %198 : vector<1x32xf32> to vector<32x32xf32>
    %200 = arith.mulf %199, %44 : vector<32x32xf32>
    %cst_43 = arith.constant dense<0.000000e+00> : vector<32xf32>
    %201 = vector.multi_reduction <add>, %200, %cst_43 [1] : vector<32x32xf32> to vector<32xf32>
    %202 = vector.shape_cast %201 : vector<32xf32> to vector<32x1xf32>
    %203 = vector.extract_strided_slice %192 {offsets = [2, 0], sizes = [1, 32], strides = [1, 1]} : vector<8x32xf32> to vector<1x32xf32>
    %204 = vector.broadcast %203 : vector<1x32xf32> to vector<32x32xf32>
    %205 = arith.mulf %204, %44 : vector<32x32xf32>
    %cst_44 = arith.constant dense<0.000000e+00> : vector<32xf32>
    %206 = vector.multi_reduction <add>, %205, %cst_44 [1] : vector<32x32xf32> to vector<32xf32>
    %207 = vector.shape_cast %206 : vector<32xf32> to vector<32x1xf32>
    %208 = vector.extract_strided_slice %192 {offsets = [3, 0], sizes = [1, 32], strides = [1, 1]} : vector<8x32xf32> to vector<1x32xf32>
    %209 = vector.broadcast %208 : vector<1x32xf32> to vector<32x32xf32>
    %210 = arith.mulf %209, %44 : vector<32x32xf32>
    %cst_45 = arith.constant dense<0.000000e+00> : vector<32xf32>
    %211 = vector.multi_reduction <add>, %210, %cst_45 [1] : vector<32x32xf32> to vector<32xf32>
    %212 = vector.shape_cast %211 : vector<32xf32> to vector<32x1xf32>
    %213 = vector.extract_strided_slice %192 {offsets = [4, 0], sizes = [1, 32], strides = [1, 1]} : vector<8x32xf32> to vector<1x32xf32>
    %214 = vector.broadcast %213 : vector<1x32xf32> to vector<32x32xf32>
    %215 = arith.mulf %214, %44 : vector<32x32xf32>
    %cst_46 = arith.constant dense<0.000000e+00> : vector<32xf32>
    %216 = vector.multi_reduction <add>, %215, %cst_46 [1] : vector<32x32xf32> to vector<32xf32>
    %217 = vector.shape_cast %216 : vector<32xf32> to vector<32x1xf32>
    %218 = vector.extract_strided_slice %192 {offsets = [5, 0], sizes = [1, 32], strides = [1, 1]} : vector<8x32xf32> to vector<1x32xf32>
    %219 = vector.broadcast %218 : vector<1x32xf32> to vector<32x32xf32>
    %220 = arith.mulf %219, %44 : vector<32x32xf32>
    %cst_47 = arith.constant dense<0.000000e+00> : vector<32xf32>
    %221 = vector.multi_reduction <add>, %220, %cst_47 [1] : vector<32x32xf32> to vector<32xf32>
    %222 = vector.shape_cast %221 : vector<32xf32> to vector<32x1xf32>
    %223 = vector.extract_strided_slice %192 {offsets = [6, 0], sizes = [1, 32], strides = [1, 1]} : vector<8x32xf32> to vector<1x32xf32>
    %224 = vector.broadcast %223 : vector<1x32xf32> to vector<32x32xf32>
    %225 = arith.mulf %224, %44 : vector<32x32xf32>
    %cst_48 = arith.constant dense<0.000000e+00> : vector<32xf32>
    %226 = vector.multi_reduction <add>, %225, %cst_48 [1] : vector<32x32xf32> to vector<32xf32>
    %227 = vector.shape_cast %226 : vector<32xf32> to vector<32x1xf32>
    %228 = vector.extract_strided_slice %192 {offsets = [7, 0], sizes = [1, 32], strides = [1, 1]} : vector<8x32xf32> to vector<1x32xf32>
    %229 = vector.broadcast %228 : vector<1x32xf32> to vector<32x32xf32>
    %230 = arith.mulf %229, %44 : vector<32x32xf32>
    %cst_49 = arith.constant dense<0.000000e+00> : vector<32xf32>
    %231 = vector.multi_reduction <add>, %230, %cst_49 [1] : vector<32x32xf32> to vector<32xf32>
    %232 = vector.shape_cast %231 : vector<32xf32> to vector<32x1xf32>
    %cst_50 = arith.constant 0.000000e+00 : f32
    %233 = vector.broadcast %cst_50 : f32 to vector<8x128xf32>
    %cst_51 = arith.constant 0.000000e+00 : f32
    %234 = vector.broadcast %cst_51 : f32 to vector<8x128xf32>
    %235 = vector.extract_strided_slice %197 {offsets = [0, 0], sizes = [8, 1], strides = [1, 1]} : vector<32x1xf32> to vector<8x1xf32>
    %236 = vector.extract_strided_slice %232 {offsets = [8, 0], sizes = [8, 1], strides = [1, 1]} : vector<32x1xf32> to vector<8x1xf32>
    %237 = vector.shape_cast %2 : vector<1x128xi1> to vector<1x128xi1>
    %238 = vector.broadcast %237 : vector<1x128xi1> to vector<8x128xi1>
    %239 = vector.shape_cast %235 : vector<8x1xf32> to vector<8x1xf32>
    %240 = vector.broadcast %239 : vector<8x1xf32> to vector<8x128xf32>
    %241 = vector.shape_cast %236 : vector<8x1xf32> to vector<8x1xf32>
    %242 = vector.broadcast %241 : vector<8x1xf32> to vector<8x128xf32>
    %243 = arith.select %238, %240, %242 : vector<8x128xi1>, vector<8x128xf32>
    %244 = vector.extract_strided_slice %197 {offsets = [16, 0], sizes = [8, 1], strides = [1, 1]} : vector<32x1xf32> to vector<8x1xf32>
    %245 = vector.extract_strided_slice %232 {offsets = [24, 0], sizes = [8, 1], strides = [1, 1]} : vector<32x1xf32> to vector<8x1xf32>
    %246 = vector.shape_cast %2 : vector<1x128xi1> to vector<1x128xi1>
    %247 = vector.broadcast %246 : vector<1x128xi1> to vector<8x128xi1>
    %248 = vector.shape_cast %244 : vector<8x1xf32> to vector<8x1xf32>
    %249 = vector.broadcast %248 : vector<8x1xf32> to vector<8x128xf32>
    %250 = vector.shape_cast %245 : vector<8x1xf32> to vector<8x1xf32>
    %251 = vector.broadcast %250 : vector<8x1xf32> to vector<8x128xf32>
    %252 = arith.select %247, %249, %251 : vector<8x128xi1>, vector<8x128xf32>
    %253 = vector.extract_strided_slice %191 {offsets = [0, 0], sizes = [8, 128], strides = [1, 1]} : vector<64x128xf32> to vector<8x128xf32>
    %254 = arith.mulf %253, %233 : vector<8x128xf32>
    %255 = vector.extract_strided_slice %165 {offsets = [0, 0], sizes = [1, 128], strides = [1, 1]} : vector<8x128xf32> to vector<1x128xf32>
    %256 = vector.broadcast %255 : vector<1x128xf32> to vector<8x128xf32>
    %257 = arith.mulf %243, %256 : vector<8x128xf32>
    %258 = arith.addf %254, %257 : vector<8x128xf32>
    %259 = arith.mulf %258, %252 : vector<8x128xf32>
    %cst_52 = arith.constant dense<0.000000e+00> : vector<128xf32>
    %260 = vector.multi_reduction <add>, %259, %cst_52 [0] : vector<8x128xf32> to vector<128xf32>
    %261 = vector.shape_cast %260 : vector<128xf32> to vector<1x128xf32>
    %c0_i32 = arith.constant 0 : i32
    %262 = vector.broadcast %c0_i32 : i32 to vector<8x128xi32>
    %263 = arith.cmpi eq, %45, %262 : vector<8x128xi32>
    %264 = vector.shape_cast %261 : vector<1x128xf32> to vector<1x128xf32>
    %265 = vector.broadcast %264 : vector<1x128xf32> to vector<8x128xf32>
    %266 = arith.select %263, %265, %234 : vector<8x128xi1>, vector<8x128xf32>
    %267 = vector.extract_strided_slice %202 {offsets = [0, 0], sizes = [8, 1], strides = [1, 1]} : vector<32x1xf32> to vector<8x1xf32>
    %268 = vector.extract_strided_slice %227 {offsets = [8, 0], sizes = [8, 1], strides = [1, 1]} : vector<32x1xf32> to vector<8x1xf32>
    %269 = vector.shape_cast %2 : vector<1x128xi1> to vector<1x128xi1>
    %270 = vector.broadcast %269 : vector<1x128xi1> to vector<8x128xi1>
    %271 = vector.shape_cast %267 : vector<8x1xf32> to vector<8x1xf32>
    %272 = vector.broadcast %271 : vector<8x1xf32> to vector<8x128xf32>
    %273 = vector.shape_cast %268 : vector<8x1xf32> to vector<8x1xf32>
    %274 = vector.broadcast %273 : vector<8x1xf32> to vector<8x128xf32>
    %275 = arith.select %270, %272, %274 : vector<8x128xi1>, vector<8x128xf32>
    %276 = vector.extract_strided_slice %202 {offsets = [16, 0], sizes = [8, 1], strides = [1, 1]} : vector<32x1xf32> to vector<8x1xf32>
    %277 = vector.extract_strided_slice %227 {offsets = [24, 0], sizes = [8, 1], strides = [1, 1]} : vector<32x1xf32> to vector<8x1xf32>
    %278 = vector.shape_cast %2 : vector<1x128xi1> to vector<1x128xi1>
    %279 = vector.broadcast %278 : vector<1x128xi1> to vector<8x128xi1>
    %280 = vector.shape_cast %276 : vector<8x1xf32> to vector<8x1xf32>
    %281 = vector.broadcast %280 : vector<8x1xf32> to vector<8x128xf32>
    %282 = vector.shape_cast %277 : vector<8x1xf32> to vector<8x1xf32>
    %283 = vector.broadcast %282 : vector<8x1xf32> to vector<8x128xf32>
    %284 = arith.select %279, %281, %283 : vector<8x128xi1>, vector<8x128xf32>
    %285 = vector.extract_strided_slice %191 {offsets = [8, 0], sizes = [8, 128], strides = [1, 1]} : vector<64x128xf32> to vector<8x128xf32>
    %286 = arith.mulf %285, %258 : vector<8x128xf32>
    %287 = vector.extract_strided_slice %165 {offsets = [1, 0], sizes = [1, 128], strides = [1, 1]} : vector<8x128xf32> to vector<1x128xf32>
    %288 = vector.broadcast %287 : vector<1x128xf32> to vector<8x128xf32>
    %289 = arith.mulf %275, %288 : vector<8x128xf32>
    %290 = arith.addf %286, %289 : vector<8x128xf32>
    %291 = arith.mulf %290, %284 : vector<8x128xf32>
    %cst_53 = arith.constant dense<0.000000e+00> : vector<128xf32>
    %292 = vector.multi_reduction <add>, %291, %cst_53 [0] : vector<8x128xf32> to vector<128xf32>
    %293 = vector.shape_cast %292 : vector<128xf32> to vector<1x128xf32>
    %c1_i32_54 = arith.constant 1 : i32
    %294 = vector.broadcast %c1_i32_54 : i32 to vector<8x128xi32>
    %295 = arith.cmpi eq, %45, %294 : vector<8x128xi32>
    %296 = vector.shape_cast %293 : vector<1x128xf32> to vector<1x128xf32>
    %297 = vector.broadcast %296 : vector<1x128xf32> to vector<8x128xf32>
    %298 = arith.select %295, %297, %266 : vector<8x128xi1>, vector<8x128xf32>
    %299 = vector.extract_strided_slice %207 {offsets = [0, 0], sizes = [8, 1], strides = [1, 1]} : vector<32x1xf32> to vector<8x1xf32>
    %300 = vector.extract_strided_slice %222 {offsets = [8, 0], sizes = [8, 1], strides = [1, 1]} : vector<32x1xf32> to vector<8x1xf32>
    %301 = vector.shape_cast %2 : vector<1x128xi1> to vector<1x128xi1>
    %302 = vector.broadcast %301 : vector<1x128xi1> to vector<8x128xi1>
    %303 = vector.shape_cast %299 : vector<8x1xf32> to vector<8x1xf32>
    %304 = vector.broadcast %303 : vector<8x1xf32> to vector<8x128xf32>
    %305 = vector.shape_cast %300 : vector<8x1xf32> to vector<8x1xf32>
    %306 = vector.broadcast %305 : vector<8x1xf32> to vector<8x128xf32>
    %307 = arith.select %302, %304, %306 : vector<8x128xi1>, vector<8x128xf32>
    %308 = vector.extract_strided_slice %207 {offsets = [16, 0], sizes = [8, 1], strides = [1, 1]} : vector<32x1xf32> to vector<8x1xf32>
    %309 = vector.extract_strided_slice %222 {offsets = [24, 0], sizes = [8, 1], strides = [1, 1]} : vector<32x1xf32> to vector<8x1xf32>
    %310 = vector.shape_cast %2 : vector<1x128xi1> to vector<1x128xi1>
    %311 = vector.broadcast %310 : vector<1x128xi1> to vector<8x128xi1>
    %312 = vector.shape_cast %308 : vector<8x1xf32> to vector<8x1xf32>
    %313 = vector.broadcast %312 : vector<8x1xf32> to vector<8x128xf32>
    %314 = vector.shape_cast %309 : vector<8x1xf32> to vector<8x1xf32>
    %315 = vector.broadcast %314 : vector<8x1xf32> to vector<8x128xf32>
    %316 = arith.select %311, %313, %315 : vector<8x128xi1>, vector<8x128xf32>
    %317 = vector.extract_strided_slice %191 {offsets = [16, 0], sizes = [8, 128], strides = [1, 1]} : vector<64x128xf32> to vector<8x128xf32>
    %318 = arith.mulf %317, %290 : vector<8x128xf32>
    %319 = vector.extract_strided_slice %165 {offsets = [2, 0], sizes = [1, 128], strides = [1, 1]} : vector<8x128xf32> to vector<1x128xf32>
    %320 = vector.broadcast %319 : vector<1x128xf32> to vector<8x128xf32>
    %321 = arith.mulf %307, %320 : vector<8x128xf32>
    %322 = arith.addf %318, %321 : vector<8x128xf32>
    %323 = arith.mulf %322, %316 : vector<8x128xf32>
    %cst_55 = arith.constant dense<0.000000e+00> : vector<128xf32>
    %324 = vector.multi_reduction <add>, %323, %cst_55 [0] : vector<8x128xf32> to vector<128xf32>
    %325 = vector.shape_cast %324 : vector<128xf32> to vector<1x128xf32>
    %c2_i32_56 = arith.constant 2 : i32
    %326 = vector.broadcast %c2_i32_56 : i32 to vector<8x128xi32>
    %327 = arith.cmpi eq, %45, %326 : vector<8x128xi32>
    %328 = vector.shape_cast %325 : vector<1x128xf32> to vector<1x128xf32>
    %329 = vector.broadcast %328 : vector<1x128xf32> to vector<8x128xf32>
    %330 = arith.select %327, %329, %298 : vector<8x128xi1>, vector<8x128xf32>
    %331 = vector.extract_strided_slice %212 {offsets = [0, 0], sizes = [8, 1], strides = [1, 1]} : vector<32x1xf32> to vector<8x1xf32>
    %332 = vector.extract_strided_slice %217 {offsets = [8, 0], sizes = [8, 1], strides = [1, 1]} : vector<32x1xf32> to vector<8x1xf32>
    %333 = vector.shape_cast %2 : vector<1x128xi1> to vector<1x128xi1>
    %334 = vector.broadcast %333 : vector<1x128xi1> to vector<8x128xi1>
    %335 = vector.shape_cast %331 : vector<8x1xf32> to vector<8x1xf32>
    %336 = vector.broadcast %335 : vector<8x1xf32> to vector<8x128xf32>
    %337 = vector.shape_cast %332 : vector<8x1xf32> to vector<8x1xf32>
    %338 = vector.broadcast %337 : vector<8x1xf32> to vector<8x128xf32>
    %339 = arith.select %334, %336, %338 : vector<8x128xi1>, vector<8x128xf32>
    %340 = vector.extract_strided_slice %212 {offsets = [16, 0], sizes = [8, 1], strides = [1, 1]} : vector<32x1xf32> to vector<8x1xf32>
    %341 = vector.extract_strided_slice %217 {offsets = [24, 0], sizes = [8, 1], strides = [1, 1]} : vector<32x1xf32> to vector<8x1xf32>
    %342 = vector.shape_cast %2 : vector<1x128xi1> to vector<1x128xi1>
    %343 = vector.broadcast %342 : vector<1x128xi1> to vector<8x128xi1>
    %344 = vector.shape_cast %340 : vector<8x1xf32> to vector<8x1xf32>
    %345 = vector.broadcast %344 : vector<8x1xf32> to vector<8x128xf32>
    %346 = vector.shape_cast %341 : vector<8x1xf32> to vector<8x1xf32>
    %347 = vector.broadcast %346 : vector<8x1xf32> to vector<8x128xf32>
    %348 = arith.select %343, %345, %347 : vector<8x128xi1>, vector<8x128xf32>
    %349 = vector.extract_strided_slice %191 {offsets = [24, 0], sizes = [8, 128], strides = [1, 1]} : vector<64x128xf32> to vector<8x128xf32>
    %350 = arith.mulf %349, %322 : vector<8x128xf32>
    %351 = vector.extract_strided_slice %165 {offsets = [3, 0], sizes = [1, 128], strides = [1, 1]} : vector<8x128xf32> to vector<1x128xf32>
    %352 = vector.broadcast %351 : vector<1x128xf32> to vector<8x128xf32>
    %353 = arith.mulf %339, %352 : vector<8x128xf32>
    %354 = arith.addf %350, %353 : vector<8x128xf32>
    %355 = arith.mulf %354, %348 : vector<8x128xf32>
    %cst_57 = arith.constant dense<0.000000e+00> : vector<128xf32>
    %356 = vector.multi_reduction <add>, %355, %cst_57 [0] : vector<8x128xf32> to vector<128xf32>
    %357 = vector.shape_cast %356 : vector<128xf32> to vector<1x128xf32>
    %c3_i32_58 = arith.constant 3 : i32
    %358 = vector.broadcast %c3_i32_58 : i32 to vector<8x128xi32>
    %359 = arith.cmpi eq, %45, %358 : vector<8x128xi32>
    %360 = vector.shape_cast %357 : vector<1x128xf32> to vector<1x128xf32>
    %361 = vector.broadcast %360 : vector<1x128xf32> to vector<8x128xf32>
    %362 = arith.select %359, %361, %330 : vector<8x128xi1>, vector<8x128xf32>
    %363 = vector.extract_strided_slice %217 {offsets = [0, 0], sizes = [8, 1], strides = [1, 1]} : vector<32x1xf32> to vector<8x1xf32>
    %364 = vector.extract_strided_slice %212 {offsets = [8, 0], sizes = [8, 1], strides = [1, 1]} : vector<32x1xf32> to vector<8x1xf32>
    %365 = vector.shape_cast %2 : vector<1x128xi1> to vector<1x128xi1>
    %366 = vector.broadcast %365 : vector<1x128xi1> to vector<8x128xi1>
    %367 = vector.shape_cast %363 : vector<8x1xf32> to vector<8x1xf32>
    %368 = vector.broadcast %367 : vector<8x1xf32> to vector<8x128xf32>
    %369 = vector.shape_cast %364 : vector<8x1xf32> to vector<8x1xf32>
    %370 = vector.broadcast %369 : vector<8x1xf32> to vector<8x128xf32>
    %371 = arith.select %366, %368, %370 : vector<8x128xi1>, vector<8x128xf32>
    %372 = vector.extract_strided_slice %217 {offsets = [16, 0], sizes = [8, 1], strides = [1, 1]} : vector<32x1xf32> to vector<8x1xf32>
    %373 = vector.extract_strided_slice %212 {offsets = [24, 0], sizes = [8, 1], strides = [1, 1]} : vector<32x1xf32> to vector<8x1xf32>
    %374 = vector.shape_cast %2 : vector<1x128xi1> to vector<1x128xi1>
    %375 = vector.broadcast %374 : vector<1x128xi1> to vector<8x128xi1>
    %376 = vector.shape_cast %372 : vector<8x1xf32> to vector<8x1xf32>
    %377 = vector.broadcast %376 : vector<8x1xf32> to vector<8x128xf32>
    %378 = vector.shape_cast %373 : vector<8x1xf32> to vector<8x1xf32>
    %379 = vector.broadcast %378 : vector<8x1xf32> to vector<8x128xf32>
    %380 = arith.select %375, %377, %379 : vector<8x128xi1>, vector<8x128xf32>
    %381 = vector.extract_strided_slice %191 {offsets = [32, 0], sizes = [8, 128], strides = [1, 1]} : vector<64x128xf32> to vector<8x128xf32>
    %382 = arith.mulf %381, %354 : vector<8x128xf32>
    %383 = vector.extract_strided_slice %165 {offsets = [4, 0], sizes = [1, 128], strides = [1, 1]} : vector<8x128xf32> to vector<1x128xf32>
    %384 = vector.broadcast %383 : vector<1x128xf32> to vector<8x128xf32>
    %385 = arith.mulf %371, %384 : vector<8x128xf32>
    %386 = arith.addf %382, %385 : vector<8x128xf32>
    %387 = arith.mulf %386, %380 : vector<8x128xf32>
    %cst_59 = arith.constant dense<0.000000e+00> : vector<128xf32>
    %388 = vector.multi_reduction <add>, %387, %cst_59 [0] : vector<8x128xf32> to vector<128xf32>
    %389 = vector.shape_cast %388 : vector<128xf32> to vector<1x128xf32>
    %c4_i32 = arith.constant 4 : i32
    %390 = vector.broadcast %c4_i32 : i32 to vector<8x128xi32>
    %391 = arith.cmpi eq, %45, %390 : vector<8x128xi32>
    %392 = vector.shape_cast %389 : vector<1x128xf32> to vector<1x128xf32>
    %393 = vector.broadcast %392 : vector<1x128xf32> to vector<8x128xf32>
    %394 = arith.select %391, %393, %362 : vector<8x128xi1>, vector<8x128xf32>
    %395 = vector.extract_strided_slice %222 {offsets = [0, 0], sizes = [8, 1], strides = [1, 1]} : vector<32x1xf32> to vector<8x1xf32>
    %396 = vector.extract_strided_slice %207 {offsets = [8, 0], sizes = [8, 1], strides = [1, 1]} : vector<32x1xf32> to vector<8x1xf32>
    %397 = vector.shape_cast %2 : vector<1x128xi1> to vector<1x128xi1>
    %398 = vector.broadcast %397 : vector<1x128xi1> to vector<8x128xi1>
    %399 = vector.shape_cast %395 : vector<8x1xf32> to vector<8x1xf32>
    %400 = vector.broadcast %399 : vector<8x1xf32> to vector<8x128xf32>
    %401 = vector.shape_cast %396 : vector<8x1xf32> to vector<8x1xf32>
    %402 = vector.broadcast %401 : vector<8x1xf32> to vector<8x128xf32>
    %403 = arith.select %398, %400, %402 : vector<8x128xi1>, vector<8x128xf32>
    %404 = vector.extract_strided_slice %222 {offsets = [16, 0], sizes = [8, 1], strides = [1, 1]} : vector<32x1xf32> to vector<8x1xf32>
    %405 = vector.extract_strided_slice %207 {offsets = [24, 0], sizes = [8, 1], strides = [1, 1]} : vector<32x1xf32> to vector<8x1xf32>
    %406 = vector.shape_cast %2 : vector<1x128xi1> to vector<1x128xi1>
    %407 = vector.broadcast %406 : vector<1x128xi1> to vector<8x128xi1>
    %408 = vector.shape_cast %404 : vector<8x1xf32> to vector<8x1xf32>
    %409 = vector.broadcast %408 : vector<8x1xf32> to vector<8x128xf32>
    %410 = vector.shape_cast %405 : vector<8x1xf32> to vector<8x1xf32>
    %411 = vector.broadcast %410 : vector<8x1xf32> to vector<8x128xf32>
    %412 = arith.select %407, %409, %411 : vector<8x128xi1>, vector<8x128xf32>
    %413 = vector.extract_strided_slice %191 {offsets = [40, 0], sizes = [8, 128], strides = [1, 1]} : vector<64x128xf32> to vector<8x128xf32>
    %414 = arith.mulf %413, %386 : vector<8x128xf32>
    %415 = vector.extract_strided_slice %165 {offsets = [5, 0], sizes = [1, 128], strides = [1, 1]} : vector<8x128xf32> to vector<1x128xf32>
    %416 = vector.broadcast %415 : vector<1x128xf32> to vector<8x128xf32>
    %417 = arith.mulf %403, %416 : vector<8x128xf32>
    %418 = arith.addf %414, %417 : vector<8x128xf32>
    %419 = arith.mulf %418, %412 : vector<8x128xf32>
    %cst_60 = arith.constant dense<0.000000e+00> : vector<128xf32>
    %420 = vector.multi_reduction <add>, %419, %cst_60 [0] : vector<8x128xf32> to vector<128xf32>
    %421 = vector.shape_cast %420 : vector<128xf32> to vector<1x128xf32>
    %c5_i32 = arith.constant 5 : i32
    %422 = vector.broadcast %c5_i32 : i32 to vector<8x128xi32>
    %423 = arith.cmpi eq, %45, %422 : vector<8x128xi32>
    %424 = vector.shape_cast %421 : vector<1x128xf32> to vector<1x128xf32>
    %425 = vector.broadcast %424 : vector<1x128xf32> to vector<8x128xf32>
    %426 = arith.select %423, %425, %394 : vector<8x128xi1>, vector<8x128xf32>
    %427 = vector.extract_strided_slice %227 {offsets = [0, 0], sizes = [8, 1], strides = [1, 1]} : vector<32x1xf32> to vector<8x1xf32>
    %428 = vector.extract_strided_slice %202 {offsets = [8, 0], sizes = [8, 1], strides = [1, 1]} : vector<32x1xf32> to vector<8x1xf32>
    %429 = vector.shape_cast %2 : vector<1x128xi1> to vector<1x128xi1>
    %430 = vector.broadcast %429 : vector<1x128xi1> to vector<8x128xi1>
    %431 = vector.shape_cast %427 : vector<8x1xf32> to vector<8x1xf32>
    %432 = vector.broadcast %431 : vector<8x1xf32> to vector<8x128xf32>
    %433 = vector.shape_cast %428 : vector<8x1xf32> to vector<8x1xf32>
    %434 = vector.broadcast %433 : vector<8x1xf32> to vector<8x128xf32>
    %435 = arith.select %430, %432, %434 : vector<8x128xi1>, vector<8x128xf32>
    %436 = vector.extract_strided_slice %227 {offsets = [16, 0], sizes = [8, 1], strides = [1, 1]} : vector<32x1xf32> to vector<8x1xf32>
    %437 = vector.extract_strided_slice %202 {offsets = [24, 0], sizes = [8, 1], strides = [1, 1]} : vector<32x1xf32> to vector<8x1xf32>
    %438 = vector.shape_cast %2 : vector<1x128xi1> to vector<1x128xi1>
    %439 = vector.broadcast %438 : vector<1x128xi1> to vector<8x128xi1>
    %440 = vector.shape_cast %436 : vector<8x1xf32> to vector<8x1xf32>
    %441 = vector.broadcast %440 : vector<8x1xf32> to vector<8x128xf32>
    %442 = vector.shape_cast %437 : vector<8x1xf32> to vector<8x1xf32>
    %443 = vector.broadcast %442 : vector<8x1xf32> to vector<8x128xf32>
    %444 = arith.select %439, %441, %443 : vector<8x128xi1>, vector<8x128xf32>
    %445 = vector.extract_strided_slice %191 {offsets = [48, 0], sizes = [8, 128], strides = [1, 1]} : vector<64x128xf32> to vector<8x128xf32>
    %446 = arith.mulf %445, %418 : vector<8x128xf32>
    %447 = vector.extract_strided_slice %165 {offsets = [6, 0], sizes = [1, 128], strides = [1, 1]} : vector<8x128xf32> to vector<1x128xf32>
    %448 = vector.broadcast %447 : vector<1x128xf32> to vector<8x128xf32>
    %449 = arith.mulf %435, %448 : vector<8x128xf32>
    %450 = arith.addf %446, %449 : vector<8x128xf32>
    %451 = arith.mulf %450, %444 : vector<8x128xf32>
    %cst_61 = arith.constant dense<0.000000e+00> : vector<128xf32>
    %452 = vector.multi_reduction <add>, %451, %cst_61 [0] : vector<8x128xf32> to vector<128xf32>
    %453 = vector.shape_cast %452 : vector<128xf32> to vector<1x128xf32>
    %c6_i32 = arith.constant 6 : i32
    %454 = vector.broadcast %c6_i32 : i32 to vector<8x128xi32>
    %455 = arith.cmpi eq, %45, %454 : vector<8x128xi32>
    %456 = vector.shape_cast %453 : vector<1x128xf32> to vector<1x128xf32>
    %457 = vector.broadcast %456 : vector<1x128xf32> to vector<8x128xf32>
    %458 = arith.select %455, %457, %426 : vector<8x128xi1>, vector<8x128xf32>
    %459 = vector.extract_strided_slice %232 {offsets = [0, 0], sizes = [8, 1], strides = [1, 1]} : vector<32x1xf32> to vector<8x1xf32>
    %460 = vector.extract_strided_slice %197 {offsets = [8, 0], sizes = [8, 1], strides = [1, 1]} : vector<32x1xf32> to vector<8x1xf32>
    %461 = vector.shape_cast %2 : vector<1x128xi1> to vector<1x128xi1>
    %462 = vector.broadcast %461 : vector<1x128xi1> to vector<8x128xi1>
    %463 = vector.shape_cast %459 : vector<8x1xf32> to vector<8x1xf32>
    %464 = vector.broadcast %463 : vector<8x1xf32> to vector<8x128xf32>
    %465 = vector.shape_cast %460 : vector<8x1xf32> to vector<8x1xf32>
    %466 = vector.broadcast %465 : vector<8x1xf32> to vector<8x128xf32>
    %467 = arith.select %462, %464, %466 : vector<8x128xi1>, vector<8x128xf32>
    %468 = vector.extract_strided_slice %232 {offsets = [16, 0], sizes = [8, 1], strides = [1, 1]} : vector<32x1xf32> to vector<8x1xf32>
    %469 = vector.extract_strided_slice %197 {offsets = [24, 0], sizes = [8, 1], strides = [1, 1]} : vector<32x1xf32> to vector<8x1xf32>
    %470 = vector.shape_cast %2 : vector<1x128xi1> to vector<1x128xi1>
    %471 = vector.broadcast %470 : vector<1x128xi1> to vector<8x128xi1>
    %472 = vector.shape_cast %468 : vector<8x1xf32> to vector<8x1xf32>
    %473 = vector.broadcast %472 : vector<8x1xf32> to vector<8x128xf32>
    %474 = vector.shape_cast %469 : vector<8x1xf32> to vector<8x1xf32>
    %475 = vector.broadcast %474 : vector<8x1xf32> to vector<8x128xf32>
    %476 = arith.select %471, %473, %475 : vector<8x128xi1>, vector<8x128xf32>
    %477 = vector.extract_strided_slice %191 {offsets = [56, 0], sizes = [8, 128], strides = [1, 1]} : vector<64x128xf32> to vector<8x128xf32>
    %478 = arith.mulf %477, %450 : vector<8x128xf32>
    %479 = vector.extract_strided_slice %165 {offsets = [7, 0], sizes = [1, 128], strides = [1, 1]} : vector<8x128xf32> to vector<1x128xf32>
    %480 = vector.broadcast %479 : vector<1x128xf32> to vector<8x128xf32>
    %481 = arith.mulf %467, %480 : vector<8x128xf32>
    %482 = arith.addf %478, %481 : vector<8x128xf32>
    %483 = arith.mulf %482, %476 : vector<8x128xf32>
    %cst_62 = arith.constant dense<0.000000e+00> : vector<128xf32>
    %484 = vector.multi_reduction <add>, %483, %cst_62 [0] : vector<8x128xf32> to vector<128xf32>
    %485 = vector.shape_cast %484 : vector<128xf32> to vector<1x128xf32>
    %c7_i32_63 = arith.constant 7 : i32
    %486 = vector.broadcast %c7_i32_63 : i32 to vector<8x128xi32>
    %487 = arith.cmpi eq, %45, %486 : vector<8x128xi32>
    %488 = vector.shape_cast %485 : vector<1x128xf32> to vector<1x128xf32>
    %489 = vector.broadcast %488 : vector<1x128xf32> to vector<8x128xf32>
    %490 = arith.select %487, %489, %458 : vector<8x128xi1>, vector<8x128xf32>
    %cst_64 = arith.constant dense<0.000000e+00> : vector<8x128xf32>
    %491 = tpu.matmul %9, %490, %cst_64 {dimension_numbers = #tpu.dot_dimension_numbers<[1], [0], [0], [1], [0, 0, 1, 1], [], []>} : vector<8x8xf32>, vector<8x128xf32>, vector<8x128xf32> -> vector<8x128xf32>
    %492 = vector.shape_cast %2 : vector<1x128xi1> to vector<1x128xi1>
    %493 = vector.broadcast %492 : vector<1x128xi1> to vector<8x128xi1>
    %494 = arith.select %493, %490, %491 : vector<8x128xi1>, vector<8x128xf32>
    %495 = vector.broadcast %77 : vector<1x128xf32> to vector<8x128xf32>
    %496 = arith.mulf %134, %495 : vector<8x128xf32>
    %497 = arith.addf %494, %496 : vector<8x128xf32>
    %498 = arith.mulf %497, %94 : vector<8x128xf32>
    %c0_65 = arith.constant 0 : index
    %c0_66 = arith.constant 0 : index
    %c0_67 = arith.constant 0 : index
    %499 = vector.load %arg7[%c0_65, %c0_66, %c0_67] : memref<2x128x32xf32, #tpu.memory_space<vmem>>, vector<1x128x32xf32>
    %500 = vector.shape_cast %499 : vector<1x128x32xf32> to vector<128x32xf32>
    %cst_68 = arith.constant dense<0.000000e+00> : vector<8x32xf32>
    %501 = tpu.matmul %498, %500, %cst_68 {dimension_numbers = #tpu.dot_dimension_numbers<[1], [0], [0], [1], [0, 0, 1, 1], [], []>} : vector<8x128xf32>, vector<128x32xf32>, vector<8x32xf32> -> vector<8x32xf32>
    %502 = arith.addf %72, %501 : vector<8x32xf32>
    %cst_69 = arith.constant dense<0.000000e+00> : vector<8xf32>
    %503 = vector.multi_reduction <add>, %502, %cst_69 [1] : vector<8x32xf32> to vector<8xf32>
    %504 = vector.shape_cast %503 : vector<8xf32> to vector<8x1xf32>
    %cst_70 = arith.constant 3.200000e+01 : f32
    %505 = vector.broadcast %cst_70 : f32 to vector<8x1xf32>
    %506 = arith.divf %504, %505 : vector<8x1xf32>
    %507 = vector.broadcast %506 : vector<8x1xf32> to vector<8x32xf32>
    %508 = arith.subf %502, %507 : vector<8x32xf32>
    %509 = arith.mulf %508, %508 : vector<8x32xf32>
    %cst_71 = arith.constant dense<0.000000e+00> : vector<8xf32>
    %510 = vector.multi_reduction <add>, %509, %cst_71 [1] : vector<8x32xf32> to vector<8xf32>
    %511 = vector.shape_cast %510 : vector<8xf32> to vector<8x1xf32>
    %cst_72 = arith.constant 3.200000e+01 : f32
    %512 = vector.broadcast %cst_72 : f32 to vector<8x1xf32>
    %513 = arith.divf %511, %512 : vector<8x1xf32>
    %cst_73 = arith.constant 9.99999974E-6 : f32
    %514 = vector.broadcast %cst_73 : f32 to vector<8x1xf32>
    %515 = arith.addf %513, %514 : vector<8x1xf32>
    %516 = math.rsqrt %515 : vector<8x1xf32>
    %517 = vector.broadcast %516 : vector<8x1xf32> to vector<8x32xf32>
    %518 = arith.mulf %508, %517 : vector<8x32xf32>
    %519 = vector.broadcast %78 : vector<1x32xf32> to vector<8x32xf32>
    %520 = arith.mulf %518, %519 : vector<8x32xf32>
    %521 = vector.broadcast %79 : vector<1x32xf32> to vector<8x32xf32>
    %522 = arith.addf %520, %521 : vector<8x32xf32>
    %c0_74 = arith.constant 0 : index
    %c0_75 = arith.constant 0 : index
    %c0_76 = arith.constant 0 : index
    %523 = vector.load %arg8[%c0_74, %c0_75, %c0_76] : memref<2x32x64xf32, #tpu.memory_space<vmem>>, vector<1x32x64xf32>
    %524 = vector.shape_cast %523 : vector<1x32x64xf32> to vector<32x64xf32>
    %cst_77 = arith.constant dense<0.000000e+00> : vector<8x64xf32>
    %525 = tpu.matmul %522, %524, %cst_77 {dimension_numbers = #tpu.dot_dimension_numbers<[1], [0], [0], [1], [0, 0, 1, 1], [], []>} : vector<8x32xf32>, vector<32x64xf32>, vector<8x64xf32> -> vector<8x64xf32>
    %526 = vector.broadcast %82 : vector<1x64xf32> to vector<8x64xf32>
    %527 = arith.addf %525, %526 : vector<8x64xf32>
    %cst_78 = arith.constant 0.000000e+00 : f32
    %528 = vector.broadcast %cst_78 : f32 to vector<8x64xf32>
    %529 = arith.maximumf %527, %528 : vector<8x64xf32>
    %c0_79 = arith.constant 0 : index
    %c0_80 = arith.constant 0 : index
    %c0_81 = arith.constant 0 : index
    %530 = vector.load %arg9[%c0_79, %c0_80, %c0_81] : memref<2x64x32xf32, #tpu.memory_space<vmem>>, vector<1x64x32xf32>
    %531 = vector.shape_cast %530 : vector<1x64x32xf32> to vector<64x32xf32>
    %cst_82 = arith.constant dense<0.000000e+00> : vector<8x32xf32>
    %532 = tpu.matmul %529, %531, %cst_82 {dimension_numbers = #tpu.dot_dimension_numbers<[1], [0], [0], [1], [0, 0, 1, 1], [], []>} : vector<8x64xf32>, vector<64x32xf32>, vector<8x32xf32> -> vector<8x32xf32>
    %533 = vector.broadcast %83 : vector<1x32xf32> to vector<8x32xf32>
    %534 = arith.addf %532, %533 : vector<8x32xf32>
    %535 = arith.addf %522, %534 : vector<8x32xf32>
    %cst_83 = arith.constant dense<0.000000e+00> : vector<8xf32>
    %536 = vector.multi_reduction <add>, %535, %cst_83 [1] : vector<8x32xf32> to vector<8xf32>
    %537 = vector.shape_cast %536 : vector<8xf32> to vector<8x1xf32>
    %cst_84 = arith.constant 3.200000e+01 : f32
    %538 = vector.broadcast %cst_84 : f32 to vector<8x1xf32>
    %539 = arith.divf %537, %538 : vector<8x1xf32>
    %540 = vector.broadcast %539 : vector<8x1xf32> to vector<8x32xf32>
    %541 = arith.subf %535, %540 : vector<8x32xf32>
    %542 = arith.mulf %541, %541 : vector<8x32xf32>
    %cst_85 = arith.constant dense<0.000000e+00> : vector<8xf32>
    %543 = vector.multi_reduction <add>, %542, %cst_85 [1] : vector<8x32xf32> to vector<8xf32>
    %544 = vector.shape_cast %543 : vector<8xf32> to vector<8x1xf32>
    %cst_86 = arith.constant 3.200000e+01 : f32
    %545 = vector.broadcast %cst_86 : f32 to vector<8x1xf32>
    %546 = arith.divf %544, %545 : vector<8x1xf32>
    %cst_87 = arith.constant 9.99999974E-6 : f32
    %547 = vector.broadcast %cst_87 : f32 to vector<8x1xf32>
    %548 = arith.addf %546, %547 : vector<8x1xf32>
    %549 = math.rsqrt %548 : vector<8x1xf32>
    %550 = vector.broadcast %549 : vector<8x1xf32> to vector<8x32xf32>
    %551 = arith.mulf %541, %550 : vector<8x32xf32>
    %552 = vector.broadcast %80 : vector<1x32xf32> to vector<8x32xf32>
    %553 = arith.mulf %551, %552 : vector<8x32xf32>
    %554 = vector.broadcast %81 : vector<1x32xf32> to vector<8x32xf32>
    %555 = arith.addf %553, %554 : vector<8x32xf32>
    %c1 = arith.constant 1 : index
    %c0_88 = arith.constant 0 : index
    %c0_89 = arith.constant 0 : index
    %556 = vector.load %arg10[%c1, %c0_88, %c0_89] : memref<2x9x160xf32, #tpu.memory_space<vmem>>, vector<1x9x160xf32>
    %557 = vector.shape_cast %556 : vector<1x9x160xf32> to vector<9x160xf32>
    %558 = vector.extract_strided_slice %557 {offsets = [0, 0], sizes = [1, 128], strides = [1, 1]} : vector<9x160xf32> to vector<1x128xf32>
    %559 = vector.extract_strided_slice %557 {offsets = [1, 0], sizes = [1, 160], strides = [1, 1]} : vector<9x160xf32> to vector<1x160xf32>
    %560 = vector.extract_strided_slice %557 {offsets = [2, 0], sizes = [1, 128], strides = [1, 1]} : vector<9x160xf32> to vector<1x128xf32>
    %561 = vector.extract_strided_slice %557 {offsets = [3, 0], sizes = [1, 32], strides = [1, 1]} : vector<9x160xf32> to vector<1x32xf32>
    %562 = vector.extract_strided_slice %557 {offsets = [4, 0], sizes = [1, 32], strides = [1, 1]} : vector<9x160xf32> to vector<1x32xf32>
    %563 = vector.extract_strided_slice %557 {offsets = [5, 0], sizes = [1, 32], strides = [1, 1]} : vector<9x160xf32> to vector<1x32xf32>
    %564 = vector.extract_strided_slice %557 {offsets = [6, 0], sizes = [1, 32], strides = [1, 1]} : vector<9x160xf32> to vector<1x32xf32>
    %565 = vector.extract_strided_slice %557 {offsets = [7, 0], sizes = [1, 64], strides = [1, 1]} : vector<9x160xf32> to vector<1x64xf32>
    %566 = vector.extract_strided_slice %557 {offsets = [8, 0], sizes = [1, 32], strides = [1, 1]} : vector<9x160xf32> to vector<1x32xf32>
    %c1_90 = arith.constant 1 : index
    %c0_91 = arith.constant 0 : index
    %c0_92 = arith.constant 0 : index
    %567 = vector.load %arg3[%c1_90, %c0_91, %c0_92] : memref<2x32x256xf32, #tpu.memory_space<vmem>>, vector<1x32x256xf32>
    %568 = vector.shape_cast %567 : vector<1x32x256xf32> to vector<32x256xf32>
    %cst_93 = arith.constant dense<0.000000e+00> : vector<8x256xf32>
    %569 = tpu.matmul %555, %568, %cst_93 {dimension_numbers = #tpu.dot_dimension_numbers<[1], [0], [0], [1], [0, 0, 1, 1], [], []>} : vector<8x32xf32>, vector<32x256xf32>, vector<8x256xf32> -> vector<8x256xf32>
    %570 = vector.extract_strided_slice %569 {offsets = [0, 0], sizes = [8, 128], strides = [1, 1]} : vector<8x256xf32> to vector<8x128xf32>
    %571 = vector.extract_strided_slice %569 {offsets = [0, 128], sizes = [8, 128], strides = [1, 1]} : vector<8x256xf32> to vector<8x128xf32>
    %572 = arith.negf %571 : vector<8x128xf32>
    %573 = math.exp %572 : vector<8x128xf32>
    %cst_94 = arith.constant 1.000000e+00 : f32
    %574 = vector.broadcast %cst_94 : f32 to vector<8x128xf32>
    %575 = arith.addf %574, %573 : vector<8x128xf32>
    %576 = arith.divf %574, %575 : vector<8x128xf32>
    %577 = arith.mulf %571, %576 : vector<8x128xf32>
    %c1_95 = arith.constant 1 : index
    %c0_96 = arith.constant 0 : index
    %c0_97 = arith.constant 0 : index
    %578 = vector.load %arg4[%c1_95, %c0_96, %c0_97] : memref<2x4x128xf32, #tpu.memory_space<vmem>>, vector<1x4x128xf32>
    %579 = vector.shape_cast %578 : vector<1x4x128xf32> to vector<4x128xf32>
    %580 = vector.extract_strided_slice %579 {offsets = [0, 0], sizes = [1, 128], strides = [1, 1]} : vector<4x128xf32> to vector<1x128xf32>
    %581 = vector.broadcast %580 : vector<1x128xf32> to vector<8x128xf32>
    %582 = arith.mulf %570, %581 : vector<8x128xf32>
    %cst_98 = arith.constant dense<0.000000e+00> : vector<8x128xf32>
    %583 = tpu.matmul %14, %570, %cst_98 {dimension_numbers = #tpu.dot_dimension_numbers<[1], [0], [0], [1], [0, 0, 1, 1], [], []>} : vector<8x8xf32>, vector<8x128xf32>, vector<8x128xf32> -> vector<8x128xf32>
    %cst_99 = arith.constant dense<0.000000e+00> : vector<8x128xf32>
    %584 = tpu.matmul %29, %570, %cst_99 {dimension_numbers = #tpu.dot_dimension_numbers<[1], [0], [0], [1], [0, 0, 1, 1], [], []>} : vector<8x8xf32>, vector<8x128xf32>, vector<8x128xf32> -> vector<8x128xf32>
    %585 = vector.shape_cast %2 : vector<1x128xi1> to vector<1x128xi1>
    %586 = vector.broadcast %585 : vector<1x128xi1> to vector<8x128xi1>
    %587 = arith.select %586, %583, %584 : vector<8x128xi1>, vector<8x128xf32>
    %588 = vector.extract_strided_slice %579 {offsets = [1, 0], sizes = [1, 128], strides = [1, 1]} : vector<4x128xf32> to vector<1x128xf32>
    %589 = vector.broadcast %588 : vector<1x128xf32> to vector<8x128xf32>
    %590 = arith.mulf %587, %589 : vector<8x128xf32>
    %591 = arith.addf %582, %590 : vector<8x128xf32>
    %cst_100 = arith.constant dense<0.000000e+00> : vector<8x128xf32>
    %592 = tpu.matmul %19, %570, %cst_100 {dimension_numbers = #tpu.dot_dimension_numbers<[1], [0], [0], [1], [0, 0, 1, 1], [], []>} : vector<8x8xf32>, vector<8x128xf32>, vector<8x128xf32> -> vector<8x128xf32>
    %cst_101 = arith.constant dense<0.000000e+00> : vector<8x128xf32>
    %593 = tpu.matmul %34, %570, %cst_101 {dimension_numbers = #tpu.dot_dimension_numbers<[1], [0], [0], [1], [0, 0, 1, 1], [], []>} : vector<8x8xf32>, vector<8x128xf32>, vector<8x128xf32> -> vector<8x128xf32>
    %594 = vector.shape_cast %2 : vector<1x128xi1> to vector<1x128xi1>
    %595 = vector.broadcast %594 : vector<1x128xi1> to vector<8x128xi1>
    %596 = arith.select %595, %592, %593 : vector<8x128xi1>, vector<8x128xf32>
    %597 = vector.extract_strided_slice %579 {offsets = [2, 0], sizes = [1, 128], strides = [1, 1]} : vector<4x128xf32> to vector<1x128xf32>
    %598 = vector.broadcast %597 : vector<1x128xf32> to vector<8x128xf32>
    %599 = arith.mulf %596, %598 : vector<8x128xf32>
    %600 = arith.addf %591, %599 : vector<8x128xf32>
    %cst_102 = arith.constant dense<0.000000e+00> : vector<8x128xf32>
    %601 = tpu.matmul %24, %570, %cst_102 {dimension_numbers = #tpu.dot_dimension_numbers<[1], [0], [0], [1], [0, 0, 1, 1], [], []>} : vector<8x8xf32>, vector<8x128xf32>, vector<8x128xf32> -> vector<8x128xf32>
    %cst_103 = arith.constant dense<0.000000e+00> : vector<8x128xf32>
    %602 = tpu.matmul %39, %570, %cst_103 {dimension_numbers = #tpu.dot_dimension_numbers<[1], [0], [0], [1], [0, 0, 1, 1], [], []>} : vector<8x8xf32>, vector<8x128xf32>, vector<8x128xf32> -> vector<8x128xf32>
    %603 = vector.shape_cast %2 : vector<1x128xi1> to vector<1x128xi1>
    %604 = vector.broadcast %603 : vector<1x128xi1> to vector<8x128xi1>
    %605 = arith.select %604, %601, %602 : vector<8x128xi1>, vector<8x128xf32>
    %606 = vector.extract_strided_slice %579 {offsets = [3, 0], sizes = [1, 128], strides = [1, 1]} : vector<4x128xf32> to vector<1x128xf32>
    %607 = vector.broadcast %606 : vector<1x128xf32> to vector<8x128xf32>
    %608 = arith.mulf %605, %607 : vector<8x128xf32>
    %609 = arith.addf %600, %608 : vector<8x128xf32>
    %610 = vector.broadcast %558 : vector<1x128xf32> to vector<8x128xf32>
    %611 = arith.addf %609, %610 : vector<8x128xf32>
    %612 = arith.negf %611 : vector<8x128xf32>
    %613 = math.exp %612 : vector<8x128xf32>
    %cst_104 = arith.constant 1.000000e+00 : f32
    %614 = vector.broadcast %cst_104 : f32 to vector<8x128xf32>
    %615 = arith.addf %614, %613 : vector<8x128xf32>
    %616 = arith.divf %614, %615 : vector<8x128xf32>
    %617 = arith.mulf %611, %616 : vector<8x128xf32>
    %c1_105 = arith.constant 1 : index
    %c0_106 = arith.constant 0 : index
    %c0_107 = arith.constant 0 : index
    %618 = vector.load %arg5[%c1_105, %c0_106, %c0_107] : memref<2x128x160xf32, #tpu.memory_space<vmem>>, vector<1x128x160xf32>
    %619 = vector.shape_cast %618 : vector<1x128x160xf32> to vector<128x160xf32>
    %cst_108 = arith.constant dense<0.000000e+00> : vector<8x160xf32>
    %620 = tpu.matmul %617, %619, %cst_108 {dimension_numbers = #tpu.dot_dimension_numbers<[1], [0], [0], [1], [0, 0, 1, 1], [], []>} : vector<8x128xf32>, vector<128x160xf32>, vector<8x160xf32> -> vector<8x160xf32>
    %621 = vector.broadcast %559 : vector<1x160xf32> to vector<8x160xf32>
    %622 = arith.addf %620, %621 : vector<8x160xf32>
    %623 = vector.extract_strided_slice %622 {offsets = [0, 0], sizes = [8, 128], strides = [1, 1]} : vector<8x160xf32> to vector<8x128xf32>
    %cst_109 = arith.constant 0.000000e+00 : f32
    %624 = vector.broadcast %cst_109 : f32 to vector<8x128xf32>
    %625 = arith.maximumf %623, %624 : vector<8x128xf32>
    %626 = vector.broadcast %cst_109 : f32 to vector<8x128xf32>
    %627 = arith.subf %623, %626 : vector<8x128xf32>
    %628 = arith.cmpf one, %627, %627 : vector<8x128xf32>
    %629 = vector.broadcast %cst_109 : f32 to vector<8x128xf32>
    %630 = arith.addf %623, %629 : vector<8x128xf32>
    %631 = math.absf %627 : vector<8x128xf32>
    %cst_110 = arith.constant 0.000000e+00 : f32
    %632 = vector.broadcast %cst_110 : f32 to vector<8x128xf32>
    %633 = arith.subf %632, %631 : vector<8x128xf32>
    %634 = math.exp %633 : vector<8x128xf32>
    %635 = math.log1p %634 : vector<8x128xf32>
    %636 = arith.addf %625, %635 : vector<8x128xf32>
    %637 = arith.select %628, %630, %636 : vector<8x128xi1>, vector<8x128xf32>
    %638 = arith.mulf %637, %617 : vector<8x128xf32>
    %c1_111 = arith.constant 1 : index
    %c0_112 = arith.constant 0 : index
    %c0_113 = arith.constant 0 : index
    %639 = vector.load %arg6[%c1_111, %c0_112, %c0_113] : memref<2x8x128xf32, #tpu.memory_space<vmem>>, vector<1x8x128xf32>
    %640 = vector.shape_cast %639 : vector<1x8x128xf32> to vector<8x128xf32>
    %cst_114 = arith.constant dense<0.000000e+00> : vector<8x128xf32>
    %641 = tpu.matmul %9, %637, %cst_114 {dimension_numbers = #tpu.dot_dimension_numbers<[1], [0], [0], [1], [0, 0, 1, 1], [], []>} : vector<8x8xf32>, vector<8x128xf32>, vector<8x128xf32> -> vector<8x128xf32>
    %642 = vector.shape_cast %2 : vector<1x128xi1> to vector<1x128xi1>
    %643 = vector.broadcast %642 : vector<1x128xi1> to vector<8x128xi1>
    %644 = arith.select %643, %637, %641 : vector<8x128xi1>, vector<8x128xf32>
    %cst_115 = arith.constant dense<0.000000e+00> : vector<8x128xf32>
    %645 = tpu.matmul %9, %638, %cst_115 {dimension_numbers = #tpu.dot_dimension_numbers<[1], [0], [0], [1], [0, 0, 1, 1], [], []>} : vector<8x8xf32>, vector<8x128xf32>, vector<8x128xf32> -> vector<8x128xf32>
    %646 = vector.shape_cast %2 : vector<1x128xi1> to vector<1x128xi1>
    %647 = vector.broadcast %646 : vector<1x128xi1> to vector<8x128xi1>
    %648 = arith.select %647, %638, %645 : vector<8x128xi1>, vector<8x128xf32>
    %649 = vector.extract_strided_slice %644 {offsets = [0, 0], sizes = [1, 128], strides = [1, 1]} : vector<8x128xf32> to vector<1x128xf32>
    %650 = vector.broadcast %649 : vector<1x128xf32> to vector<8x128xf32>
    %651 = arith.mulf %650, %640 : vector<8x128xf32>
    %652 = vector.extract_strided_slice %644 {offsets = [1, 0], sizes = [1, 128], strides = [1, 1]} : vector<8x128xf32> to vector<1x128xf32>
    %653 = vector.broadcast %652 : vector<1x128xf32> to vector<8x128xf32>
    %654 = arith.mulf %653, %640 : vector<8x128xf32>
    %655 = vector.extract_strided_slice %644 {offsets = [2, 0], sizes = [1, 128], strides = [1, 1]} : vector<8x128xf32> to vector<1x128xf32>
    %656 = vector.broadcast %655 : vector<1x128xf32> to vector<8x128xf32>
    %657 = arith.mulf %656, %640 : vector<8x128xf32>
    %658 = vector.extract_strided_slice %644 {offsets = [3, 0], sizes = [1, 128], strides = [1, 1]} : vector<8x128xf32> to vector<1x128xf32>
    %659 = vector.broadcast %658 : vector<1x128xf32> to vector<8x128xf32>
    %660 = arith.mulf %659, %640 : vector<8x128xf32>
    %661 = vector.extract_strided_slice %644 {offsets = [4, 0], sizes = [1, 128], strides = [1, 1]} : vector<8x128xf32> to vector<1x128xf32>
    %662 = vector.broadcast %661 : vector<1x128xf32> to vector<8x128xf32>
    %663 = arith.mulf %662, %640 : vector<8x128xf32>
    %664 = vector.extract_strided_slice %644 {offsets = [5, 0], sizes = [1, 128], strides = [1, 1]} : vector<8x128xf32> to vector<1x128xf32>
    %665 = vector.broadcast %664 : vector<1x128xf32> to vector<8x128xf32>
    %666 = arith.mulf %665, %640 : vector<8x128xf32>
    %667 = vector.extract_strided_slice %644 {offsets = [6, 0], sizes = [1, 128], strides = [1, 1]} : vector<8x128xf32> to vector<1x128xf32>
    %668 = vector.broadcast %667 : vector<1x128xf32> to vector<8x128xf32>
    %669 = arith.mulf %668, %640 : vector<8x128xf32>
    %670 = vector.extract_strided_slice %644 {offsets = [7, 0], sizes = [1, 128], strides = [1, 1]} : vector<8x128xf32> to vector<1x128xf32>
    %671 = vector.broadcast %670 : vector<1x128xf32> to vector<8x128xf32>
    %672 = arith.mulf %671, %640 : vector<8x128xf32>
    %673 = tpu.concatenate %651, %654, %657, %660, %663, %666, %669, %672 in 0 : vector<8x128xf32>, vector<8x128xf32>, vector<8x128xf32>, vector<8x128xf32>, vector<8x128xf32>, vector<8x128xf32>, vector<8x128xf32>, vector<8x128xf32> -> vector<64x128xf32>
    %674 = math.exp %673 : vector<64x128xf32>
    %675 = vector.extract_strided_slice %622 {offsets = [0, 128], sizes = [8, 32], strides = [1, 1]} : vector<8x160xf32> to vector<8x32xf32>
    %676 = vector.extract_strided_slice %675 {offsets = [0, 0], sizes = [1, 32], strides = [1, 1]} : vector<8x32xf32> to vector<1x32xf32>
    %677 = vector.broadcast %676 : vector<1x32xf32> to vector<32x32xf32>
    %678 = arith.mulf %677, %44 : vector<32x32xf32>
    %cst_116 = arith.constant dense<0.000000e+00> : vector<32xf32>
    %679 = vector.multi_reduction <add>, %678, %cst_116 [1] : vector<32x32xf32> to vector<32xf32>
    %680 = vector.shape_cast %679 : vector<32xf32> to vector<32x1xf32>
    %681 = vector.extract_strided_slice %675 {offsets = [1, 0], sizes = [1, 32], strides = [1, 1]} : vector<8x32xf32> to vector<1x32xf32>
    %682 = vector.broadcast %681 : vector<1x32xf32> to vector<32x32xf32>
    %683 = arith.mulf %682, %44 : vector<32x32xf32>
    %cst_117 = arith.constant dense<0.000000e+00> : vector<32xf32>
    %684 = vector.multi_reduction <add>, %683, %cst_117 [1] : vector<32x32xf32> to vector<32xf32>
    %685 = vector.shape_cast %684 : vector<32xf32> to vector<32x1xf32>
    %686 = vector.extract_strided_slice %675 {offsets = [2, 0], sizes = [1, 32], strides = [1, 1]} : vector<8x32xf32> to vector<1x32xf32>
    %687 = vector.broadcast %686 : vector<1x32xf32> to vector<32x32xf32>
    %688 = arith.mulf %687, %44 : vector<32x32xf32>
    %cst_118 = arith.constant dense<0.000000e+00> : vector<32xf32>
    %689 = vector.multi_reduction <add>, %688, %cst_118 [1] : vector<32x32xf32> to vector<32xf32>
    %690 = vector.shape_cast %689 : vector<32xf32> to vector<32x1xf32>
    %691 = vector.extract_strided_slice %675 {offsets = [3, 0], sizes = [1, 32], strides = [1, 1]} : vector<8x32xf32> to vector<1x32xf32>
    %692 = vector.broadcast %691 : vector<1x32xf32> to vector<32x32xf32>
    %693 = arith.mulf %692, %44 : vector<32x32xf32>
    %cst_119 = arith.constant dense<0.000000e+00> : vector<32xf32>
    %694 = vector.multi_reduction <add>, %693, %cst_119 [1] : vector<32x32xf32> to vector<32xf32>
    %695 = vector.shape_cast %694 : vector<32xf32> to vector<32x1xf32>
    %696 = vector.extract_strided_slice %675 {offsets = [4, 0], sizes = [1, 32], strides = [1, 1]} : vector<8x32xf32> to vector<1x32xf32>
    %697 = vector.broadcast %696 : vector<1x32xf32> to vector<32x32xf32>
    %698 = arith.mulf %697, %44 : vector<32x32xf32>
    %cst_120 = arith.constant dense<0.000000e+00> : vector<32xf32>
    %699 = vector.multi_reduction <add>, %698, %cst_120 [1] : vector<32x32xf32> to vector<32xf32>
    %700 = vector.shape_cast %699 : vector<32xf32> to vector<32x1xf32>
    %701 = vector.extract_strided_slice %675 {offsets = [5, 0], sizes = [1, 32], strides = [1, 1]} : vector<8x32xf32> to vector<1x32xf32>
    %702 = vector.broadcast %701 : vector<1x32xf32> to vector<32x32xf32>
    %703 = arith.mulf %702, %44 : vector<32x32xf32>
    %cst_121 = arith.constant dense<0.000000e+00> : vector<32xf32>
    %704 = vector.multi_reduction <add>, %703, %cst_121 [1] : vector<32x32xf32> to vector<32xf32>
    %705 = vector.shape_cast %704 : vector<32xf32> to vector<32x1xf32>
    %706 = vector.extract_strided_slice %675 {offsets = [6, 0], sizes = [1, 32], strides = [1, 1]} : vector<8x32xf32> to vector<1x32xf32>
    %707 = vector.broadcast %706 : vector<1x32xf32> to vector<32x32xf32>
    %708 = arith.mulf %707, %44 : vector<32x32xf32>
    %cst_122 = arith.constant dense<0.000000e+00> : vector<32xf32>
    %709 = vector.multi_reduction <add>, %708, %cst_122 [1] : vector<32x32xf32> to vector<32xf32>
    %710 = vector.shape_cast %709 : vector<32xf32> to vector<32x1xf32>
    %711 = vector.extract_strided_slice %675 {offsets = [7, 0], sizes = [1, 32], strides = [1, 1]} : vector<8x32xf32> to vector<1x32xf32>
    %712 = vector.broadcast %711 : vector<1x32xf32> to vector<32x32xf32>
    %713 = arith.mulf %712, %44 : vector<32x32xf32>
    %cst_123 = arith.constant dense<0.000000e+00> : vector<32xf32>
    %714 = vector.multi_reduction <add>, %713, %cst_123 [1] : vector<32x32xf32> to vector<32xf32>
    %715 = vector.shape_cast %714 : vector<32xf32> to vector<32x1xf32>
    %cst_124 = arith.constant 0.000000e+00 : f32
    %716 = vector.broadcast %cst_124 : f32 to vector<8x128xf32>
    %cst_125 = arith.constant 0.000000e+00 : f32
    %717 = vector.broadcast %cst_125 : f32 to vector<8x128xf32>
    %718 = vector.extract_strided_slice %680 {offsets = [0, 0], sizes = [8, 1], strides = [1, 1]} : vector<32x1xf32> to vector<8x1xf32>
    %719 = vector.extract_strided_slice %715 {offsets = [8, 0], sizes = [8, 1], strides = [1, 1]} : vector<32x1xf32> to vector<8x1xf32>
    %720 = vector.shape_cast %2 : vector<1x128xi1> to vector<1x128xi1>
    %721 = vector.broadcast %720 : vector<1x128xi1> to vector<8x128xi1>
    %722 = vector.shape_cast %718 : vector<8x1xf32> to vector<8x1xf32>
    %723 = vector.broadcast %722 : vector<8x1xf32> to vector<8x128xf32>
    %724 = vector.shape_cast %719 : vector<8x1xf32> to vector<8x1xf32>
    %725 = vector.broadcast %724 : vector<8x1xf32> to vector<8x128xf32>
    %726 = arith.select %721, %723, %725 : vector<8x128xi1>, vector<8x128xf32>
    %727 = vector.extract_strided_slice %680 {offsets = [16, 0], sizes = [8, 1], strides = [1, 1]} : vector<32x1xf32> to vector<8x1xf32>
    %728 = vector.extract_strided_slice %715 {offsets = [24, 0], sizes = [8, 1], strides = [1, 1]} : vector<32x1xf32> to vector<8x1xf32>
    %729 = vector.shape_cast %2 : vector<1x128xi1> to vector<1x128xi1>
    %730 = vector.broadcast %729 : vector<1x128xi1> to vector<8x128xi1>
    %731 = vector.shape_cast %727 : vector<8x1xf32> to vector<8x1xf32>
    %732 = vector.broadcast %731 : vector<8x1xf32> to vector<8x128xf32>
    %733 = vector.shape_cast %728 : vector<8x1xf32> to vector<8x1xf32>
    %734 = vector.broadcast %733 : vector<8x1xf32> to vector<8x128xf32>
    %735 = arith.select %730, %732, %734 : vector<8x128xi1>, vector<8x128xf32>
    %736 = vector.extract_strided_slice %674 {offsets = [0, 0], sizes = [8, 128], strides = [1, 1]} : vector<64x128xf32> to vector<8x128xf32>
    %737 = arith.mulf %736, %716 : vector<8x128xf32>
    %738 = vector.extract_strided_slice %648 {offsets = [0, 0], sizes = [1, 128], strides = [1, 1]} : vector<8x128xf32> to vector<1x128xf32>
    %739 = vector.broadcast %738 : vector<1x128xf32> to vector<8x128xf32>
    %740 = arith.mulf %726, %739 : vector<8x128xf32>
    %741 = arith.addf %737, %740 : vector<8x128xf32>
    %742 = arith.mulf %741, %735 : vector<8x128xf32>
    %cst_126 = arith.constant dense<0.000000e+00> : vector<128xf32>
    %743 = vector.multi_reduction <add>, %742, %cst_126 [0] : vector<8x128xf32> to vector<128xf32>
    %744 = vector.shape_cast %743 : vector<128xf32> to vector<1x128xf32>
    %c0_i32_127 = arith.constant 0 : i32
    %745 = vector.broadcast %c0_i32_127 : i32 to vector<8x128xi32>
    %746 = arith.cmpi eq, %45, %745 : vector<8x128xi32>
    %747 = vector.shape_cast %744 : vector<1x128xf32> to vector<1x128xf32>
    %748 = vector.broadcast %747 : vector<1x128xf32> to vector<8x128xf32>
    %749 = arith.select %746, %748, %717 : vector<8x128xi1>, vector<8x128xf32>
    %750 = vector.extract_strided_slice %685 {offsets = [0, 0], sizes = [8, 1], strides = [1, 1]} : vector<32x1xf32> to vector<8x1xf32>
    %751 = vector.extract_strided_slice %710 {offsets = [8, 0], sizes = [8, 1], strides = [1, 1]} : vector<32x1xf32> to vector<8x1xf32>
    %752 = vector.shape_cast %2 : vector<1x128xi1> to vector<1x128xi1>
    %753 = vector.broadcast %752 : vector<1x128xi1> to vector<8x128xi1>
    %754 = vector.shape_cast %750 : vector<8x1xf32> to vector<8x1xf32>
    %755 = vector.broadcast %754 : vector<8x1xf32> to vector<8x128xf32>
    %756 = vector.shape_cast %751 : vector<8x1xf32> to vector<8x1xf32>
    %757 = vector.broadcast %756 : vector<8x1xf32> to vector<8x128xf32>
    %758 = arith.select %753, %755, %757 : vector<8x128xi1>, vector<8x128xf32>
    %759 = vector.extract_strided_slice %685 {offsets = [16, 0], sizes = [8, 1], strides = [1, 1]} : vector<32x1xf32> to vector<8x1xf32>
    %760 = vector.extract_strided_slice %710 {offsets = [24, 0], sizes = [8, 1], strides = [1, 1]} : vector<32x1xf32> to vector<8x1xf32>
    %761 = vector.shape_cast %2 : vector<1x128xi1> to vector<1x128xi1>
    %762 = vector.broadcast %761 : vector<1x128xi1> to vector<8x128xi1>
    %763 = vector.shape_cast %759 : vector<8x1xf32> to vector<8x1xf32>
    %764 = vector.broadcast %763 : vector<8x1xf32> to vector<8x128xf32>
    %765 = vector.shape_cast %760 : vector<8x1xf32> to vector<8x1xf32>
    %766 = vector.broadcast %765 : vector<8x1xf32> to vector<8x128xf32>
    %767 = arith.select %762, %764, %766 : vector<8x128xi1>, vector<8x128xf32>
    %768 = vector.extract_strided_slice %674 {offsets = [8, 0], sizes = [8, 128], strides = [1, 1]} : vector<64x128xf32> to vector<8x128xf32>
    %769 = arith.mulf %768, %741 : vector<8x128xf32>
    %770 = vector.extract_strided_slice %648 {offsets = [1, 0], sizes = [1, 128], strides = [1, 1]} : vector<8x128xf32> to vector<1x128xf32>
    %771 = vector.broadcast %770 : vector<1x128xf32> to vector<8x128xf32>
    %772 = arith.mulf %758, %771 : vector<8x128xf32>
    %773 = arith.addf %769, %772 : vector<8x128xf32>
    %774 = arith.mulf %773, %767 : vector<8x128xf32>
    %cst_128 = arith.constant dense<0.000000e+00> : vector<128xf32>
    %775 = vector.multi_reduction <add>, %774, %cst_128 [0] : vector<8x128xf32> to vector<128xf32>
    %776 = vector.shape_cast %775 : vector<128xf32> to vector<1x128xf32>
    %c1_i32_129 = arith.constant 1 : i32
    %777 = vector.broadcast %c1_i32_129 : i32 to vector<8x128xi32>
    %778 = arith.cmpi eq, %45, %777 : vector<8x128xi32>
    %779 = vector.shape_cast %776 : vector<1x128xf32> to vector<1x128xf32>
    %780 = vector.broadcast %779 : vector<1x128xf32> to vector<8x128xf32>
    %781 = arith.select %778, %780, %749 : vector<8x128xi1>, vector<8x128xf32>
    %782 = vector.extract_strided_slice %690 {offsets = [0, 0], sizes = [8, 1], strides = [1, 1]} : vector<32x1xf32> to vector<8x1xf32>
    %783 = vector.extract_strided_slice %705 {offsets = [8, 0], sizes = [8, 1], strides = [1, 1]} : vector<32x1xf32> to vector<8x1xf32>
    %784 = vector.shape_cast %2 : vector<1x128xi1> to vector<1x128xi1>
    %785 = vector.broadcast %784 : vector<1x128xi1> to vector<8x128xi1>
    %786 = vector.shape_cast %782 : vector<8x1xf32> to vector<8x1xf32>
    %787 = vector.broadcast %786 : vector<8x1xf32> to vector<8x128xf32>
    %788 = vector.shape_cast %783 : vector<8x1xf32> to vector<8x1xf32>
    %789 = vector.broadcast %788 : vector<8x1xf32> to vector<8x128xf32>
    %790 = arith.select %785, %787, %789 : vector<8x128xi1>, vector<8x128xf32>
    %791 = vector.extract_strided_slice %690 {offsets = [16, 0], sizes = [8, 1], strides = [1, 1]} : vector<32x1xf32> to vector<8x1xf32>
    %792 = vector.extract_strided_slice %705 {offsets = [24, 0], sizes = [8, 1], strides = [1, 1]} : vector<32x1xf32> to vector<8x1xf32>
    %793 = vector.shape_cast %2 : vector<1x128xi1> to vector<1x128xi1>
    %794 = vector.broadcast %793 : vector<1x128xi1> to vector<8x128xi1>
    %795 = vector.shape_cast %791 : vector<8x1xf32> to vector<8x1xf32>
    %796 = vector.broadcast %795 : vector<8x1xf32> to vector<8x128xf32>
    %797 = vector.shape_cast %792 : vector<8x1xf32> to vector<8x1xf32>
    %798 = vector.broadcast %797 : vector<8x1xf32> to vector<8x128xf32>
    %799 = arith.select %794, %796, %798 : vector<8x128xi1>, vector<8x128xf32>
    %800 = vector.extract_strided_slice %674 {offsets = [16, 0], sizes = [8, 128], strides = [1, 1]} : vector<64x128xf32> to vector<8x128xf32>
    %801 = arith.mulf %800, %773 : vector<8x128xf32>
    %802 = vector.extract_strided_slice %648 {offsets = [2, 0], sizes = [1, 128], strides = [1, 1]} : vector<8x128xf32> to vector<1x128xf32>
    %803 = vector.broadcast %802 : vector<1x128xf32> to vector<8x128xf32>
    %804 = arith.mulf %790, %803 : vector<8x128xf32>
    %805 = arith.addf %801, %804 : vector<8x128xf32>
    %806 = arith.mulf %805, %799 : vector<8x128xf32>
    %cst_130 = arith.constant dense<0.000000e+00> : vector<128xf32>
    %807 = vector.multi_reduction <add>, %806, %cst_130 [0] : vector<8x128xf32> to vector<128xf32>
    %808 = vector.shape_cast %807 : vector<128xf32> to vector<1x128xf32>
    %c2_i32_131 = arith.constant 2 : i32
    %809 = vector.broadcast %c2_i32_131 : i32 to vector<8x128xi32>
    %810 = arith.cmpi eq, %45, %809 : vector<8x128xi32>
    %811 = vector.shape_cast %808 : vector<1x128xf32> to vector<1x128xf32>
    %812 = vector.broadcast %811 : vector<1x128xf32> to vector<8x128xf32>
    %813 = arith.select %810, %812, %781 : vector<8x128xi1>, vector<8x128xf32>
    %814 = vector.extract_strided_slice %695 {offsets = [0, 0], sizes = [8, 1], strides = [1, 1]} : vector<32x1xf32> to vector<8x1xf32>
    %815 = vector.extract_strided_slice %700 {offsets = [8, 0], sizes = [8, 1], strides = [1, 1]} : vector<32x1xf32> to vector<8x1xf32>
    %816 = vector.shape_cast %2 : vector<1x128xi1> to vector<1x128xi1>
    %817 = vector.broadcast %816 : vector<1x128xi1> to vector<8x128xi1>
    %818 = vector.shape_cast %814 : vector<8x1xf32> to vector<8x1xf32>
    %819 = vector.broadcast %818 : vector<8x1xf32> to vector<8x128xf32>
    %820 = vector.shape_cast %815 : vector<8x1xf32> to vector<8x1xf32>
    %821 = vector.broadcast %820 : vector<8x1xf32> to vector<8x128xf32>
    %822 = arith.select %817, %819, %821 : vector<8x128xi1>, vector<8x128xf32>
    %823 = vector.extract_strided_slice %695 {offsets = [16, 0], sizes = [8, 1], strides = [1, 1]} : vector<32x1xf32> to vector<8x1xf32>
    %824 = vector.extract_strided_slice %700 {offsets = [24, 0], sizes = [8, 1], strides = [1, 1]} : vector<32x1xf32> to vector<8x1xf32>
    %825 = vector.shape_cast %2 : vector<1x128xi1> to vector<1x128xi1>
    %826 = vector.broadcast %825 : vector<1x128xi1> to vector<8x128xi1>
    %827 = vector.shape_cast %823 : vector<8x1xf32> to vector<8x1xf32>
    %828 = vector.broadcast %827 : vector<8x1xf32> to vector<8x128xf32>
    %829 = vector.shape_cast %824 : vector<8x1xf32> to vector<8x1xf32>
    %830 = vector.broadcast %829 : vector<8x1xf32> to vector<8x128xf32>
    %831 = arith.select %826, %828, %830 : vector<8x128xi1>, vector<8x128xf32>
    %832 = vector.extract_strided_slice %674 {offsets = [24, 0], sizes = [8, 128], strides = [1, 1]} : vector<64x128xf32> to vector<8x128xf32>
    %833 = arith.mulf %832, %805 : vector<8x128xf32>
    %834 = vector.extract_strided_slice %648 {offsets = [3, 0], sizes = [1, 128], strides = [1, 1]} : vector<8x128xf32> to vector<1x128xf32>
    %835 = vector.broadcast %834 : vector<1x128xf32> to vector<8x128xf32>
    %836 = arith.mulf %822, %835 : vector<8x128xf32>
    %837 = arith.addf %833, %836 : vector<8x128xf32>
    %838 = arith.mulf %837, %831 : vector<8x128xf32>
    %cst_132 = arith.constant dense<0.000000e+00> : vector<128xf32>
    %839 = vector.multi_reduction <add>, %838, %cst_132 [0] : vector<8x128xf32> to vector<128xf32>
    %840 = vector.shape_cast %839 : vector<128xf32> to vector<1x128xf32>
    %c3_i32_133 = arith.constant 3 : i32
    %841 = vector.broadcast %c3_i32_133 : i32 to vector<8x128xi32>
    %842 = arith.cmpi eq, %45, %841 : vector<8x128xi32>
    %843 = vector.shape_cast %840 : vector<1x128xf32> to vector<1x128xf32>
    %844 = vector.broadcast %843 : vector<1x128xf32> to vector<8x128xf32>
    %845 = arith.select %842, %844, %813 : vector<8x128xi1>, vector<8x128xf32>
    %846 = vector.extract_strided_slice %700 {offsets = [0, 0], sizes = [8, 1], strides = [1, 1]} : vector<32x1xf32> to vector<8x1xf32>
    %847 = vector.extract_strided_slice %695 {offsets = [8, 0], sizes = [8, 1], strides = [1, 1]} : vector<32x1xf32> to vector<8x1xf32>
    %848 = vector.shape_cast %2 : vector<1x128xi1> to vector<1x128xi1>
    %849 = vector.broadcast %848 : vector<1x128xi1> to vector<8x128xi1>
    %850 = vector.shape_cast %846 : vector<8x1xf32> to vector<8x1xf32>
    %851 = vector.broadcast %850 : vector<8x1xf32> to vector<8x128xf32>
    %852 = vector.shape_cast %847 : vector<8x1xf32> to vector<8x1xf32>
    %853 = vector.broadcast %852 : vector<8x1xf32> to vector<8x128xf32>
    %854 = arith.select %849, %851, %853 : vector<8x128xi1>, vector<8x128xf32>
    %855 = vector.extract_strided_slice %700 {offsets = [16, 0], sizes = [8, 1], strides = [1, 1]} : vector<32x1xf32> to vector<8x1xf32>
    %856 = vector.extract_strided_slice %695 {offsets = [24, 0], sizes = [8, 1], strides = [1, 1]} : vector<32x1xf32> to vector<8x1xf32>
    %857 = vector.shape_cast %2 : vector<1x128xi1> to vector<1x128xi1>
    %858 = vector.broadcast %857 : vector<1x128xi1> to vector<8x128xi1>
    %859 = vector.shape_cast %855 : vector<8x1xf32> to vector<8x1xf32>
    %860 = vector.broadcast %859 : vector<8x1xf32> to vector<8x128xf32>
    %861 = vector.shape_cast %856 : vector<8x1xf32> to vector<8x1xf32>
    %862 = vector.broadcast %861 : vector<8x1xf32> to vector<8x128xf32>
    %863 = arith.select %858, %860, %862 : vector<8x128xi1>, vector<8x128xf32>
    %864 = vector.extract_strided_slice %674 {offsets = [32, 0], sizes = [8, 128], strides = [1, 1]} : vector<64x128xf32> to vector<8x128xf32>
    %865 = arith.mulf %864, %837 : vector<8x128xf32>
    %866 = vector.extract_strided_slice %648 {offsets = [4, 0], sizes = [1, 128], strides = [1, 1]} : vector<8x128xf32> to vector<1x128xf32>
    %867 = vector.broadcast %866 : vector<1x128xf32> to vector<8x128xf32>
    %868 = arith.mulf %854, %867 : vector<8x128xf32>
    %869 = arith.addf %865, %868 : vector<8x128xf32>
    %870 = arith.mulf %869, %863 : vector<8x128xf32>
    %cst_134 = arith.constant dense<0.000000e+00> : vector<128xf32>
    %871 = vector.multi_reduction <add>, %870, %cst_134 [0] : vector<8x128xf32> to vector<128xf32>
    %872 = vector.shape_cast %871 : vector<128xf32> to vector<1x128xf32>
    %c4_i32_135 = arith.constant 4 : i32
    %873 = vector.broadcast %c4_i32_135 : i32 to vector<8x128xi32>
    %874 = arith.cmpi eq, %45, %873 : vector<8x128xi32>
    %875 = vector.shape_cast %872 : vector<1x128xf32> to vector<1x128xf32>
    %876 = vector.broadcast %875 : vector<1x128xf32> to vector<8x128xf32>
    %877 = arith.select %874, %876, %845 : vector<8x128xi1>, vector<8x128xf32>
    %878 = vector.extract_strided_slice %705 {offsets = [0, 0], sizes = [8, 1], strides = [1, 1]} : vector<32x1xf32> to vector<8x1xf32>
    %879 = vector.extract_strided_slice %690 {offsets = [8, 0], sizes = [8, 1], strides = [1, 1]} : vector<32x1xf32> to vector<8x1xf32>
    %880 = vector.shape_cast %2 : vector<1x128xi1> to vector<1x128xi1>
    %881 = vector.broadcast %880 : vector<1x128xi1> to vector<8x128xi1>
    %882 = vector.shape_cast %878 : vector<8x1xf32> to vector<8x1xf32>
    %883 = vector.broadcast %882 : vector<8x1xf32> to vector<8x128xf32>
    %884 = vector.shape_cast %879 : vector<8x1xf32> to vector<8x1xf32>
    %885 = vector.broadcast %884 : vector<8x1xf32> to vector<8x128xf32>
    %886 = arith.select %881, %883, %885 : vector<8x128xi1>, vector<8x128xf32>
    %887 = vector.extract_strided_slice %705 {offsets = [16, 0], sizes = [8, 1], strides = [1, 1]} : vector<32x1xf32> to vector<8x1xf32>
    %888 = vector.extract_strided_slice %690 {offsets = [24, 0], sizes = [8, 1], strides = [1, 1]} : vector<32x1xf32> to vector<8x1xf32>
    %889 = vector.shape_cast %2 : vector<1x128xi1> to vector<1x128xi1>
    %890 = vector.broadcast %889 : vector<1x128xi1> to vector<8x128xi1>
    %891 = vector.shape_cast %887 : vector<8x1xf32> to vector<8x1xf32>
    %892 = vector.broadcast %891 : vector<8x1xf32> to vector<8x128xf32>
    %893 = vector.shape_cast %888 : vector<8x1xf32> to vector<8x1xf32>
    %894 = vector.broadcast %893 : vector<8x1xf32> to vector<8x128xf32>
    %895 = arith.select %890, %892, %894 : vector<8x128xi1>, vector<8x128xf32>
    %896 = vector.extract_strided_slice %674 {offsets = [40, 0], sizes = [8, 128], strides = [1, 1]} : vector<64x128xf32> to vector<8x128xf32>
    %897 = arith.mulf %896, %869 : vector<8x128xf32>
    %898 = vector.extract_strided_slice %648 {offsets = [5, 0], sizes = [1, 128], strides = [1, 1]} : vector<8x128xf32> to vector<1x128xf32>
    %899 = vector.broadcast %898 : vector<1x128xf32> to vector<8x128xf32>
    %900 = arith.mulf %886, %899 : vector<8x128xf32>
    %901 = arith.addf %897, %900 : vector<8x128xf32>
    %902 = arith.mulf %901, %895 : vector<8x128xf32>
    %cst_136 = arith.constant dense<0.000000e+00> : vector<128xf32>
    %903 = vector.multi_reduction <add>, %902, %cst_136 [0] : vector<8x128xf32> to vector<128xf32>
    %904 = vector.shape_cast %903 : vector<128xf32> to vector<1x128xf32>
    %c5_i32_137 = arith.constant 5 : i32
    %905 = vector.broadcast %c5_i32_137 : i32 to vector<8x128xi32>
    %906 = arith.cmpi eq, %45, %905 : vector<8x128xi32>
    %907 = vector.shape_cast %904 : vector<1x128xf32> to vector<1x128xf32>
    %908 = vector.broadcast %907 : vector<1x128xf32> to vector<8x128xf32>
    %909 = arith.select %906, %908, %877 : vector<8x128xi1>, vector<8x128xf32>
    %910 = vector.extract_strided_slice %710 {offsets = [0, 0], sizes = [8, 1], strides = [1, 1]} : vector<32x1xf32> to vector<8x1xf32>
    %911 = vector.extract_strided_slice %685 {offsets = [8, 0], sizes = [8, 1], strides = [1, 1]} : vector<32x1xf32> to vector<8x1xf32>
    %912 = vector.shape_cast %2 : vector<1x128xi1> to vector<1x128xi1>
    %913 = vector.broadcast %912 : vector<1x128xi1> to vector<8x128xi1>
    %914 = vector.shape_cast %910 : vector<8x1xf32> to vector<8x1xf32>
    %915 = vector.broadcast %914 : vector<8x1xf32> to vector<8x128xf32>
    %916 = vector.shape_cast %911 : vector<8x1xf32> to vector<8x1xf32>
    %917 = vector.broadcast %916 : vector<8x1xf32> to vector<8x128xf32>
    %918 = arith.select %913, %915, %917 : vector<8x128xi1>, vector<8x128xf32>
    %919 = vector.extract_strided_slice %710 {offsets = [16, 0], sizes = [8, 1], strides = [1, 1]} : vector<32x1xf32> to vector<8x1xf32>
    %920 = vector.extract_strided_slice %685 {offsets = [24, 0], sizes = [8, 1], strides = [1, 1]} : vector<32x1xf32> to vector<8x1xf32>
    %921 = vector.shape_cast %2 : vector<1x128xi1> to vector<1x128xi1>
    %922 = vector.broadcast %921 : vector<1x128xi1> to vector<8x128xi1>
    %923 = vector.shape_cast %919 : vector<8x1xf32> to vector<8x1xf32>
    %924 = vector.broadcast %923 : vector<8x1xf32> to vector<8x128xf32>
    %925 = vector.shape_cast %920 : vector<8x1xf32> to vector<8x1xf32>
    %926 = vector.broadcast %925 : vector<8x1xf32> to vector<8x128xf32>
    %927 = arith.select %922, %924, %926 : vector<8x128xi1>, vector<8x128xf32>
    %928 = vector.extract_strided_slice %674 {offsets = [48, 0], sizes = [8, 128], strides = [1, 1]} : vector<64x128xf32> to vector<8x128xf32>
    %929 = arith.mulf %928, %901 : vector<8x128xf32>
    %930 = vector.extract_strided_slice %648 {offsets = [6, 0], sizes = [1, 128], strides = [1, 1]} : vector<8x128xf32> to vector<1x128xf32>
    %931 = vector.broadcast %930 : vector<1x128xf32> to vector<8x128xf32>
    %932 = arith.mulf %918, %931 : vector<8x128xf32>
    %933 = arith.addf %929, %932 : vector<8x128xf32>
    %934 = arith.mulf %933, %927 : vector<8x128xf32>
    %cst_138 = arith.constant dense<0.000000e+00> : vector<128xf32>
    %935 = vector.multi_reduction <add>, %934, %cst_138 [0] : vector<8x128xf32> to vector<128xf32>
    %936 = vector.shape_cast %935 : vector<128xf32> to vector<1x128xf32>
    %c6_i32_139 = arith.constant 6 : i32
    %937 = vector.broadcast %c6_i32_139 : i32 to vector<8x128xi32>
    %938 = arith.cmpi eq, %45, %937 : vector<8x128xi32>
    %939 = vector.shape_cast %936 : vector<1x128xf32> to vector<1x128xf32>
    %940 = vector.broadcast %939 : vector<1x128xf32> to vector<8x128xf32>
    %941 = arith.select %938, %940, %909 : vector<8x128xi1>, vector<8x128xf32>
    %942 = vector.extract_strided_slice %715 {offsets = [0, 0], sizes = [8, 1], strides = [1, 1]} : vector<32x1xf32> to vector<8x1xf32>
    %943 = vector.extract_strided_slice %680 {offsets = [8, 0], sizes = [8, 1], strides = [1, 1]} : vector<32x1xf32> to vector<8x1xf32>
    %944 = vector.shape_cast %2 : vector<1x128xi1> to vector<1x128xi1>
    %945 = vector.broadcast %944 : vector<1x128xi1> to vector<8x128xi1>
    %946 = vector.shape_cast %942 : vector<8x1xf32> to vector<8x1xf32>
    %947 = vector.broadcast %946 : vector<8x1xf32> to vector<8x128xf32>
    %948 = vector.shape_cast %943 : vector<8x1xf32> to vector<8x1xf32>
    %949 = vector.broadcast %948 : vector<8x1xf32> to vector<8x128xf32>
    %950 = arith.select %945, %947, %949 : vector<8x128xi1>, vector<8x128xf32>
    %951 = vector.extract_strided_slice %715 {offsets = [16, 0], sizes = [8, 1], strides = [1, 1]} : vector<32x1xf32> to vector<8x1xf32>
    %952 = vector.extract_strided_slice %680 {offsets = [24, 0], sizes = [8, 1], strides = [1, 1]} : vector<32x1xf32> to vector<8x1xf32>
    %953 = vector.shape_cast %2 : vector<1x128xi1> to vector<1x128xi1>
    %954 = vector.broadcast %953 : vector<1x128xi1> to vector<8x128xi1>
    %955 = vector.shape_cast %951 : vector<8x1xf32> to vector<8x1xf32>
    %956 = vector.broadcast %955 : vector<8x1xf32> to vector<8x128xf32>
    %957 = vector.shape_cast %952 : vector<8x1xf32> to vector<8x1xf32>
    %958 = vector.broadcast %957 : vector<8x1xf32> to vector<8x128xf32>
    %959 = arith.select %954, %956, %958 : vector<8x128xi1>, vector<8x128xf32>
    %960 = vector.extract_strided_slice %674 {offsets = [56, 0], sizes = [8, 128], strides = [1, 1]} : vector<64x128xf32> to vector<8x128xf32>
    %961 = arith.mulf %960, %933 : vector<8x128xf32>
    %962 = vector.extract_strided_slice %648 {offsets = [7, 0], sizes = [1, 128], strides = [1, 1]} : vector<8x128xf32> to vector<1x128xf32>
    %963 = vector.broadcast %962 : vector<1x128xf32> to vector<8x128xf32>
    %964 = arith.mulf %950, %963 : vector<8x128xf32>
    %965 = arith.addf %961, %964 : vector<8x128xf32>
    %966 = arith.mulf %965, %959 : vector<8x128xf32>
    %cst_140 = arith.constant dense<0.000000e+00> : vector<128xf32>
    %967 = vector.multi_reduction <add>, %966, %cst_140 [0] : vector<8x128xf32> to vector<128xf32>
    %968 = vector.shape_cast %967 : vector<128xf32> to vector<1x128xf32>
    %c7_i32_141 = arith.constant 7 : i32
    %969 = vector.broadcast %c7_i32_141 : i32 to vector<8x128xi32>
    %970 = arith.cmpi eq, %45, %969 : vector<8x128xi32>
    %971 = vector.shape_cast %968 : vector<1x128xf32> to vector<1x128xf32>
    %972 = vector.broadcast %971 : vector<1x128xf32> to vector<8x128xf32>
    %973 = arith.select %970, %972, %941 : vector<8x128xi1>, vector<8x128xf32>
    %cst_142 = arith.constant dense<0.000000e+00> : vector<8x128xf32>
    %974 = tpu.matmul %9, %973, %cst_142 {dimension_numbers = #tpu.dot_dimension_numbers<[1], [0], [0], [1], [0, 0, 1, 1], [], []>} : vector<8x8xf32>, vector<8x128xf32>, vector<8x128xf32> -> vector<8x128xf32>
    %975 = vector.shape_cast %2 : vector<1x128xi1> to vector<1x128xi1>
    %976 = vector.broadcast %975 : vector<1x128xi1> to vector<8x128xi1>
    %977 = arith.select %976, %973, %974 : vector<8x128xi1>, vector<8x128xf32>
    %978 = vector.broadcast %560 : vector<1x128xf32> to vector<8x128xf32>
    %979 = arith.mulf %617, %978 : vector<8x128xf32>
    %980 = arith.addf %977, %979 : vector<8x128xf32>
    %981 = arith.mulf %980, %577 : vector<8x128xf32>
    %c1_143 = arith.constant 1 : index
    %c0_144 = arith.constant 0 : index
    %c0_145 = arith.constant 0 : index
    %982 = vector.load %arg7[%c1_143, %c0_144, %c0_145] : memref<2x128x32xf32, #tpu.memory_space<vmem>>, vector<1x128x32xf32>
    %983 = vector.shape_cast %982 : vector<1x128x32xf32> to vector<128x32xf32>
    %cst_146 = arith.constant dense<0.000000e+00> : vector<8x32xf32>
    %984 = tpu.matmul %981, %983, %cst_146 {dimension_numbers = #tpu.dot_dimension_numbers<[1], [0], [0], [1], [0, 0, 1, 1], [], []>} : vector<8x128xf32>, vector<128x32xf32>, vector<8x32xf32> -> vector<8x32xf32>
    %985 = arith.addf %555, %984 : vector<8x32xf32>
    %cst_147 = arith.constant dense<0.000000e+00> : vector<8xf32>
    %986 = vector.multi_reduction <add>, %985, %cst_147 [1] : vector<8x32xf32> to vector<8xf32>
    %987 = vector.shape_cast %986 : vector<8xf32> to vector<8x1xf32>
    %cst_148 = arith.constant 3.200000e+01 : f32
    %988 = vector.broadcast %cst_148 : f32 to vector<8x1xf32>
    %989 = arith.divf %987, %988 : vector<8x1xf32>
    %990 = vector.broadcast %989 : vector<8x1xf32> to vector<8x32xf32>
    %991 = arith.subf %985, %990 : vector<8x32xf32>
    %992 = arith.mulf %991, %991 : vector<8x32xf32>
    %cst_149 = arith.constant dense<0.000000e+00> : vector<8xf32>
    %993 = vector.multi_reduction <add>, %992, %cst_149 [1] : vector<8x32xf32> to vector<8xf32>
    %994 = vector.shape_cast %993 : vector<8xf32> to vector<8x1xf32>
    %cst_150 = arith.constant 3.200000e+01 : f32
    %995 = vector.broadcast %cst_150 : f32 to vector<8x1xf32>
    %996 = arith.divf %994, %995 : vector<8x1xf32>
    %cst_151 = arith.constant 9.99999974E-6 : f32
    %997 = vector.broadcast %cst_151 : f32 to vector<8x1xf32>
    %998 = arith.addf %996, %997 : vector<8x1xf32>
    %999 = math.rsqrt %998 : vector<8x1xf32>
    %1000 = vector.broadcast %999 : vector<8x1xf32> to vector<8x32xf32>
    %1001 = arith.mulf %991, %1000 : vector<8x32xf32>
    %1002 = vector.broadcast %561 : vector<1x32xf32> to vector<8x32xf32>
    %1003 = arith.mulf %1001, %1002 : vector<8x32xf32>
    %1004 = vector.broadcast %562 : vector<1x32xf32> to vector<8x32xf32>
    %1005 = arith.addf %1003, %1004 : vector<8x32xf32>
    %c1_152 = arith.constant 1 : index
    %c0_153 = arith.constant 0 : index
    %c0_154 = arith.constant 0 : index
    %1006 = vector.load %arg8[%c1_152, %c0_153, %c0_154] : memref<2x32x64xf32, #tpu.memory_space<vmem>>, vector<1x32x64xf32>
    %1007 = vector.shape_cast %1006 : vector<1x32x64xf32> to vector<32x64xf32>
    %cst_155 = arith.constant dense<0.000000e+00> : vector<8x64xf32>
    %1008 = tpu.matmul %1005, %1007, %cst_155 {dimension_numbers = #tpu.dot_dimension_numbers<[1], [0], [0], [1], [0, 0, 1, 1], [], []>} : vector<8x32xf32>, vector<32x64xf32>, vector<8x64xf32> -> vector<8x64xf32>
    %1009 = vector.broadcast %565 : vector<1x64xf32> to vector<8x64xf32>
    %1010 = arith.addf %1008, %1009 : vector<8x64xf32>
    %cst_156 = arith.constant 0.000000e+00 : f32
    %1011 = vector.broadcast %cst_156 : f32 to vector<8x64xf32>
    %1012 = arith.maximumf %1010, %1011 : vector<8x64xf32>
    %c1_157 = arith.constant 1 : index
    %c0_158 = arith.constant 0 : index
    %c0_159 = arith.constant 0 : index
    %1013 = vector.load %arg9[%c1_157, %c0_158, %c0_159] : memref<2x64x32xf32, #tpu.memory_space<vmem>>, vector<1x64x32xf32>
    %1014 = vector.shape_cast %1013 : vector<1x64x32xf32> to vector<64x32xf32>
    %cst_160 = arith.constant dense<0.000000e+00> : vector<8x32xf32>
    %1015 = tpu.matmul %1012, %1014, %cst_160 {dimension_numbers = #tpu.dot_dimension_numbers<[1], [0], [0], [1], [0, 0, 1, 1], [], []>} : vector<8x64xf32>, vector<64x32xf32>, vector<8x32xf32> -> vector<8x32xf32>
    %1016 = vector.broadcast %566 : vector<1x32xf32> to vector<8x32xf32>
    %1017 = arith.addf %1015, %1016 : vector<8x32xf32>
    %1018 = arith.addf %1005, %1017 : vector<8x32xf32>
    %cst_161 = arith.constant dense<0.000000e+00> : vector<8xf32>
    %1019 = vector.multi_reduction <add>, %1018, %cst_161 [1] : vector<8x32xf32> to vector<8xf32>
    %1020 = vector.shape_cast %1019 : vector<8xf32> to vector<8x1xf32>
    %cst_162 = arith.constant 3.200000e+01 : f32
    %1021 = vector.broadcast %cst_162 : f32 to vector<8x1xf32>
    %1022 = arith.divf %1020, %1021 : vector<8x1xf32>
    %1023 = vector.broadcast %1022 : vector<8x1xf32> to vector<8x32xf32>
    %1024 = arith.subf %1018, %1023 : vector<8x32xf32>
    %1025 = arith.mulf %1024, %1024 : vector<8x32xf32>
    %cst_163 = arith.constant dense<0.000000e+00> : vector<8xf32>
    %1026 = vector.multi_reduction <add>, %1025, %cst_163 [1] : vector<8x32xf32> to vector<8xf32>
    %1027 = vector.shape_cast %1026 : vector<8xf32> to vector<8x1xf32>
    %cst_164 = arith.constant 3.200000e+01 : f32
    %1028 = vector.broadcast %cst_164 : f32 to vector<8x1xf32>
    %1029 = arith.divf %1027, %1028 : vector<8x1xf32>
    %cst_165 = arith.constant 9.99999974E-6 : f32
    %1030 = vector.broadcast %cst_165 : f32 to vector<8x1xf32>
    %1031 = arith.addf %1029, %1030 : vector<8x1xf32>
    %1032 = math.rsqrt %1031 : vector<8x1xf32>
    %1033 = vector.broadcast %1032 : vector<8x1xf32> to vector<8x32xf32>
    %1034 = arith.mulf %1024, %1033 : vector<8x32xf32>
    %1035 = vector.broadcast %563 : vector<1x32xf32> to vector<8x32xf32>
    %1036 = arith.mulf %1034, %1035 : vector<8x32xf32>
    %1037 = vector.broadcast %564 : vector<1x32xf32> to vector<8x32xf32>
    %1038 = arith.addf %1036, %1037 : vector<8x32xf32>
    %c0_166 = arith.constant 0 : index
    %c0_167 = arith.constant 0 : index
    %1039 = vector.load %arg11[%c0_166, %c0_167] : memref<2x32xf32, #tpu.memory_space<vmem>>, vector<2x32xf32>
    %1040 = vector.extract_strided_slice %1039 {offsets = [0, 0], sizes = [1, 32], strides = [1, 1]} : vector<2x32xf32> to vector<1x32xf32>
    %1041 = vector.extract_strided_slice %1039 {offsets = [1, 0], sizes = [1, 32], strides = [1, 1]} : vector<2x32xf32> to vector<1x32xf32>
    %cst_168 = arith.constant dense<0.000000e+00> : vector<8xf32>
    %1042 = vector.multi_reduction <add>, %1038, %cst_168 [1] : vector<8x32xf32> to vector<8xf32>
    %1043 = vector.shape_cast %1042 : vector<8xf32> to vector<8x1xf32>
    %cst_169 = arith.constant 3.200000e+01 : f32
    %1044 = vector.broadcast %cst_169 : f32 to vector<8x1xf32>
    %1045 = arith.divf %1043, %1044 : vector<8x1xf32>
    %1046 = vector.broadcast %1045 : vector<8x1xf32> to vector<8x32xf32>
    %1047 = arith.subf %1038, %1046 : vector<8x32xf32>
    %1048 = arith.mulf %1047, %1047 : vector<8x32xf32>
    %cst_170 = arith.constant dense<0.000000e+00> : vector<8xf32>
    %1049 = vector.multi_reduction <add>, %1048, %cst_170 [1] : vector<8x32xf32> to vector<8xf32>
    %1050 = vector.shape_cast %1049 : vector<8xf32> to vector<8x1xf32>
    %cst_171 = arith.constant 3.200000e+01 : f32
    %1051 = vector.broadcast %cst_171 : f32 to vector<8x1xf32>
    %1052 = arith.divf %1050, %1051 : vector<8x1xf32>
    %cst_172 = arith.constant 9.99999974E-6 : f32
    %1053 = vector.broadcast %cst_172 : f32 to vector<8x1xf32>
    %1054 = arith.addf %1052, %1053 : vector<8x1xf32>
    %1055 = math.rsqrt %1054 : vector<8x1xf32>
    %1056 = vector.broadcast %1055 : vector<8x1xf32> to vector<8x32xf32>
    %1057 = arith.mulf %1047, %1056 : vector<8x32xf32>
    %1058 = vector.broadcast %1040 : vector<1x32xf32> to vector<8x32xf32>
    %1059 = arith.mulf %1057, %1058 : vector<8x32xf32>
    %1060 = vector.broadcast %1041 : vector<1x32xf32> to vector<8x32xf32>
    %1061 = arith.addf %1059, %1060 : vector<8x32xf32>
    %c0_173 = arith.constant 0 : index
    %c0_174 = arith.constant 0 : index
    %1062 = vector.load %arg12[%c0_173, %c0_174] : memref<33x8xf32, #tpu.memory_space<vmem>>, vector<33x8xf32>
    %1063 = vector.extract_strided_slice %1062 {offsets = [0, 0], sizes = [32, 8], strides = [1, 1]} : vector<33x8xf32> to vector<32x8xf32>
    %cst_175 = arith.constant dense<0.000000e+00> : vector<8x8xf32>
    %1064 = tpu.matmul %1061, %1063, %cst_175 {dimension_numbers = #tpu.dot_dimension_numbers<[1], [0], [0], [1], [0, 0, 1, 1], [], []>} : vector<8x32xf32>, vector<32x8xf32>, vector<8x8xf32> -> vector<8x8xf32>
    %1065 = vector.extract_strided_slice %1062 {offsets = [32, 0], sizes = [1, 8], strides = [1, 1]} : vector<33x8xf32> to vector<1x8xf32>
    %1066 = vector.broadcast %1065 : vector<1x8xf32> to vector<8x8xf32>
    %1067 = arith.addf %1064, %1066 : vector<8x8xf32>
    %1068 = vector.broadcast %61 : vector<8x1xf32> to vector<8x8xf32>
    %1069 = arith.mulf %1067, %1068 : vector<8x8xf32>
    %1070 = vector.broadcast %51 : vector<8x1xf32> to vector<8x8xf32>
    %1071 = arith.addf %1069, %1070 : vector<8x8xf32>
    %c0_176 = arith.constant 0 : index
    %c0_177 = arith.constant 0 : index
    %1072 = vector.load %arg13[%c0_176, %c0_177] : memref<4x9xf32, #tpu.memory_space<vmem>>, vector<4x9xf32>
    %1073 = vector.extract_strided_slice %1072 {offsets = [0, 0], sizes = [4, 8], strides = [1, 1]} : vector<4x9xf32> to vector<4x8xf32>
    %cst_178 = arith.constant dense<0.000000e+00> : vector<4x8xf32>
    %1074 = tpu.matmul %1073, %1071, %cst_178 {dimension_numbers = #tpu.dot_dimension_numbers<[1], [0], [0], [1], [0, 0, 1, 1], [], []>} : vector<4x8xf32>, vector<8x8xf32>, vector<4x8xf32> -> vector<4x8xf32>
    %1075 = vector.extract_strided_slice %1072 {offsets = [0, 8], sizes = [4, 1], strides = [1, 1]} : vector<4x9xf32> to vector<4x1xf32>
    %1076 = vector.broadcast %1075 : vector<4x1xf32> to vector<4x8xf32>
    %1077 = arith.addf %1074, %1076 : vector<4x8xf32>
    %c0_179 = arith.constant 0 : index
    %c0_180 = arith.constant 0 : index
    %c0_181 = arith.constant 0 : index
    %1078 = vector.load %arg14[%c0_179, %c0_180, %c0_181] : memref<1x4x8xf32, #tpu.memory_space<vmem>>, vector<1x4x8xf32>
    %1079 = vector.shape_cast %1078 : vector<1x4x8xf32> to vector<4x8xf32>
    %1080 = vector.shape_cast %1077 : vector<4x8xf32> to vector<1x4x8xf32>
    tpu.vector_store %arg14[%c0_179, %c0_180, %c0_181], %1080 {strides = array<i32>} : memref<1x4x8xf32, #tpu.memory_space<vmem>>, vector<1x4x8xf32>,
    return
  }
  func.func @transform_0(%arg0: i32) -> (i32, i32, i32) {
    %c0_i32 = arith.constant 0 : i32
    %c0_i32_0 = arith.constant 0 : i32
    %c0_i32_1 = arith.constant 0 : i32
    return %arg0, %c0_i32, %c0_i32_0 : i32, i32, i32
  }
  func.func @transform_1(%arg0: i32) -> (i32, i32) {
    %c0_i32 = arith.constant 0 : i32
    %c0_i32_0 = arith.constant 0 : i32
    %c0_i32_1 = arith.constant 0 : i32
    return %c0_i32, %c0_i32_0 : i32, i32
  }
  func.func @transform_2(%arg0: i32) -> (i32, i32, i32) {
    %c0_i32 = arith.constant 0 : i32
    %c0_i32_0 = arith.constant 0 : i32
    %c0_i32_1 = arith.constant 0 : i32
    %c0_i32_2 = arith.constant 0 : i32
    return %c0_i32, %c0_i32_0, %c0_i32_1 : i32, i32, i32
  }
  func.func @transform_3(%arg0: i32) -> (i32, i32, i32) {
    %c0_i32 = arith.constant 0 : i32
    %c0_i32_0 = arith.constant 0 : i32
    %c0_i32_1 = arith.constant 0 : i32
    %c0_i32_2 = arith.constant 0 : i32
    return %c0_i32, %c0_i32_0, %c0_i32_1 : i32, i32, i32
  }
  func.func @transform_4(%arg0: i32) -> (i32, i32, i32) {
    %c0_i32 = arith.constant 0 : i32
    %c0_i32_0 = arith.constant 0 : i32
    %c0_i32_1 = arith.constant 0 : i32
    %c0_i32_2 = arith.constant 0 : i32
    return %c0_i32, %c0_i32_0, %c0_i32_1 : i32, i32, i32
  }
  func.func @transform_5(%arg0: i32) -> (i32, i32, i32) {
    %c0_i32 = arith.constant 0 : i32
    %c0_i32_0 = arith.constant 0 : i32
    %c0_i32_1 = arith.constant 0 : i32
    %c0_i32_2 = arith.constant 0 : i32
    return %c0_i32, %c0_i32_0, %c0_i32_1 : i32, i32, i32
  }
  func.func @transform_6(%arg0: i32) -> (i32, i32, i32) {
    %c0_i32 = arith.constant 0 : i32
    %c0_i32_0 = arith.constant 0 : i32
    %c0_i32_1 = arith.constant 0 : i32
    %c0_i32_2 = arith.constant 0 : i32
    return %c0_i32, %c0_i32_0, %c0_i32_1 : i32, i32, i32
  }
  func.func @transform_7(%arg0: i32) -> (i32, i32, i32) {
    %c0_i32 = arith.constant 0 : i32
    %c0_i32_0 = arith.constant 0 : i32
    %c0_i32_1 = arith.constant 0 : i32
    %c0_i32_2 = arith.constant 0 : i32
    return %c0_i32, %c0_i32_0, %c0_i32_1 : i32, i32, i32
  }
  func.func @transform_8(%arg0: i32) -> (i32, i32, i32) {
    %c0_i32 = arith.constant 0 : i32
    %c0_i32_0 = arith.constant 0 : i32
    %c0_i32_1 = arith.constant 0 : i32
    %c0_i32_2 = arith.constant 0 : i32
    return %c0_i32, %c0_i32_0, %c0_i32_1 : i32, i32, i32
  }
  func.func @transform_9(%arg0: i32) -> (i32, i32, i32) {
    %c0_i32 = arith.constant 0 : i32
    %c0_i32_0 = arith.constant 0 : i32
    %c0_i32_1 = arith.constant 0 : i32
    %c0_i32_2 = arith.constant 0 : i32
    return %c0_i32, %c0_i32_0, %c0_i32_1 : i32, i32, i32
  }
  func.func @transform_10(%arg0: i32) -> (i32, i32) {
    %c0_i32 = arith.constant 0 : i32
    %c0_i32_0 = arith.constant 0 : i32
    %c0_i32_1 = arith.constant 0 : i32
    return %c0_i32, %c0_i32_0 : i32, i32
  }
  func.func @transform_11(%arg0: i32) -> (i32, i32) {
    %c0_i32 = arith.constant 0 : i32
    %c0_i32_0 = arith.constant 0 : i32
    %c0_i32_1 = arith.constant 0 : i32
    return %c0_i32, %c0_i32_0 : i32, i32
  }
  func.func @transform_12(%arg0: i32) -> (i32, i32) {
    %c0_i32 = arith.constant 0 : i32
    %c0_i32_0 = arith.constant 0 : i32
    %c0_i32_1 = arith.constant 0 : i32
    return %c0_i32, %c0_i32_0 : i32, i32
  }
  func.func @transform_13(%arg0: i32) -> (i32, i32, i32) {
    %c0_i32 = arith.constant 0 : i32
    %c0_i32_0 = arith.constant 0 : i32
    %c0_i32_1 = arith.constant 0 : i32
    return %arg0, %c0_i32, %c0_i32_0 : i32, i32, i32
  }
}

</mosaic_0001>

<bundles_post_ra>
// kernel: _lambda_.1
= control target key start
LH: loop header
LB: loop body
LE: loop exit
PB: predicated region body
PF: predicated region fallthrough
CT: control target
= control target key end

     0   :  { %s6947_s0 = inlined_call_operand.hbm [shape: f32[2,8,16], index: 0, kind: input, shape index: {}]   ;;  %s6948_s1 = inlined_call_operand.hbm [shape: f32[17,32], index: 1, kind: input, shape index: {}]   ;;  %s6949_s2 = inlined_call_operand.hbm [shape: f32[2,32,256], index: 2, kind: input, shape index: {}]   ;;  %s6950_s3 = inlined_call_operand.hbm [shape: f32[2,4,128], index: 3, kind: input, shape index: {}]   ;;  %s6951_s4 = inlined_call_operand.hbm [shape: f32[2,128,160], index: 4, kind: input, shape index: {}]   ;;  %s6952_s5 = inlined_call_operand.hbm [shape: f32[2,8,128], index: 5, kind: input, shape index: {}]   ;;  %s6953_s6 = inlined_call_operand.hbm [shape: f32[2,128,32], index: 6, kind: input, shape index: {}]   ;;  %s6954_s7 = inlined_call_operand.hbm [shape: f32[2,32,64], index: 7, kind: input, shape index: {}]   ;;  %s6955_s8 = inlined_call_operand.hbm [shape: f32[2,64,32], index: 8, kind: input, shape index: {}]   ;;  %s6956_s9 = inlined_call_operand.hbm [shape: f32[2,9,160], index: 9, kind: input, shape index: {}]   ;;  %s6957_s10 = inlined_call_operand.hbm [shape: f32[2,32], index: 10, kind: input, shape index: {}]   ;;  %s6958_s11 = inlined_call_operand.vmem [shape: f32[33,8], index: 11, kind: input, shape index: {}]   ;;  %s6959_s12 = inlined_call_operand.vmem [shape: f32[4,9], index: 12, kind: input, shape index: {}]   ;;  %s6960_s13 = inlined_call_operand.hbm [shape: f32[2,4,8], index: 13, kind: output, shape index: {}]  }
   0x1   :  { %6981 = sst [smem:[#allocation33_spill]] %s6947_s0 }
   0x2   :  { %6982 = sst [smem:[#allocation34_spill]] %s6948_s1 }
   0x3   :  { %6983 = sst [smem:[#allocation35_spill]] %s6949_s2 }
   0x4   :  { %6984 = sst [smem:[#allocation36_spill]] %s6958_s11 }
   0x5   :  { %6985 = sst [smem:[#allocation37_spill]] %s6959_s12 }
   0x6   :  { %6986 = sst [smem:[#allocation38_spill]] %s6960_s13 }
   0x7   :  { %18 = vsyncpa [#allocation3], 0 }
   0x8   :  { %20 = vsyncpa [#allocation3 + $0x1], 0 }
   0x9   :  { %21 = vsyncpa [#allocation6], 0 }
   0xa   :  { %22 = vsyncpa [#allocation9], 0 }
   0xb   :  { %23 = vsyncpa [#allocation12], 0 }
   0xc   :  { %24 = vsyncpa [#allocation15], 0 }
   0xd   :  { %25 = vsyncpa [#allocation18], 0 }
   0xe   :  { %26 = vsyncpa [#allocation4], 0 }
   0xf   :  { %28 = vsyncpa [#allocation4 + $0x1], 0  ;;  %s5585_s25 = smov 0   ;;  %s5587_s26 = smov 0  }
  0x10   :  { %s5589_s27 = smov 0   ;;  %s5591_s28 = smov 0  }
  0x11 LB: > { %s5493_s29 = smov [#allocation5]   ;;  %s5606_s14 = sadd.s32 4294967295, %s5491_s28   ;;  %s5491_s28 = sphi %s5591_s28, %s7033_s28   ;;  %s5487_s27 = sphi %s5589_s27, %s7032_s27   ;;  %s5483_s26 = sphi %s5587_s26, %s7031_s26   ;;  %s5479_s25 = sphi %s5585_s25, %s7030_s25  }
  0x12   : > { %s355_s30 = sshll.u32 %s5493_s29, 4  ;;  %p4267_p0 = scmp.ge.s32.totalorder %s5491_s28, 1  ;;  %s5611_s30 = int_to_ptr.vmem [resolvable:$true] %s355_s30 }
  0x13   : > { %p6967_p1 = scmp.eq.s32.totalorder %s5606_s14, 0  ;;  %p343_p2 = scmp.lt.s32.totalorder %s5491_s28, 3 }
  0x14   : > { %s5494_s16 = smov [#allocation8]   ;;  %s5495_s19 = smov [#allocation11]  }
  0x15   : > { %p5613_p3 = pnand %p4267_p0, %p343_p2  ;;  %s381_s17 = sshll.u32 %s5494_s16, 4  ;;  %s5626_s17 = int_to_ptr.vmem [resolvable:$true] %s381_s17 }
  0x16   : > { %s5628_s20 = sshll.u32 %s5495_s19, 4  ;;  %s6990_s1 = sld [smem:[#allocation34_spill]]  ;;  %s408_s20 = int_to_ptr.vmem [resolvable:$true] %s5628_s20 }
  0x17   : > { %s6987_s15 = scalar_select %p5613_p3, 1, 0 }
  0x18   : > { %p4912_p5 = pneg %p5613_p3 }
  0x19   : > { %6988 = sst [smem:[#allocation28_spill]] %s6987_s15 }
  0x1a   : > { %p5622_p6 = pnand %p4912_p5, %p6967_p1 }
  0x1c   : > { %s5095_s23 = scalar_lea.hbm %s6990_s1, 384  ;;  %p5638_p8 = pneg %p5622_p6 }
  0x1d   : > { %p5096_p7 = scmp.ne.s32.totalorder %s6990_s1, %s5095_s23  ;;  %p5102_p11 = scmp.lt.u32.totalorder %s5095_s23, %s6990_s1 }
  0x1f   : > { %p5098_p9 = pnand %p5638_p8, %p5096_p7 }
  0x21   : > { %p5099_p10 = pneg %p5098_p9 }
  0x23   : > { %p5104_p12 = pnand %p5102_p11, %p5099_p10 }
  0x25   : > { %5107 = shalt.err (!%p5104_p12)
}
  0x26   : > { %s5108_s21 = scalar_lea.vmem %s5611_s30, 384  ;;  %p5116_p5 = scmp.lt.s32.totalorder %s5611_s30, %s5611_s30 }
  0x27   : > { %p5109_p13 = scmp.ne.s32.totalorder %s5611_s30, %s5108_s21  ;;  %p5117_p4 = scmp.lt.s32.totalorder %s5108_s21, %s5108_s21 }
  0x29   : > { %p5111_p0 = pnand %p5109_p13, %p5638_p8  ;;  %p5118_p7 = por %p5117_p4, %p5116_p5 }
  0x2b   : > { %p5112_p2 = pneg %p5111_p0 }
  0x2d   : > { %p5119_p9 = pnand %p5118_p7, %p5112_p2 }
  0x2f   : > { %5122 = shalt.err (!%p5119_p9)
}
  0x30   : > { %s6965_s22 = smov 128   ;;  %s6969_s13 = smov 8  }
  0x31   : > { %4915 = dma.hbm_to_vmem [thread:$0]  (!%p5622_p6), %s6990_s1, 384, %s5611_s30, [#allocation6], %s6965_s22, %s6965_s22, %s6969_s13  }
  0x32   : > { %s5123_s21 = scalar_lea.hbm %s6950_s3, 128 }
  0x33   : > { %p5124_p4 = scmp.ne.s32.totalorder %s6950_s3, %s5123_s21  ;;  %p5130_p12 = scmp.lt.u32.totalorder %s5123_s21, %s6950_s3 }
  0x35   : > { %p5126_p10 = pnand %p5124_p4, %p5638_p8 }
  0x37   : > { %p5127_p11 = pneg %p5126_p10 }
  0x39   : > { %p5132_p13 = pnand %p5130_p12, %p5127_p11 }
  0x3b   : > { %5135 = shalt.err (!%p5132_p13)
}
  0x3c   : > { %s5136_s30 = scalar_lea.vmem %s5626_s17, 128  ;;  %p5144_p7 = scmp.lt.s32.totalorder %s5626_s17, %s5626_s17 }
  0x3d   : > { %p5137_p0 = scmp.ne.s32.totalorder %s5626_s17, %s5136_s30  ;;  %p5145_p9 = scmp.lt.s32.totalorder %s5136_s30, %s5136_s30 }
  0x3f   : > { %p5139_p2 = pnand %p5137_p0, %p5638_p8  ;;  %p5146_p4 = por %p5145_p9, %p5144_p7 }
  0x41   : > { %p5140_p5 = pneg %p5139_p2 }
  0x43   : > { %p5147_p10 = pnand %p5146_p4, %p5140_p5 }
  0x45   : > { %5150 = shalt.err (!%p5147_p10)
}
  0x46   : > { %s5498_s11 = smov 64   ;;  %s5499_s0 = smov 4  }
  0x47   : > { %4921 = dma.hbm_to_vmem [thread:$0]  (!%p5622_p6), %s6950_s3, 128, %s5626_s17, [#allocation9], %s5498_s11, %s5498_s11, %s5499_s0  }
  0x48   : > { %s5151_s29 = scalar_lea.hbm %s6952_s5, 256 }
  0x49   : > { %p5152_p11 = scmp.ne.s32.totalorder %s6952_s5, %s5151_s29  ;;  %p5158_p0 = scmp.lt.u32.totalorder %s5151_s29, %s6952_s5 }
  0x4b   : > { %p5154_p12 = pnand %p5152_p11, %p5638_p8 }
  0x4d   : > { %p5155_p13 = pneg %p5154_p12 }
  0x4f   : > { %p5160_p2 = pnand %p5158_p0, %p5155_p13 }
  0x51   : > { %5163 = shalt.err (!%p5160_p2)
}
  0x52   : > { %s5164_s12 = scalar_lea.vmem %s408_s20, 256  ;;  %p5172_p4 = scmp.lt.s32.totalorder %s408_s20, %s408_s20 }
  0x53   : > { %p5165_p5 = scmp.ne.s32.totalorder %s408_s20, %s5164_s12  ;;  %p5173_p10 = scmp.lt.s32.totalorder %s5164_s12, %s5164_s12 }
  0x55   : > { %p5167_p7 = pnand %p5165_p5, %p5638_p8  ;;  %p5174_p1 = por %p5173_p10, %p5172_p4 }
  0x57   : > { %p5168_p9 = pneg %p5167_p7 }
  0x59   : > { %p5175_p3 = pnand %p5174_p1, %p5168_p9 }
  0x5b   : > { %5178 = shalt.err (!%p5175_p3)
}
  0x5c   : > { %s6992_s17 = smov 128   ;;  %s5500_s0 = smov [#allocation14]  }
  0x5d   : > { %4927 = dma.hbm_to_vmem [thread:$0]  (!%p5622_p6), %s6952_s5, 256, %s408_s20, [#allocation12], %s6992_s17, %s6992_s17, %s6969_s13  }
  0x5e   : > { %s433_s15 = sshll.u32 %s5500_s0, 4  ;;  %s5179_s29 = scalar_lea.hbm %s6954_s7, 1024  ;;  %s434_s15 = int_to_ptr.vmem [resolvable:$true] %s433_s15 }
  0x5f   : > { %p5180_p1 = scmp.ne.s32.totalorder %s6954_s7, %s5179_s29  ;;  %p5186_p12 = scmp.lt.u32.totalorder %s5179_s29, %s6954_s7 }
  0x61   : > { %p5182_p3 = pnand %p5180_p1, %p5638_p8 }
  0x63   : > { %p5183_p11 = pneg %p5182_p3 }
  0x65   : > { %p5188_p13 = pnand %p5186_p12, %p5183_p11 }
  0x67   : > { %5191 = shalt.err (!%p5188_p13)
}
  0x68   : > { %s5192_s20 = scalar_lea.vmem %s434_s15, 1024  ;;  %p5200_p7 = scmp.lt.s32.totalorder %s434_s15, %s434_s15 }
  0x69   : > { %p5193_p0 = scmp.ne.s32.totalorder %s434_s15, %s5192_s20  ;;  %p5201_p9 = scmp.lt.s32.totalorder %s5192_s20, %s5192_s20 }
  0x6b   : > { %p5195_p2 = pnand %p5193_p0, %p5638_p8  ;;  %p5202_p4 = por %p5201_p9, %p5200_p7 }
  0x6d   : > { %p5196_p5 = pneg %p5195_p2 }
  0x6f   : > { %p5203_p10 = pnand %p5202_p4, %p5196_p5 }
  0x71   : > { %5206 = shalt.err (!%p5203_p10)
}
  0x72   : > { %4933 = dma.hbm_to_vmem [thread:$0]  (!%p5622_p6), %s6954_s7, 1024, %s434_s15, [#allocation15], %s6992_s17, %s6992_s17, %s6969_s13  }
  0x73   : > { %s5501_s0 = smov [#allocation17]   ;;  %s5502_s24 = smov [#allocation7]  }
  0x74   : > { %s459_s23 = sshll.u32 %s5501_s0, 4  ;;  %s368_s29 = sshll.u32 %s5502_s24, 4  ;;  %s460_s23 = int_to_ptr.vmem [resolvable:$true] %s459_s23  ;;  %s5728_s29 = int_to_ptr.vmem [resolvable:$true] %s368_s29 }
  0x75   : > { %s5207_s30 = scalar_lea.hbm %s6956_s9, 1024 }
  0x76   : > { %p5208_p1 = scmp.ne.s32.totalorder %s6956_s9, %s5207_s30  ;;  %p5214_p12 = scmp.lt.u32.totalorder %s5207_s30, %s6956_s9 }
  0x78   : > { %p5210_p3 = pnand %p5208_p1, %p5638_p8 }
  0x7a   : > { %p5211_p11 = pneg %p5210_p3 }
  0x7c   : > { %p5216_p13 = pnand %p5214_p12, %p5211_p11 }
  0x7e   : > { %5219 = shalt.err (!%p5216_p13)
}
  0x7f   : > { %s5220_s11 = scalar_lea.vmem %s460_s23, 1024  ;;  %p5228_p7 = scmp.lt.s32.totalorder %s460_s23, %s460_s23 }
  0x80   : > { %p5221_p0 = scmp.ne.s32.totalorder %s460_s23, %s5220_s11  ;;  %p5229_p9 = scmp.lt.s32.totalorder %s5220_s11, %s5220_s11 }
  0x82   : > { %p5223_p2 = pnand %p5221_p0, %p5638_p8  ;;  %p5230_p4 = por %p5229_p9, %p5228_p7 }
  0x84   : > { %p5224_p5 = pneg %p5223_p2 }
  0x86   : > { %p5231_p10 = pnand %p5230_p4, %p5224_p5 }
  0x88   : > { %5234 = shalt.err (!%p5231_p10)
}
  0x89   : > { %s5503_s0 = smov 256   ;;  %s5504_s24 = smov 16  }
  0x8a   : > { %4939 = dma.hbm_to_vmem [thread:$0]  (!%p5622_p6), %s6956_s9, 1024, %s460_s23, [#allocation18], %s5503_s0, %s5503_s0, %s5504_s24  }
  0x8b   : > { %s6993_s2 = sld [smem:[#allocation35_spill]] }
  0x91   : > { %s5235_s20 = scalar_lea.hbm %s6993_s2, 2048 }
  0x92   : > { %p5236_p1 = scmp.ne.s32.totalorder %s6993_s2, %s5235_s20  ;;  %p5242_p12 = scmp.lt.u32.totalorder %s5235_s20, %s6993_s2 }
  0x94   : > { %p5238_p3 = pnand %p5236_p1, %p5638_p8 }
  0x96   : > { %p5239_p11 = pneg %p5238_p3 }
  0x98   : > { %p5244_p13 = pnand %p5242_p12, %p5239_p11 }
  0x9a   : > { %5247 = shalt.err (!%p5244_p13)
}
  0x9b   : > { %s5248_s23 = scalar_lea.vmem %s5728_s29, 2048  ;;  %p5256_p7 = scmp.lt.s32.totalorder %s5728_s29, %s5728_s29 }
  0x9c   : > { %p5249_p0 = scmp.ne.s32.totalorder %s5728_s29, %s5248_s23  ;;  %p5257_p9 = scmp.lt.s32.totalorder %s5248_s23, %s5248_s23 }
  0x9e   : > { %p5251_p2 = pnand %p5249_p0, %p5638_p8  ;;  %p5258_p4 = por %p5257_p9, %p5256_p7 }
  0xa0   : > { %p5252_p5 = pneg %p5251_p2 }
  0xa2   : > { %p5259_p10 = pnand %p5258_p4, %p5252_p5 }
  0xa4   : > { %5262 = shalt.err (!%p5259_p10)
}
  0xa5   : > { %4918 = dma.hbm_to_vmem [thread:$0]  (!%p5622_p6), %s6993_s2, 2048, %s5728_s29, [#allocation6], %s5503_s0, %s5503_s0, %s5504_s24  }
  0xa6   : > { %s5505_s21 = smov [#allocation10]   ;;  %s5506_s12 = smov [#allocation13]  }
  0xa7   : > { %s394_s30 = sshll.u32 %s5505_s21, 4  ;;  %s420_s20 = sshll.u32 %s5506_s12, 4  ;;  %s395_s30 = int_to_ptr.vmem [resolvable:$true] %s394_s30  ;;  %s5777_s20 = int_to_ptr.vmem [resolvable:$true] %s420_s20 }
  0xa8   : > { %s5263_s11 = scalar_lea.hbm %s6951_s4, 8192 }
  0xa9   : > { %p5264_p1 = scmp.ne.s32.totalorder %s6951_s4, %s5263_s11  ;;  %p5270_p12 = scmp.lt.u32.totalorder %s5263_s11, %s6951_s4 }
  0xab   : > { %p5266_p3 = pnand %p5264_p1, %p5638_p8 }
  0xad   : > { %p5267_p11 = pneg %p5266_p3 }
  0xaf   : > { %p5272_p13 = pnand %p5270_p12, %p5267_p11 }
  0xb1   : > { %5275 = shalt.err (!%p5272_p13)
}
  0xb2   : > { %s5276_s19 = scalar_lea.vmem %s395_s30, 8192  ;;  %p5284_p7 = scmp.lt.s32.totalorder %s395_s30, %s395_s30 }
  0xb3   : > { %p5277_p0 = scmp.ne.s32.totalorder %s395_s30, %s5276_s19  ;;  %p5285_p9 = scmp.lt.s32.totalorder %s5276_s19, %s5276_s19 }
  0xb5   : > { %p5279_p2 = pnand %p5277_p0, %p5638_p8  ;;  %p5286_p4 = por %p5285_p9, %p5284_p7 }
  0xb7   : > { %p5280_p5 = pneg %p5279_p2 }
  0xb9   : > { %p5287_p10 = pnand %p5286_p4, %p5280_p5 }
  0xbb   : > { %5290 = shalt.err (!%p5287_p10)
}
  0xbc   : > { %4924 = dma.hbm_to_vmem [thread:$0]  (!%p5622_p6), %s6951_s4, 8192, %s395_s30, [#allocation9], %s5503_s0, %s5503_s0, %s5504_s24  }
  0xbd   : > { %s5291_s15 = scalar_lea.hbm %s6953_s6, 4096 }
  0xbe   : > { %p5292_p1 = scmp.ne.s32.totalorder %s6953_s6, %s5291_s15  ;;  %p5298_p12 = scmp.lt.u32.totalorder %s5291_s15, %s6953_s6 }
  0xc0   : > { %p5294_p3 = pnand %p5292_p1, %p5638_p8 }
  0xc2   : > { %p5295_p11 = pneg %p5294_p3 }
  0xc4   : > { %p5300_p13 = pnand %p5298_p12, %p5295_p11 }
  0xc6   : > { %5303 = shalt.err (!%p5300_p13)
}
  0xc7   : > { %s5304_s0 = scalar_lea.vmem %s5777_s20, 4096  ;;  %p5312_p7 = scmp.lt.s32.totalorder %s5777_s20, %s5777_s20 }
  0xc8   : > { %p5305_p0 = scmp.ne.s32.totalorder %s5777_s20, %s5304_s0  ;;  %p5313_p9 = scmp.lt.s32.totalorder %s5304_s0, %s5304_s0 }
  0xca   : > { %p5307_p2 = pnand %p5305_p0, %p5638_p8  ;;  %p5314_p4 = por %p5313_p9, %p5312_p7 }
  0xcc   : > { %p5308_p5 = pneg %p5307_p2 }
  0xce   : > { %p5315_p10 = pnand %p5314_p4, %p5308_p5 }
  0xd0   : > { %5318 = shalt.err (!%p5315_p10)
}
  0xd1   : > { %s6994_s24 = smov 8   ;;  %s5507_s1 = smov [#allocation16]  }
  0xd2   : > { %4930 = dma.hbm_to_vmem [thread:$0]  (!%p5622_p6), %s6953_s6, 4096, %s5777_s20, [#allocation12], %s6992_s17, %s6992_s17, %s6994_s24  }
  0xd3   : > { %s446_s21 = sshll.u32 %s5507_s1, 4  ;;  %s5508_s12 = smov [#allocation19]   ;;  %s447_s21 = int_to_ptr.vmem [resolvable:$true] %s446_s21 }
  0xd4   : > { %s473_s22 = sshll.u32 %s5508_s12, 4  ;;  %s5319_s23 = scalar_lea.hbm %s6955_s8, 2048  ;;  %s5826_s22 = int_to_ptr.vmem [resolvable:$true] %s473_s22 }
  0xd5   : > { %p5320_p1 = scmp.ne.s32.totalorder %s6955_s8, %s5319_s23  ;;  %p5326_p12 = scmp.lt.u32.totalorder %s5319_s23, %s6955_s8 }
  0xd7   : > { %p5322_p3 = pnand %p5320_p1, %p5638_p8 }
  0xd9   : > { %p5323_p11 = pneg %p5322_p3 }
  0xdb   : > { %p5328_p13 = pnand %p5326_p12, %p5323_p11 }
  0xdd   : > { %5331 = shalt.err (!%p5328_p13)
}
  0xde   : > { %s5332_s30 = scalar_lea.vmem %s447_s21, 2048  ;;  %p5340_p7 = scmp.lt.s32.totalorder %s447_s21, %s447_s21 }
  0xdf   : > { %p5333_p0 = scmp.ne.s32.totalorder %s447_s21, %s5332_s30  ;;  %p5341_p9 = scmp.lt.s32.totalorder %s5332_s30, %s5332_s30 }
  0xe1   : > { %p5335_p2 = pnand %p5333_p0, %p5638_p8  ;;  %p5342_p4 = por %p5341_p9, %p5340_p7 }
  0xe3   : > { %p5336_p5 = pneg %p5335_p2 }
  0xe5   : > { %p5343_p10 = pnand %p5342_p4, %p5336_p5 }
  0xe7   : > { %5346 = shalt.err (!%p5343_p10)
}
  0xe8   : > { %4936 = dma.hbm_to_vmem [thread:$0]  (!%p5622_p6), %s6955_s8, 2048, %s447_s21, [#allocation15], %s6992_s17, %s6992_s17, %s6994_s24  }
  0xe9   : > { %s5347_s11 = scalar_lea.hbm %s6957_s10, 32 }
  0xea   : > { %p5348_p1 = scmp.ne.s32.totalorder %s6957_s10, %s5347_s11  ;;  %p5354_p12 = scmp.lt.u32.totalorder %s5347_s11, %s6957_s10 }
  0xec   : > { %p5350_p3 = pnand %p5348_p1, %p5638_p8 }
  0xee   : > { %p5351_p11 = pneg %p5350_p3 }
  0xf0   : > { %p5356_p13 = pnand %p5354_p12, %p5351_p11 }
  0xf2   : > { %5359 = shalt.err (!%p5356_p13)
}
  0xf3   : > { %s5360_s17 = scalar_lea.vmem %s5826_s22, 32  ;;  %p5368_p7 = scmp.lt.s32.totalorder %s5826_s22, %s5826_s22 }
  0xf4   : > { %p5361_p0 = scmp.ne.s32.totalorder %s5826_s22, %s5360_s17  ;;  %p5369_p9 = scmp.lt.s32.totalorder %s5360_s17, %s5360_s17 }
  0xf6   : > { %p5363_p2 = pnand %p5361_p0, %p5638_p8  ;;  %p5370_p4 = por %p5369_p9, %p5368_p7 }
  0xf8   : > { %p5364_p5 = pneg %p5363_p2 }
  0xfa   : > { %p5371_p10 = pnand %p5370_p4, %p5364_p5 }
  0xfc   : > { %5374 = shalt.err (!%p5371_p10)
}
  0xfd   : > { %4942 = dma.hbm_to_vmem [thread:$0]  (!%p5622_p6), %s6957_s10, 32, %s5826_s22, [#allocation18]  }
  0xfe   : > { %s4266_s18 = sadd.s32 4294967294, %s5491_s28   ;;  %s5874_s16 = sadd.s32 1, %s5491_s28  }
  0xff   : > { %s38_s20 = ssub.s32 %s5491_s28, %s5874_s16  ;;  %s41_s30 = sadd.s32 1, %s5487_s27 }
 0x100   : > { %p39_p8 = scmp.eq.s32.totalorder %s38_s20, 0  ;;  %p48_p1 = scmp.ne.s32.totalorder %s5487_s27, %s5483_s26 }
 0x101   : > { %p49_p3 = scmp.eq.s32.totalorder %s5491_s28, 0  ;;  %p54_p11 = scmp.ne.s32.totalorder %s5483_s26, %s5479_s25 }
 0x102   : > { %s5885_s19 = scalar_select %p39_p8, %s5487_s27, %s41_s30  }
 0x103   : > { %p5887_p12 = por %p49_p3, %p48_p1  ;;  %p6996_p13 = scmp.eq.s32.totalorder %s5606_s14, 0 }
 0x104   : > { %p330_p0 = scmp.eq.s32.totalorder %s5606_s14, 1  ;;  %p336_p2 = scmp.eq.s32.totalorder %s4266_s18, 1 }
 0x105   : > { %p5893_p6 = por %p6996_p13, %p54_p11  ;;  %p4961_p5 = scmp.lt.s32.totalorder %s5491_s28, 2 }
 0x106   : > { %s490_s12 = sand.u32 1, %s5487_s27   ;;  %p5900_p7 = por %p330_p0, %p48_p1 }
 0x107   : > { %p5904_p9 = por %p336_p2, %p54_p11  ;;  %s4279_s23 = sshll.u32 %s490_s12, 3 }
 0x108   : > { %s6998_s15 = scalar_select %p5900_p7, 1, 0 }
 0x109   : > { %s6999_s11 = scalar_select %p5904_p9, 1, 0 }
 0x10a   : > { %s4280_s13 = sshll.u32 %s5491_s28, 7  ;;  %s7000_s17 = sld [smem:[#allocation33_spill]] }
 0x10b   : > { %s494_s21 = scalar_lea.vmem [#allocation2], %s4279_s23  ;;  %p5918_p4 = pnand %p4961_p5, %p5887_p12 }
 0x10c   : > { %s501_s18 = sshll.u32 %s494_s21, 4  ;;  %s491_s30 = scalar_lea.sflag [#allocation3], %s490_s12  ;;  %s5914_s18 = int_to_ptr.vmem [resolvable:$true] %s501_s18 }
 0x10d   : > { %p5377_p8 = pneg %p5918_p4 }
 0x110   : > { %s5912_s24 = scalar_lea.hbm %s7000_s17, %s4280_s13  ;;  %s5380_s29 = scalar_lea.hbm %s7000_s17, 256 }
 0x111   : > { %s5375_s2 = scalar_lea.hbm %s5912_s24, 128  ;;  %p5381_p11 = scmp.lt.u32.totalorder %s5912_s24, %s7000_s17 }
 0x112   : > { %p5376_p10 = scmp.ne.s32.totalorder %s5912_s24, %s5375_s2  ;;  %p5382_p12 = scmp.lt.u32.totalorder %s5380_s29, %s5375_s2 }
 0x113   : > { %p5384_p0 = scmp.lt.u32.totalorder %s5375_s2, %s5912_s24 }
 0x114   : > { %p5378_p1 = pnand %p5377_p8, %p5376_p10  ;;  %p5383_p13 = por %p5382_p12, %p5381_p11 }
 0x116   : > { %p5379_p3 = pneg %p5378_p1  ;;  %p5385_p2 = por %p5384_p0, %p5383_p13 }
 0x118   : > { %p5386_p5 = pnand %p5385_p2, %p5379_p3 }
 0x11a   : > { %5389 = shalt.err (!%p5386_p5)
}
 0x11b   : > { %s5390_s12 = scalar_lea.vmem %s5914_s18, 128  ;;  %s5509_s21 = smov [#allocation2]  }
 0x11c   : > { %p5391_p10 = scmp.ne.s32.totalorder %s5914_s18, %s5390_s12  ;;  %s5395_s23 = sshll.u32 %s5509_s21, 4  ;;  %s5396_s23 = int_to_ptr.vmem [resolvable:$false] %s5395_s23 }
 0x11d   : > { %s5397_s13 = scalar_lea.vmem %s5396_s23, 256  ;;  %p5398_p7 = scmp.lt.s32.totalorder %s5914_s18, %s5396_s23 }
 0x11e   : > { %p5393_p1 = pnand %p5391_p10, %p5377_p8  ;;  %p5399_p11 = scmp.lt.s32.totalorder %s5397_s13, %s5390_s12 }
 0x120   : > { %p5394_p9 = pneg %p5393_p1  ;;  %p5400_p12 = por %p5399_p11, %p5398_p7 }
 0x122   : > { %p5401_p13 = pnand %p5400_p12, %p5394_p9 }
 0x124   : > { %5404 = shalt.err (!%p5401_p13)
}
 0x125   : > { %4946 = dma.hbm_to_vmem [thread:$0]  (!%p5918_p4), %s5912_s24, 128, %s5914_s18, %s491_s30  }
 0x126   : > { %s7002_s2 = sld [smem:[#allocation28_spill]] }
 0x12c   : > { %p7003_p3 = scmp.ne.s32.totalorder %s7002_s2, 0 }
 0x12e   : > { %510 = sbr.rel (%p7003_p3) target bundleno = 6589 (0x19bd), region = 72 }
 0x135   : > { %s5950_s29 = sand.u32 1, %s5483_s26  }
 0x136   : > { %s4282_s1 = sshll.u32 %s5950_s29, 3  ;;  %s513_s0 = scalar_lea.sflag [#allocation3], %s5950_s29 }
 0x137   : > { %s516_s12 = scalar_lea.vmem [#allocation2], %s4282_s1 }
 0x138   : > { %5450 = dma.done.wait (%p5893_p6), %s513_s0, 128  }
 0x139   : > { %5452 = vsyncadd (%p5893_p6), %s513_s0, 4294967168  ;;  %p7004_p7 = scmp.eq.s32.totalorder %s5606_s14, 0 }
 0x13b   : > { %5454 = dma.done.wait (%p7004_p7), [#allocation6], 2432   ;;  %p7005_p9 = pmov %p7004_p7 }
 0x13c   : > { %p7006_p4 = pmov %p7004_p7 }
 0x13d   : > { %5456 = vsyncadd (%p7005_p9), [#allocation6], 4294964864 }
 0x13e   : > { %5458 = dma.done.wait (%p7006_p4), [#allocation9], 8320   ;;  %p7007_p8 = pmov %p7006_p4 }
 0x13f   : > { %p7008_p0 = pmov %p7006_p4 }
 0x140   : > { %5460 = vsyncadd (%p7007_p8), [#allocation9], 4294958976 }
 0x141   : > { %5462 = dma.done.wait (%p7008_p0), [#allocation12], 4352   ;;  %p7009_p2 = pmov %p7008_p0 }
 0x142   : > { %p7010_p6 = pmov %p7008_p0 }
 0x143   : > { %5464 = vsyncadd (%p7009_p2), [#allocation12], 4294962944 }
 0x144   : > { %5466 = dma.done.wait (%p7010_p6), [#allocation15], 3072   ;;  %p7011_p5 = pmov %p7008_p0 }
 0x145   : > { %p7012_p10 = pmov %p7008_p0 }
 0x146   : > { %5468 = vsyncadd (%p7011_p5), [#allocation15], 4294964224 }
 0x147   : > { %5470 = dma.done.wait (%p7012_p10), [#allocation18], 1056   ;;  %p7013_p1 = pmov %p7008_p0 }
 0x148   : > { %vm644_vm0 = vcmask 130048   ;;  %v643_v0 = vld [vmem:[%s516_s12] sm:$0xff]  ;;  %v666_v7 = vld [vmem:[#allocation5] sm:$0xff]  ;;  %v667_v8 = vld [vmem:[#allocation5 + $0x8] sm:$0xff]  ;;  %v6974_v9 = vmov 0.0|0.0   ;;  %vm5511_vm1 = vmmov 0   ;;  %v599_v37 = vlaneseq }
 0x149   : > { %5472 = vsyncadd (%p7013_p1), [#allocation18], 4294966240  ;;  %v645_v1 = vsel %vm644_vm0, %v643_v0, 0.0  ;;  %4695 = vmatprep.subr.bf16.mxu0 %v6974_v9  ;;  %v4696_v10 = vpack.c.bf16 %v667_v8, %v666_v7  ;;  %v6972_v11 = vmov 0.0   ;;  %v750_v12 = vld [vmem:[#allocation7 + $0x8] sm:$0xff]  ;;  %v752_v13 = vld [vmem:[#allocation7 + $0x18] sm:$0xff] }
 0x14a   : > { %646 = vadd.xlane.f32.xlu0 %v645_v1  ;;  %4456 = vmatprep.mubr.msk.f32.mxu0 %vm5511_vm1, %v6972_v11  ;;  %v749_v14 = vld [vmem:[#allocation7] sm:$0xff]  ;;  %v4698_v15 = vpack.c.bf16 %v752_v13, %v750_v12  ;;  %v751_v16 = vld [vmem:[#allocation7 + $0x10] sm:$0xff]  ;;  %v754_v17 = vld [vmem:[#allocation7 + $0x28] sm:$0xff]  ;;  %vm757_vm4 = vcmask 261120   ;;  %v6000_v38 = vand.u32 127, %v599_v37  ;;  %v6002_v39 = vshrl.u32 %v599_v37, 7 }
 0x14b   : > { %825 = vmatprep.mubr.f32.mxu1 %v6972_v11  ;;  %4697 = vmatpush3.bf16.msra.mxu0 %v4696_v10  ;;  %v756_v18 = vld [vmem:[#allocation7 + $0x38] sm:$0xff]  ;;  %v4700_v19 = vpack.c.bf16 %v751_v16, %v749_v14  ;;  %v753_v30 = vld [vmem:[#allocation7 + $0x20] sm:$0xff]  ;;  %v755_v31 = vld [vmem:[#allocation7 + $0x30] sm:$0xff]  ;;  %vm845_vm7 = vcmask 64512   ;;  %s7022_s18 = sld [smem:[#allocation36_spill]]  ;;  %s7023_s12 = sld [smem:[#allocation37_spill]] }
 0x14c   : > { %4459 = vmatprep.subr.mxu0 %v6972_v11  ;;  %v4702_v20 = vpack.c.bf16 %v756_v18, %v754_v17  ;;  %4699 = vmatprep.subr.bf16.mxu1 %v4698_v15  ;;  %v4704_v32 = vpack.c.bf16 %v755_v31, %v753_v30  ;;  %v4305_v33 = vld [vmem:[#allocation5 + $0x10] ss:$0 sm:$0xff]  ;;  %v608_v40 = vsub.s32 %v6002_v39, %v6000_v38  ;;  %v1320_v50 = vld [vmem:[#allocation10 + $0x8] sm:$0xff]  ;;  %v1322_v51 = vld [vmem:[#allocation10 + $0x18] sm:$0xff]  ;;  %vm601_vm12 = vcmp.lt.s32.totalorder %v6000_v38, 64  ;;  %s4293_s20 = sshll.u32 %s5950_s29, 2 }
 0x14d   : > { %4701 = vmatpush1.bf16.msra.mxu1 %v4700_v19  ;;  %v618_v41 = vsub.s32 %v6000_v38, %v6002_v39  ;;  %v4706_v52 = vpack.c.bf16 %v1322_v51, %v1320_v50  ;;  %v1319_v53 = vld [vmem:[#allocation10] sm:$0xff]  ;;  %v1321_v54 = vld [vmem:[#allocation10 + $0x10] sm:$0xff]  ;;  %v1324_v56 = vld [vmem:[#allocation10 + $0x28] sm:$0xff]  ;;  %v6069_v50 = vsub.s32 1, %v6002_v39  ;;  %vm631_vm13 = vcmp.eq.s32.totalorder %v6002_v39, %v6000_v38  ;;  %s4341_s30 = sshll.u32 %s5606_s14, 6  ;;  %s598_s21 = scalar_lea.vmem [#allocation20], %s4293_s20 }
 0x14e   : > { %4703 = vmatprep.subr.bf16.mxu1 %v4702_v20  ;;  %vm609_vm5 = vcmp.eq.s32.totalorder %v608_v40, 1  ;;  %vm612_vm6 = vcmp.eq.s32.totalorder %v608_v40, 2  ;;  %vm615_vm9 = vcmp.eq.s32.totalorder %v608_v40, 3  ;;  %v4708_v55 = vpack.c.bf16 %v1321_v54, %v1319_v53  ;;  %v1326_v57 = vld [vmem:[#allocation10 + $0x38] sm:$0xff]  ;;  %v1323_v59 = vld [vmem:[#allocation10 + $0x20] sm:$0xff]  ;;  %v1325_v60 = vld [vmem:[#allocation10 + $0x30] sm:$0xff] }
 0x14f   : > { %v6009_v42 = vsel %vm609_vm5, 1.0, %v6972_v11  ;;  %vm619_vm8 = vcmp.eq.s32.totalorder %v618_v41, 1  ;;  %v6018_v45 = vsel %vm612_vm6, 1.0, %v6972_v11  ;;  %vm622_vm10 = vcmp.eq.s32.totalorder %v618_v41, 2  ;;  %v1328_v62 = vld [vmem:[#allocation10 + $0x48] sm:$0xff]  ;;  %v1330_v63 = vld [vmem:[#allocation10 + $0x58] sm:$0xff] }
 0x150   : > { %v6026_v46 = vsel %vm619_vm8, 1.0, %v6972_v11  ;;  %v6035_v47 = vsel %vm615_vm9, 1.0, %v6972_v11  ;;  %v6045_v48 = vsel %vm622_vm10, 1.0, %v6972_v11  ;;  %vm625_vm11 = vcmp.eq.s32.totalorder %v618_v41, 3  ;;  %v1327_v1 = vld [vmem:[#allocation10 + $0x40] sm:$0xff]  ;;  %v1333_v10 = vld [vmem:[#allocation10 + $0x70] sm:$0xff] }
 0x151   : > { %4705 = vmatpush1.bf16.msra.mxu1 %v4704_v32  ;;  %v6057_v49 = vsel %vm625_vm11, 1.0, %v6972_v11  ;;  %v4710_v58 = vpack.c.bf16 %v1326_v57, %v1324_v56  ;;  %v4712_v61 = vpack.c.bf16 %v1325_v60, %v1323_v59  ;;  %v1331_v8 = vld [vmem:[#allocation10 + $0x60] sm:$0xff]  ;;  %v1336_v13 = vld [vmem:[#allocation10 + $0x88] sm:$0xff]  ;;  %v1338_v14 = vld [vmem:[#allocation10 + $0x98] sm:$0xff]  ;;  %v6066_v41 = vsub.s32 0, %v6002_v39  ;;  %s4101_s23 = sshll.u32 %s598_s21, 4  ;;  %s6905_s23 = int_to_ptr.vmem [resolvable:$true] %s4101_s23 }
 0x152   : > { %4469 = vmatprep.subr.mxu1 %v6972_v11  ;;  %v4720_v12 = vpack.c.bf16 %v1333_v10, %v1331_v8  ;;  %v4722_v15 = vpack.c.bf16 %v1338_v14, %v1336_v13  ;;  %v1335_v16 = vld [vmem:[#allocation10 + $0x80] sm:$0xff]  ;;  %v1337_v17 = vld [vmem:[#allocation10 + $0x90] sm:$0xff]  ;;  %v1340_v19 = vld [vmem:[#allocation10 + $0xa8] sm:$0xff]  ;;  %v6075_v57 = vsub.s32 2, %v6002_v39  ;;  %vm1827_vm6 = vcmp.eq.s32.totalorder %v6002_v39, 0  ;;  %s7026_s1 = sld [smem:[#allocation38_spill]] }
 0x153   : > { %v4724_v18 = vpack.c.bf16 %v1337_v17, %v1335_v16  ;;  %v1342_v20 = vld [vmem:[#allocation10 + $0xb8] sm:$0xff]  ;;  %v1345_v30 = vld [vmem:[#allocation10 + $0xd0] sm:$0xff]  ;;  %v1348_v31 = vld [vmem:[#allocation10 + $0xe8] sm:$0xff]  ;;  %vm1845_vm8 = vcmp.eq.s32.totalorder %v6002_v39, 1  ;;  %vm1863_vm9 = vcmp.eq.s32.totalorder %v6002_v39, 2  ;;  %vm1881_vm10 = vcmp.eq.s32.totalorder %v6002_v39, 3 }
 0x154   : > { %v1350_v32 = vld [vmem:[#allocation10 + $0xf8] sm:$0xff]  ;;  %v1349_v37 = vld [vmem:[#allocation10 + $0xf0] sm:$0xff]  ;;  %vm1899_vm11 = vcmp.eq.s32.totalorder %v6002_v39, 4  ;;  %s5405_s22 = scalar_lea.vmem %s6905_s23, 64  ;;  %p7027_p12 = scmp.ne.s32.totalorder %s6998_s15, 0 }
 0x155   : > { %v839_v51 = vld [vmem:[#allocation8] sm:$0xf]  ;;  %v6087_v13 = vld [vmem:[#allocation17] sm:$0xff]  ;;  %p5406_p11 = scmp.ne.s32.totalorder %s6905_s23, %s5405_s22  ;;  %s5514_s14 = smov [#allocation20]  }
 0x156   : > { %v843_v54 = vrot.slane %v839_v51, %v6066_v41  ;;  %s5409_s24 = sshll.u32 %s5514_s14, 4  ;;  %s5410_s24 = int_to_ptr.vmem [resolvable:$false] %s5409_s24 }
 0x157   : > { %p5407_p13 = pnand %p5406_p11, %p7027_p12  ;;  %s5411_s20 = scalar_lea.vmem %s5410_s24, 128 }
 0x158   : > { %s6903_s0 = scalar_lea.hbm %s7026_s1, %s4341_s30  ;;  %p5412_p7 = scmp.lt.s32.totalorder %s6905_s23, %s5410_s24 }
 0x159   : > { %p5408_p3 = pneg %p5407_p13  ;;  %p5413_p9 = scmp.lt.s32.totalorder %s5411_s20, %s5405_s22 }
 0x15b   : > { %p5414_p4 = por %p5413_p9, %p5412_p7 }
 0x15d   : > { %p5415_p8 = pnand %p5414_p4, %p5408_p3 }
 0x1d7   : > { %v647_v2 = vpop.xlane.xlu0 %646 }
 0x1d8   : > { %v5979_v3 = vmul.f32 0.0625, %v647_v2  ;;  %v1329_v2 = vld [vmem:[#allocation10 + $0x50] sm:$0xff] }
 0x1da   : > { %7014 = vst [vmem:[#allocation29_spill] sm:$0xff] %v5979_v3  ;;  %v650_v4 = vsub.f32 %v643_v0, %v5979_v3  ;;  %v4714_v0 = vpack.c.bf16 %v1330_v63, %v1328_v62 }
 0x1dc   : > { %v651_v5 = vmul.f32 %v650_v4, %v650_v4 }
 0x1de   : > { %v652_v6 = vsel %vm644_vm0, %v651_v5, 0.0  ;;  %v1332_v5 = vld [vmem:[#allocation10 + $0x68] sm:$0xff] }
 0x1df   : > { %653 = vadd.xlane.f32.xlu0 %v652_v6  ;;  %v1334_v6 = vld [vmem:[#allocation10 + $0x78] sm:$0xff] }
 0x1e0   : > { %v4718_v7 = vpack.c.bf16 %v1334_v6, %v1332_v5 }
 0x26c   : > { %v654_v21 = vpop.xlane.xlu0 %653 }
 0x26d   : > { %v655_v22 = vmul.f32 0.0625, %v654_v21  ;;  %v1339_v21 = vld [vmem:[#allocation10 + $0xa0] sm:$0xff] }
 0x26f   : > { %v656_v23 = vadd.f32 1e-05, %v655_v22  ;;  %v4726_v22 = vpack.c.bf16 %v1342_v20, %v1340_v19 }
 0x271   : > { %5026 = vrsqrt.f32 %v656_v23  ;;  %vm659_vm2 = vcmp.eq.f32.partialorder %v656_v23, inf  ;;  %v662_v27 = vand.u32 2147483648, %v656_v23  ;;  %vm661_vm3 = vcmp.eq.f32.partialorder %v656_v23, 0.0 }
 0x27b   : > { %v5027_v24 = vpop.eup %5026 }
 0x27c   : > { %v665_v25 = vmul.f32 %v5027_v24, %v650_v4  ;;  %v658_v26 = vmul.f32 %v5027_v24, %v656_v23  ;;  %v4716_v4 = vpack.c.bf16 %v1329_v2, %v1327_v1  ;;  %v1344_v24 = vld [vmem:[#allocation10 + $0xc8] sm:$0xff]  ;;  %v6082_v2 = vsub.s32 3, %v6002_v39 }
 0x27e   : > { %4457 = vmatmul.mubr.msk.f32.vlgmr.msra.gmra.mrb[0].mxu0 %vm644_vm0, %v665_v25  ;;  %v660_v28 = vsel %vm659_vm2, %v656_v23, %v658_v26  ;;  %v1341_v23 = vld [vmem:[#allocation10 + $0xb0] sm:$0xff]  ;;  %v1346_v25 = vld [vmem:[#allocation10 + $0xd8] sm:$0xff] }
 0x27f   : > { %4461 = vmatprep.mubr.msk.f32.mxu0 %vm5511_vm1, %v6972_v11  ;;  %v5991_v29 = vsel %vm661_vm3, %v662_v27, %v660_v28  ;;  %v4728_v26 = vpack.c.bf16 %v1341_v23, %v1339_v21  ;;  %v4730_v27 = vpack.c.bf16 %v1346_v25, %v1344_v24  ;;  %v1343_v28 = vld [vmem:[#allocation10 + $0xc0] sm:$0xff] }
 0x280   : > { %7015 = vst [vmem:[#allocation30_spill] sm:$0xff] %v5991_v29 }
 0x351   : > { %v742_v34 = vpop.f32.mrb[0].mxu0 }
 0x352   : > { %v5994_v35 = vadd.f32 %v4305_v33, %v742_v34  ;;  %v4458_v36 = vpop.f32.mrb[1].mxu0  ;;  %v4732_v33 = vpack.c.bf16 %v1345_v30, %v1343_v28  ;;  %v4734_v34 = vpack.c.bf16 %v1350_v32, %v1348_v31  ;;  %v628_v30 = vadd.s32 8, %v6002_v39 }
 0x353   : > { %v1347_v36 = vld [vmem:[#allocation10 + $0xe0] sm:$0xff]  ;;  %v6105_v32 = vsub.s32 7, %v6002_v39 }
 0x354   : > { %4307 = vmatmul.mubr.msk.f32.vlgmr.msra.gmra.mrb[0].mxu1 %vm757_vm4, %v5994_v35  ;;  %v4736_v40 = vpack.c.bf16 %v1349_v37, %v1347_v36  ;;  %vm632_vm14 = vcmp.eq.s32.totalorder %v628_v30, %v6000_v38 }
 0x355   : > { %4471 = vmatprep.mubr.msk.f32.mxu1 %vm5511_vm1, %v6972_v11 }
 0x427   : > { %v6011_v43 = vpop.f32.mrb[0].mxu1 }
 0x428   : > { %v6013_v44 = vpop.f32.mrb[1].mxu1  ;;  %4460 = vmatpush3.msra.mxu0 %v6011_v43  ;;  %4470 = vmatpush3.msra.mxu1 %v6011_v43  ;;  %v844_v62 = vmul.f32 %v843_v54, %v6011_v43 }
 0x429   : > { %4462 = vmatmul.mubr.msk.f32.vlgmr.msra.gmra.mrb[2].mxu0 %vm845_vm7, %v6009_v42  ;;  %4464 = vmatprep.subr.mxu0 %v6972_v11 }
 0x42a   : > { %4479 = vmatprep.subr.mxu1 %v6972_v11  ;;  %4465 = vmatpush3.msra.mxu0 %v6011_v43 }
 0x42b   : > { %4472 = vmatmul.mubr.msk.f32.vlgmr.msra.gmra.mrb[2].mxu1 %vm845_vm7, %v6018_v45  ;;  %4466 = vmatprep.mubr.msk.f32.mxu0 %vm5511_vm1, %v6972_v11 }
 0x42c   : > { %4480 = vmatpush3.msra.mxu1 %v6011_v43  ;;  %4474 = vmatprep.subr.mxu0 %v6972_v11 }
 0x42d   : > { %4467 = vmatmul.mubr.msk.f32.vlgmr.msra.gmra.mrb[4].mxu0 %vm845_vm7, %v6026_v46  ;;  %4481 = vmatprep.mubr.msk.f32.mxu1 %vm5511_vm1, %v6972_v11 }
 0x42e   : > { %4475 = vmatpush3.msra.mxu0 %v6011_v43  ;;  %4476 = vmatprep.mubr.msk.f32.mxu0 %vm5511_vm1, %v6972_v11 }
 0x42f   : > { %4484 = vmatprep.subr.mxu0 %v6972_v11  ;;  %4482 = vmatmul.mubr.msk.f32.vlgmr.msra.gmra.mrb[4].mxu1 %vm845_vm7, %v6035_v47 }
 0x430   : > { %1423 = vmatprep.mubr.f32.mxu1 %v6972_v11  ;;  %4707 = vmatprep.subr.bf16.mxu1 %v4706_v52 }
 0x431   : > { %4477 = vmatmul.mubr.msk.f32.vlgmr.msra.gmra.mrb[6].mxu0 %vm845_vm7, %v6045_v48  ;;  %4709 = vmatpush1.bf16.msra.mxu1 %v4708_v55  ;;  %v998_v55 = vrot.slane %v839_v51, %v6069_v50 }
 0x432   : > { %4485 = vmatpush3.msra.mxu0 %v6011_v43  ;;  %4486 = vmatprep.mubr.msk.f32.mxu0 %vm5511_vm1, %v6972_v11 }
 0x433   : > { %4489 = vmatprep.subr.mxu0 %v6972_v11  ;;  %4711 = vmatprep.subr.bf16.mxu1 %v4710_v58 }
 0x435   : > { %4487 = vmatmul.mubr.msk.f32.vlgmr.msra.gmra.mrb[8].mxu0 %vm845_vm7, %v6057_v49  ;;  %4713 = vmatpush1.bf16.msra.mxu1 %v4712_v61 }
 0x436   : > { %4491 = vmatprep.mubr.msk.f32.mxu0 %vm5511_vm1, %v6972_v11  ;;  %4715 = vmatprep.subr.bf16.mxu1 %v4714_v0  ;;  %v1151_v0 = vrot.slane %v839_v51, %v6075_v57 }
 0x439   : > { %4717 = vmatpush1.bf16.msra.mxu1 %v4716_v4 }
 0x43a   : > { %4719 = vmatprep.subr.bf16.mxu1 %v4718_v7 }
 0x43d   : > { %4721 = vmatpush1.bf16.msra.mxu1 %v4720_v12  ;;  %v1304_v12 = vrot.slane %v839_v51, %v6082_v2  ;;  %v6115_v51 = vsub.s32 6, %v6002_v39 }
 0x43e   : > { %4723 = vmatprep.subr.bf16.mxu1 %v4722_v15 }
 0x441   : > { %4725 = vmatpush1.bf16.msra.mxu1 %v4724_v18  ;;  %v1310_v18 = vrot.slane %v6087_v13, %v6066_v41 }
 0x442   : > { %4727 = vmatprep.subr.bf16.mxu1 %v4726_v22 }
 0x445   : > { %4729 = vmatpush1.bf16.msra.mxu1 %v4728_v26  ;;  %v747_v26 = vld [vmem:[#allocation17 + $0x8] sm:$0xff] }
 0x446   : > { %4731 = vmatprep.subr.bf16.mxu1 %v4730_v27  ;;  %v1354_v27 = vrot.slane %v6087_v13, %v6069_v50  ;;  %v1358_v28 = vrot.slane %v747_v26, %v6069_v50 }
 0x449   : > { %4733 = vmatpush1.bf16.msra.mxu1 %v4732_v33 }
 0x44a   : > { %4735 = vmatprep.subr.bf16.mxu1 %v4734_v34 }
 0x44d   : > { %4737 = vmatpush1.bf16.msra.mxu1 %v4736_v40  ;;  %v6112_v40 = vsel %vm631_vm13, 1.0, %v6972_v11  ;;  %vm1917_vm13 = vcmp.eq.s32.totalorder %v6002_v39, 5 }
 0x44e   : > { %4762 = vmatprep.subr.bf16.mxu1 %v6974_v9 }
 0x4fc   : > { %v915_v52 = vpop.f32.mrb[2].mxu0 }
 0x4fd   : > { %v4463_v53 = vpop.f32.mrb[3].mxu0 }
 0x4fe   : > { %v1070_v56 = vpop.f32.mrb[2].mxu1 }
 0x4ff   : > { %v4473_v58 = vpop.f32.mrb[3].mxu1 }
 0x500   : > { %v988_v59 = vpop.f32.mrb[4].mxu0  ;;  %v6130_v58 = vsel %vm632_vm14, 1.0, %v6972_v11  ;;  %vm1935_vm14 = vcmp.eq.s32.totalorder %v6002_v39, 6 }
 0x501   : > { %v994_v60 = vsel %vm601_vm12, %v915_v52, %v988_v59  ;;  %v4468_v61 = vpop.f32.mrb[5].mxu0 }
 0x502   : > { %v999_v63 = vmul.f32 %v998_v55, %v994_v60  ;;  %v1223_v1 = vpop.f32.mrb[4].mxu1 }
 0x503   : > { %v4483_v4 = vpop.f32.mrb[5].mxu1 }
 0x504   : > { %v1000_v5 = vadd.f32 %v999_v63, %v844_v62  ;;  %v1143_v6 = vpop.f32.mrb[6].mxu0 }
 0x505   : > { %v1147_v7 = vsel %vm601_vm12, %v1070_v56, %v1143_v6  ;;  %v4478_v8 = vpop.f32.mrb[7].mxu0 }
 0x506   : > { %v1152_v10 = vmul.f32 %v1151_v0, %v1147_v7  ;;  %v6143_v0 = vsub.s32 5, %v6002_v39  ;;  %v6155_v8 = vsub.s32 4, %v6002_v39 }
 0x508   : > { %v1153_v43 = vadd.f32 %v1152_v10, %v1000_v5  ;;  %v1296_v14 = vpop.f32.mrb[8].mxu0 }
 0x509   : > { %v1300_v15 = vsel %vm601_vm12, %v1223_v1, %v1296_v14  ;;  %v4488_v16 = vpop.f32.mrb[9].mxu0 }
 0x50a   : > { %v1305_v17 = vmul.f32 %v1304_v12, %v1300_v15 }
 0x50c   : > { %v1306_v19 = vadd.f32 %v1305_v17, %v1153_v43 }
 0x50e   : > { %v1311_v20 = vadd.f32 %v1310_v18, %v1306_v19 }
 0x510   : > { %v4315_v21 = vmul.f32 -1.442695, %v1311_v20 }
 0x512   : > { %5028 = vpow2.f32 %v4315_v21 }
 0x51c   : > { %v5029_v22 = vpop.eup %5028 }
 0x51d   : > { %v1315_v23 = vadd.f32 1.0, %v5029_v22 }
 0x51f   : > { %5030 = vrcp.f32 %v1315_v23 }
 0x529   : > { %v5031_v24 = vpop.eup %5030 }
 0x52a   : > { %v6093_v25 = vmul.f32 %v5031_v24, %v1311_v20  ;;  %v629_v20 = vadd.s32 16, %v6002_v39 }
 0x52c   : > { %1424 = vmatmul.mubr.f32.vlgmr.msra.gmra.mrb[6].mxu1 %v6093_v25  ;;  %vm633_vm15 = vcmp.eq.s32.totalorder %v629_v20, %v6000_v38 }
 0x52d   : > { %4547 = vmatprep.mubr.msk.f32.mxu1 %vm5511_vm1, %v6972_v11 }
 0x5ff   : > { %v1425_v31 = vpop.f32.mrb[6].mxu1 }
 0x600   : > { %v6107_v33 = vadd.f32 %v1425_v31, %v1354_v27  ;;  %v1427_v34 = vpop.f32.mrb[7].mxu1 }
 0x601   : > { %v1428_v36 = vadd.f32 %v1427_v34, %v1358_v28 }
 0x602   : > { %v1433_v37 = vand.u32 2147483647, %v6107_v33  ;;  %v1430_v20 = vmax.f32 %v6107_v33, 0.0  ;;  %vm1431_vm5 = vcmp.ne.f32.partialorder %v6107_v33, %v6107_v33 }
 0x603   : > { %v6118_v52 = vrot.slane %v1428_v36, %v6069_v50  ;;  %v6121_v53 = vrot.slane %v1428_v36, %v6066_v41  ;;  %v6124_v54 = vrot.slane %v1428_v36, %v6075_v57  ;;  %v6127_v55 = vrot.slane %v1428_v36, %v6105_v32 }
 0x604   : > { %v1434_v56 = vsub.f32 0.0, %v1433_v37  ;;  %v6137_v62 = vrot.slane %v1428_v36, %v6082_v2  ;;  %v6140_v63 = vrot.slane %v1428_v36, %v6115_v51  ;;  %v6152_v7 = vrot.slane %v1428_v36, %v6143_v0 }
 0x605   : > { %v1675_v59 = vmul.f32 %v6112_v40, %v6118_v52  ;;  %v1655_v60 = vmul.f32 %v6112_v40, %v6121_v53  ;;  %v1695_v5 = vmul.f32 %v6112_v40, %v6124_v54  ;;  %v1796_v6 = vmul.f32 %v6130_v58, %v6127_v55 }
 0x606   : > { %v1435_v61 = vmul.f32 1.442695, %v1434_v56  ;;  %v1715_v43 = vmul.f32 %v6112_v40, %v6137_v62  ;;  %v1776_v14 = vmul.f32 %v6130_v58, %v6140_v63  ;;  %v1716_v15 = vmul.f32 %v6130_v58, %v6137_v62 }
 0x607   : > { %v1679_v1 = vsel %vm757_vm4, %v1675_v59, 0.0  ;;  %v1659_v4 = vsel %vm757_vm4, %v1655_v60, 0.0  ;;  %v1699_v10 = vsel %vm757_vm4, %v1695_v5, 0.0  ;;  %v1802_v12 = vsel %vm757_vm4, %v1796_v6, 0.0 }
 0x608   : > { %5032 = vpow2.f32 %v1435_v61  ;;  %1680 = vadd.xlane.f32.xlu0 %v1679_v1  ;;  %1660 = vadd.xlane.f32.xlu1 %v1659_v4  ;;  %v1719_v16 = vsel %vm757_vm4, %v1715_v43, 0.0  ;;  %v1782_v17 = vsel %vm757_vm4, %v1776_v14, 0.0  ;;  %v1756_v18 = vmul.f32 %v6130_v58, %v6152_v7 }
 0x609   : > { %v6170_v19 = vrot.slane %v1428_v36, %v6155_v8  ;;  %v1722_v22 = vsel %vm757_vm4, %v1716_v15, 0.0  ;;  %v1696_v24 = vmul.f32 %v6130_v58, %v6124_v54  ;;  %v1676_v31 = vmul.f32 %v6130_v58, %v6118_v52 }
 0x60a   : > { %v1762_v23 = vsel %vm757_vm4, %v1756_v18, 0.0  ;;  %v6187_v36 = vsel %vm633_vm15, 1.0, %v6972_v11  ;;  %v630_v56 = vadd.s32 24, %v6002_v39  ;;  %v1755_v1 = vmul.f32 %v6112_v40, %v6152_v7 }
 0x60b   : > { %v1736_v26 = vmul.f32 %v6130_v58, %v6170_v19  ;;  %v1702_v28 = vsel %vm757_vm4, %v1696_v24, 0.0  ;;  %v1735_v34 = vmul.f32 %v6112_v40, %v6170_v19  ;;  %7016 = vst [vmem:[#allocation31_spill] sm:$0xff] %v6187_v36  ;;  %v1682_v59 = vsel %vm757_vm4, %v1676_v31, 0.0 }
 0x60c   : > { %1700 = vadd.xlane.f32.xlu0 %v1699_v10  ;;  %1803 = vadd.xlane.f32.xlu1 %v1802_v12  ;;  %v1657_v61 = vmul.f32 %v6187_v36, %v6121_v53  ;;  %v604_v6 = vadd.s32 %v6002_v39, %v6000_v38  ;;  %vm634_vm0 = vcmp.eq.s32.totalorder %v630_v56, %v6000_v38  ;;  %v1759_v14 = vsel %vm757_vm4, %v1755_v1, 0.0 }
 0x60d   : > { %v1742_v30 = vsel %vm757_vm4, %v1736_v26, 0.0  ;;  %v1739_v60 = vsel %vm757_vm4, %v1735_v34, 0.0  ;;  %v1677_v10 = vmul.f32 %v6187_v36, %v6118_v52  ;;  %v1775_v15 = vmul.f32 %v6112_v40, %v6140_v63 }
 0x60e   : > { %v1665_v43 = vsel %vm757_vm4, %v1657_v61, 0.0  ;;  %v6206_v18 = vsel %vm634_vm0, 1.0, %v6972_v11  ;;  %vm605_vm3 = vcmp.eq.s32.totalorder %v604_v6, 7  ;;  %v1656_v56 = vmul.f32 %v6130_v58, %v6121_v53 }
 0x60f   : > { %7017 = vst [vmem:[#allocation32_spill] sm:$0xff] %v6206_v18  ;;  %v1779_v24 = vsel %vm757_vm4, %v1775_v15, 0.0  ;;  %v1738_v61 = vmul.f32 %v6206_v18, %v6170_v19  ;;  %v1758_v1 = vmul.f32 %v6206_v18, %v6152_v7  ;;  %v1718_v6 = vmul.f32 %v6206_v18, %v6137_v62 }
 0x610   : > { %1720 = vadd.xlane.f32.xlu0 %v1719_v16  ;;  %1783 = vadd.xlane.f32.xlu1 %v1782_v17  ;;  %v1795_v15 = vmul.f32 %v6112_v40, %v6127_v55  ;;  %vm1953_vm15 = vcmp.eq.s32.totalorder %v6002_v39, 7  ;;  %vm2238_vm0 = vcmask 523264  }
 0x612   : > { %v5033_v21 = vpop.eup %5032 }
 0x613   : > { %v1437_v27 = vadd.f32 1.0, %v5033_v21  ;;  %v1440_v37 = vmul.f32 -0.5, %v5033_v21  ;;  %v1443_v5 = vand.u32 2147483647, %v5033_v21 }
 0x614   : > { %1723 = vadd.xlane.f32.xlu0 %v1722_v22  ;;  %1763 = vadd.xlane.f32.xlu1 %v1762_v23  ;;  %v1685_v22 = vsel %vm757_vm4, %v1677_v10, 0.0  ;;  %v1717_v10 = vmul.f32 %v6187_v36, %v6137_v62  ;;  %v1678_v62 = vmul.f32 %v6206_v18, %v6118_v52 }
 0x615   : > { %5034 = vlog2.f32 %v1437_v27  ;;  %v1441_v4 = vadd.f32 1.0, %v1440_v37  ;;  %vm1444_vm2 = vcmp.lt.f32.partialorder %v1443_v5, 0.0004427343  ;;  %v1697_v27 = vmul.f32 %v6187_v36, %v6124_v54 }
 0x616   : > { %v1768_v5 = vsel %vm757_vm4, %v1758_v1, 0.0 }
 0x617   : > { %v1442_v17 = vmul.f32 %v5033_v21, %v1441_v4  ;;  %v6218_v21 = vsel %vm605_vm3, 1.0, %v6972_v11  ;;  %v1705_v34 = vsel %vm757_vm4, %v1697_v27, 0.0  ;;  %v1748_v4 = vsel %vm757_vm4, %v1738_v61, 0.0 }
 0x618   : > { %1703 = vadd.xlane.f32.xlu0 %v1702_v28  ;;  %1743 = vadd.xlane.f32.xlu1 %v1742_v30  ;;  %v1798_v28 = vmul.f32 %v6206_v18, %v6127_v55 }
 0x61a   : > { %v1808_v37 = vsel %vm757_vm4, %v1798_v28, 0.0  ;;  %v1797_v28 = vmul.f32 %v6187_v36, %v6127_v55 }
 0x61c   : > { %1683 = vadd.xlane.f32.xlu0 %v1682_v59  ;;  %1740 = vadd.xlane.f32.xlu1 %v1739_v60  ;;  %v1662_v59 = vsel %vm757_vm4, %v1656_v56, 0.0 }
 0x61f   : > { %v5035_v12 = vpop.eup %5034 }
 0x620   : > { %1666 = vadd.xlane.f32.xlu0 %v1665_v43  ;;  %1760 = vadd.xlane.f32.xlu1 %v1759_v14  ;;  %v1439_v16 = vmul.f32 0.6931472, %v5035_v12  ;;  %v1728_v12 = vsel %vm757_vm4, %v1718_v6, 0.0  ;;  %v1725_v43 = vsel %vm757_vm4, %v1717_v10, 0.0  ;;  %v1698_v14 = vmul.f32 %v6206_v18, %v6124_v54 }
 0x622   : > { %v1445_v23 = vsel %vm1444_vm2, %v1442_v17, %v1439_v16  ;;  %v1708_v16 = vsel %vm757_vm4, %v1698_v14, 0.0  ;;  %v1799_v17 = vsel %vm757_vm4, %v1795_v15, 0.0  ;;  %v6303_v14 = vld [vmem:[#allocation11] sm:$0xff] }
 0x623   : > { %v1446_v26 = vadd.f32 %v1445_v23, %v1430_v20  ;;  %v1737_v20 = vmul.f32 %v6187_v36, %v6170_v19  ;;  %v1658_v23 = vmul.f32 %v6206_v18, %v6121_v53  ;;  %v1777_v19 = vmul.f32 %v6187_v36, %v6140_v63 }
 0x624   : > { %1686 = vadd.xlane.f32.xlu0 %v1685_v22  ;;  %1780 = vadd.xlane.f32.xlu1 %v1779_v24  ;;  %v1688_v22 = vsel %vm757_vm4, %v1678_v62, 0.0  ;;  %v1757_v24 = vmul.f32 %v6187_v36, %v6152_v7  ;;  %v1805_v53 = vsel %vm757_vm4, %v1797_v28, 0.0 }
 0x625   : > { %v6221_v30 = vsel %vm1431_vm5, %v6107_v33, %v1446_v26  ;;  %v1778_v33 = vmul.f32 %v6206_v18, %v6140_v63  ;;  %v1745_v54 = vsel %vm757_vm4, %v1737_v20, 0.0  ;;  %v1668_v26 = vsel %vm757_vm4, %v1658_v23, 0.0 }
 0x626   : > { %v6225_v31 = vmul.f32 %v6221_v30, %v6093_v25  ;;  %4490 = vmatpush3.msra.mxu0 %v6221_v30  ;;  %v1765_v52 = vsel %vm757_vm4, %v1757_v24, 0.0  ;;  %v1785_v27 = vsel %vm757_vm4, %v1777_v19, 0.0 }
 0x627   : > { %4492 = vmatmul.mubr.msk.f32.vlgmr.msra.gmra.mrb[10].mxu0 %vm845_vm7, %v6218_v21  ;;  %4494 = vmatprep.subr.mxu0 %v6972_v11  ;;  %v1788_v60 = vsel %vm757_vm4, %v1778_v33, 0.0 }
 0x628   : > { %1706 = vadd.xlane.f32.xlu0 %v1705_v34  ;;  %1809 = vadd.xlane.f32.xlu1 %v1808_v37 }
 0x629   : > { %4495 = vmatpush3.msra.mxu0 %v6225_v31  ;;  %4496 = vmatprep.mubr.msk.f32.mxu0 %vm5511_vm1, %v6972_v11 }
 0x62a   : > { %4499 = vmatprep.subr.mxu0 %v6972_v11 }
 0x62b   : > { %4497 = vmatmul.mubr.msk.f32.vlgmr.msra.gmra.mrb[12].mxu0 %vm845_vm7, %v6218_v21 }
 0x62c   : > { %1663 = vadd.xlane.f32.xlu0 %v1662_v59  ;;  %1789 = vadd.xlane.f32.xlu1 %v1788_v60 }
 0x62d   : > { %4501 = vmatprep.mubr.msk.f32.mxu0 %vm5511_vm1, %v6972_v11 }
 0x630   : > { %1749 = vadd.xlane.f32.xlu0 %v1748_v4  ;;  %1769 = vadd.xlane.f32.xlu1 %v1768_v5 }
 0x634   : > { %1729 = vadd.xlane.f32.xlu0 %v1728_v12  ;;  %1726 = vadd.xlane.f32.xlu1 %v1725_v43 }
 0x638   : > { %1709 = vadd.xlane.f32.xlu0 %v1708_v16  ;;  %1800 = vadd.xlane.f32.xlu1 %v1799_v17 }
 0x63c   : > { %1689 = vadd.xlane.f32.xlu0 %v1688_v22  ;;  %1746 = vadd.xlane.f32.xlu1 %v1745_v54 }
 0x640   : > { %1669 = vadd.xlane.f32.xlu0 %v1668_v26  ;;  %1766 = vadd.xlane.f32.xlu1 %v1765_v52 }
 0x644   : > { %1786 = vadd.xlane.f32.xlu1 %v1785_v27 }
 0x648   : > { %1806 = vadd.xlane.f32.xlu1 %v1805_v53 }
 0x695   : > { %v1661_v7 = vpop.xlane.xlu1 %1660  ;;  %v1681_v56 = vpop.xlane.xlu0 %1680 }
 0x699   : > { %v1804_v34 = vpop.xlane.xlu1 %1803  ;;  %v6285_v59 = vpop.xlane.xlu0 %1700 }
 0x69d   : > { %v1784_v37 = vpop.xlane.xlu1 %1783  ;;  %v6289_v60 = vpop.xlane.xlu0 %1720 }
 0x69e   : > { %v1829_v36 = vsel %vm601_vm12, %v1681_v56, %v1784_v37 }
 0x6a1   : > { %v6283_v33 = vpop.xlane.xlu1 %1763  ;;  %v6293_v1 = vpop.xlane.xlu0 %1723 }
 0x6a5   : > { %v6287_v63 = vpop.xlane.xlu1 %1743  ;;  %v6297_v4 = vpop.xlane.xlu0 %1703 }
 0x6a9   : > { %v6291_v61 = vpop.xlane.xlu1 %1740  ;;  %v6301_v6 = vpop.xlane.xlu0 %1683 }
 0x6ad   : > { %v6295_v55 = vpop.xlane.xlu1 %1760  ;;  %v1667_v43 = vpop.xlane.xlu0 %1666 }
 0x6b1   : > { %v6299_v5 = vpop.xlane.xlu1 %1780 }
 0x6b5   : > { %v1810_v10 = vpop.xlane.xlu1 %1809 }
 0x6b9   : > { %v1790_v24 = vpop.xlane.xlu1 %1789 }
 0x6bd   : > { %v1770_v53 = vpop.xlane.xlu1 %1769 }
 0x6c1   : > { %v1727_v11 = vpop.xlane.xlu1 %1726 }
 0x6fa   : > { %v1519_v12 = vpop.f32.mrb[10].mxu0 }
 0x6fb   : > { %v6308_v15 = vsel %vm601_vm12, %v6221_v30, %v1519_v12  ;;  %v4493_v16 = vpop.f32.mrb[11].mxu0  ;;  %v1687_v30 = vpop.xlane.xlu0 %1686 }
 0x6fc   : > { %v1598_v17 = vrot.slane %v6308_v15, %v6066_v41  ;;  %v1603_v62 = vrot.slane %v6308_v15, %v6069_v50  ;;  %v1608_v54 = vrot.slane %v6308_v15, %v6075_v57  ;;  %v1613_v27 = vrot.slane %v6308_v15, %v6082_v2 }
 0x6fd   : > { %v1618_v12 = vrot.slane %v6308_v15, %v6155_v8 }
 0x6fe   : > { %v1599_v20 = vmul.f32 %v1598_v17, %v6303_v14  ;;  %v1604_v22 = vmul.f32 %v1603_v62, %v6303_v14  ;;  %v1590_v23 = vpop.f32.mrb[12].mxu0  ;;  %v1609_v19 = vmul.f32 %v1608_v54, %v6303_v14  ;;  %v1614_v16 = vmul.f32 %v1613_v27, %v6303_v14 }
 0x6ff   : > { %v4498_v26 = vpop.f32.mrb[13].mxu0  ;;  %v6327_v62 = vsel %vm601_vm12, %v6225_v31, %v1590_v23 }
 0x700   : > { %v1635_v52 = vmul.f32 1.442695, %v1599_v20  ;;  %v1637_v28 = vmul.f32 1.442695, %v1604_v22  ;;  %v1639_v17 = vmul.f32 1.442695, %v1609_v19  ;;  %v1707_v20 = vpop.xlane.xlu0 %1706  ;;  %v1817_v54 = vrot.slane %v6327_v62, %v6066_v41 }
 0x701   : > { %v1619_v26 = vmul.f32 %v1618_v12, %v6303_v14  ;;  %v1623_v22 = vrot.slane %v6308_v15, %v6143_v0  ;;  %v1811_v19 = vsel %vm601_vm12, %v1661_v7, %v1804_v34  ;;  %v1835_v9 = vrot.slane %v6327_v62, %v6069_v50  ;;  %v6347_v34 = vpop.xlane.xlu1 %1800 }
 0x702   : > { %5036 = vpow2.f32 %v1635_v52  ;;  %v1641_v52 = vmul.f32 1.442695, %v1614_v16  ;;  %v1818_v23 = vmul.f32 %v1817_v54, %v1811_v19  ;;  %v1628_v12 = vrot.slane %v6308_v15, %v6115_v51 }
 0x703   : > { %5038 = vpow2.f32 %v1637_v28  ;;  %v1624_v3 = vmul.f32 %v1623_v22, %v6303_v14  ;;  %v1812_v7 = vsel %vm601_vm12, %v1667_v43, %v1810_v10  ;;  %v1836_v19 = vmul.f32 %v1835_v9, %v1829_v36 }
 0x704   : > { %5040 = vpow2.f32 %v1639_v17  ;;  %v6336_v28 = vpop.xlane.xlu0 %1663  ;;  %v1643_v17 = vmul.f32 1.442695, %v1619_v26  ;;  %v1853_v22 = vrot.slane %v6327_v62, %v6075_v57  ;;  %v1629_v18 = vmul.f32 %v1628_v12, %v6303_v14 }
 0x705   : > { %5042 = vpow2.f32 %v1641_v52  ;;  %v1633_v26 = vrot.slane %v6308_v15, %v6105_v32  ;;  %v1645_v52 = vmul.f32 1.442695, %v1624_v3  ;;  %v1830_v9 = vsel %vm601_vm12, %v1687_v30, %v1790_v24 }
 0x706   : > { %5044 = vpow2.f32 %v1643_v17  ;;  %v1871_v36 = vrot.slane %v6327_v62, %v6082_v2  ;;  %v1647_v17 = vmul.f32 1.442695, %v1629_v18 }
 0x707   : > { %v1634_v3 = vmul.f32 %v1633_v26, %v6303_v14  ;;  %5046 = vpow2.f32 %v1645_v52 }
 0x708   : > { %5048 = vpow2.f32 %v1647_v17 }
 0x70c   : > { %v5037_v27 = vpop.eup %5036 }
 0x70d   : > { %v1813_v31 = vmul.f32 0.0, %v5037_v27  ;;  %v5039_v29 = vpop.eup %5038 }
 0x70f   : > { %v1819_v16 = vadd.f32 %v1818_v23, %v1813_v31  ;;  %v1750_v31 = vpop.xlane.xlu0 %1749  ;;  %v5041_v23 = vpop.eup %5040 }
 0x710   : > { %v5043_v30 = vpop.eup %5042 }
 0x711   : > { %v1820_v54 = vmul.f32 %v1819_v16, %v1812_v7  ;;  %v1831_v27 = vmul.f32 %v5039_v29, %v1819_v16  ;;  %v1847_v29 = vsel %vm601_vm12, %v6285_v59, %v6283_v33  ;;  %v1865_v16 = vsel %vm601_vm12, %v6289_v60, %v6287_v63  ;;  %v1747_v33 = vpop.xlane.xlu1 %1746 }
 0x712   : > { %v1854_v15 = vmul.f32 %v1853_v22, %v1847_v29  ;;  %v5045_v29 = vpop.eup %5044 }
 0x713   : > { %v1821_v37 = vrot.slane %v1820_v54, 4  ;;  %v1837_v56 = vadd.f32 %v1836_v19, %v1831_v27  ;;  %v1848_v27 = vsel %vm601_vm12, %v1707_v20, %v1770_v53  ;;  %v1872_v19 = vmul.f32 %v1871_v36, %v1865_v16  ;;  %v1730_v14 = vpop.xlane.xlu0 %1729 }
 0x714   : > { %v1883_v53 = vsel %vm601_vm12, %v6291_v61, %v6293_v1  ;;  %v1866_v20 = vsel %vm601_vm12, %v1727_v11, %v1750_v31  ;;  %v1901_v11 = vsel %vm601_vm12, %v6295_v55, %v6297_v4  ;;  %v1919_v55 = vsel %vm601_vm12, %v6299_v5, %v6301_v6 }
 0x715   : > { %v1838_v10 = vmul.f32 %v1837_v56, %v1830_v9  ;;  %v1849_v43 = vmul.f32 %v5041_v23, %v1837_v56  ;;  %v1822_v12 = vadd.f32 %v1821_v37, %v1820_v54  ;;  %v1889_v54 = vrot.slane %v6327_v62, %v6155_v8  ;;  %v1767_v36 = vpop.xlane.xlu1 %1766 }
 0x716   : > { %v1649_v37 = vmul.f32 1.442695, %v1634_v3  ;;  %v1907_v9 = vrot.slane %v6327_v62, %v6143_v0  ;;  %v1943_v5 = vrot.slane %v6327_v62, %v6105_v32 }
 0x717   : > { %v1839_v59 = vrot.slane %v1838_v10, 4  ;;  %v1855_v7 = vadd.f32 %v1854_v15, %v1849_v43  ;;  %v1823_v24 = vrot.slane %v1822_v12, 2  ;;  %v1890_v43 = vmul.f32 %v1889_v54, %v1883_v53  ;;  %v1710_v61 = vpop.xlane.xlu0 %1709 }
 0x718   : > { %5050 = vpow2.f32 %v1649_v37 }
 0x719   : > { %v1856_v22 = vmul.f32 %v1855_v7, %v1848_v27  ;;  %v1867_v18 = vmul.f32 %v5043_v30, %v1855_v7  ;;  %v1824_v26 = vadd.f32 %v1823_v24, %v1822_v12  ;;  %v1840_v52 = vadd.f32 %v1839_v59, %v1838_v10  ;;  %v5047_v59 = vpop.eup %5046 }
 0x71a   : > { %v1884_v7 = vsel %vm601_vm12, %v1747_v33, %v1730_v14  ;;  %v1908_v24 = vmul.f32 %v1907_v9, %v1901_v11  ;;  %v1925_v30 = vrot.slane %v6327_v62, %v6115_v51  ;;  %v1787_v14 = vpop.xlane.xlu1 %1786 }
 0x71b   : > { %v1873_v63 = vadd.f32 %v1872_v19, %v1867_v18  ;;  %v1825_v60 = vrot.slane %v1824_v26, 1  ;;  %v1841_v56 = vrot.slane %v1840_v52, 2  ;;  %v1857_v23 = vrot.slane %v1856_v22, 4 }
 0x71d   : > { %v1885_v10 = vmul.f32 %v5045_v29, %v1873_v63  ;;  %v1842_v15 = vadd.f32 %v1841_v56, %v1840_v52  ;;  %v1858_v12 = vadd.f32 %v1857_v23, %v1856_v22  ;;  %v1826_v3 = vadd.f32 %v1825_v60, %v1824_v26  ;;  %v5049_v60 = vpop.eup %5048  ;;  %v1690_v29 = vpop.xlane.xlu0 %1689 }
 0x71e   : > { %v1874_v17 = vmul.f32 %v1873_v63, %v1866_v20  ;;  %v1902_v56 = vsel %vm601_vm12, %v1767_v36, %v1710_v61  ;;  %v1926_v23 = vmul.f32 %v1925_v30, %v1919_v55  ;;  %v1920_v62 = vsel %vm601_vm12, %v1787_v14, %v1690_v29 }
 0x71f   : > { %v1891_v1 = vadd.f32 %v1890_v43, %v1885_v10  ;;  %v1843_v31 = vrot.slane %v1842_v15, 1  ;;  %v1859_v16 = vrot.slane %v1858_v12, 2  ;;  %v1828_v4 = vsel %vm1827_vm6, %v1826_v3, 0.0 }
 0x720   : > { %v1875_v27 = vrot.slane %v1874_v17, 4  ;;  %v1937_v43 = vsel %vm601_vm12, %v6347_v34, %v6336_v28 }
 0x721   : > { %v1844_v19 = vadd.f32 %v1843_v31, %v1842_v15  ;;  %v1860_v54 = vadd.f32 %v1859_v16, %v1858_v12  ;;  %v1892_v22 = vmul.f32 %v1891_v1, %v1884_v7  ;;  %v1903_v18 = vmul.f32 %v5047_v59, %v1891_v1  ;;  %v1807_v31 = vpop.xlane.xlu1 %1806 }
 0x722   : > { %v1876_v33 = vadd.f32 %v1875_v27, %v1874_v17  ;;  %v5051_v11 = vpop.eup %5050  ;;  %v1944_v1 = vmul.f32 %v1943_v5, %v1937_v43  ;;  %v2033_v43 = vld [vmem:[#allocation13] sm:$0xff] }
 0x723   : > { %v1846_v26 = vsel %vm1845_vm8, %v1844_v19, %v1828_v4  ;;  %v1861_v52 = vrot.slane %v1860_v54, 1  ;;  %v1893_v37 = vrot.slane %v1892_v22, 4  ;;  %v1909_v63 = vadd.f32 %v1908_v24, %v1903_v18  ;;  %v1670_v24 = vpop.xlane.xlu0 %1669 }
 0x724   : > { %v1877_v6 = vrot.slane %v1876_v33, 2 }
 0x725   : > { %v1862_v53 = vadd.f32 %v1861_v52, %v1860_v54  ;;  %v1894_v20 = vadd.f32 %v1893_v37, %v1892_v22  ;;  %v1910_v9 = vmul.f32 %v1909_v63, %v1902_v56  ;;  %v1921_v10 = vmul.f32 %v5049_v60, %v1909_v63 }
 0x726   : > { %v1878_v15 = vadd.f32 %v1877_v6, %v1876_v33  ;;  %v1938_v22 = vsel %vm601_vm12, %v1807_v31, %v1670_v24  ;;  %v2037_v31 = vld [vmem:[#allocation13 + $0x20] sm:$0xff] }
 0x727   : > { %v1864_v12 = vsel %vm1863_vm9, %v1862_v53, %v1846_v26  ;;  %v1895_v36 = vrot.slane %v1894_v20, 2  ;;  %v1911_v3 = vrot.slane %v1910_v9, 4  ;;  %v1927_v17 = vadd.f32 %v1926_v23, %v1921_v10  ;;  %v2041_v24 = vld [vmem:[#allocation13 + $0x40] sm:$0xff] }
 0x728   : > { %v1879_v61 = vrot.slane %v1878_v15, 1 }
 0x729   : > { %v1896_v16 = vadd.f32 %v1895_v36, %v1894_v20  ;;  %v1912_v59 = vadd.f32 %v1911_v3, %v1910_v9  ;;  %v1928_v7 = vmul.f32 %v1927_v17, %v1920_v62  ;;  %v1939_v28 = vmul.f32 %v5051_v11, %v1927_v17  ;;  %v2035_v17 = vld [vmem:[#allocation13 + $0x10] sm:$0xff]  ;;  %v2036_v11 = vld [vmem:[#allocation13 + $0x18] sm:$0xff] }
 0x72a   : > { %v1880_v34 = vadd.f32 %v1879_v61, %v1878_v15  ;;  %v2034_v15 = vld [vmem:[#allocation13 + $0x8] sm:$0xff]  ;;  %v7018_v62 = vmov 0.0|0.0   ;;  %v4742_v61 = vpack.c.bf16 %v2036_v11, %v2035_v17 }
 0x72b   : > { %v1897_v30 = vrot.slane %v1896_v16, 1  ;;  %v1913_v27 = vrot.slane %v1912_v59, 2  ;;  %v1929_v19 = vrot.slane %v1928_v7, 4  ;;  %v1945_v54 = vadd.f32 %v1944_v1, %v1939_v28  ;;  %v2040_v28 = vld [vmem:[#allocation13 + $0x38] sm:$0xff] }
 0x72c   : > { %v1882_v18 = vsel %vm1881_vm10, %v1880_v34, %v1864_v12  ;;  %v4739_v36 = vpack.c.bf16 %v2034_v15, %v2033_v43  ;;  %v7019_v1 = vmov 0.0  }
 0x72d   : > { %v1898_v55 = vadd.f32 %v1897_v30, %v1896_v16  ;;  %v1914_v4 = vadd.f32 %v1913_v27, %v1912_v59  ;;  %v1930_v33 = vadd.f32 %v1929_v19, %v1928_v7  ;;  %v1946_v14 = vmul.f32 %v1945_v54, %v1938_v22  ;;  %v2038_v16 = vld [vmem:[#allocation13 + $0x28] sm:$0xff]  ;;  %v2039_v7 = vld [vmem:[#allocation13 + $0x30] sm:$0xff]  ;;  %v2044_v54 = vld [vmem:[#allocation13 + $0x58] sm:$0xff] }
 0x72e   : > { %v4745_v59 = vpack.c.bf16 %v2038_v16, %v2037_v31  ;;  %v4748_v34 = vpack.c.bf16 %v2040_v28, %v2039_v7  ;;  %v2042_v30 = vld [vmem:[#allocation13 + $0x48] sm:$0xff]  ;;  %v2043_v19 = vld [vmem:[#allocation13 + $0x50] sm:$0xff] }
 0x72f   : > { %v1900_v26 = vsel %vm1899_vm11, %v1898_v55, %v1882_v18  ;;  %v1915_v52 = vrot.slane %v1914_v4, 1  ;;  %v1931_v37 = vrot.slane %v1930_v33, 2  ;;  %v1947_v63 = vrot.slane %v1946_v14, 4  ;;  %v2045_v18 = vld [vmem:[#allocation13 + $0x60] sm:$0xff]  ;;  %v2046_v55 = vld [vmem:[#allocation13 + $0x68] sm:$0xff]  ;;  %v2146_v31 = vld [vmem:[#allocation14 + $0x10] sm:$0xff] }
 0x730   : > { %v4751_v27 = vpack.c.bf16 %v2042_v30, %v2041_v24  ;;  %v4754_v22 = vpack.c.bf16 %v2044_v54, %v2043_v19  ;;  %v2137_v24 = vrot.slane %v6087_v13, %v6082_v2  ;;  %v2142_v19 = vrot.slane %v6087_v13, %v6155_v8  ;;  %v2226_v54 = vld [vmem:[#allocation16] sm:$0xff] }
 0x731   : > { %v1916_v60 = vadd.f32 %v1915_v52, %v1914_v4  ;;  %v1932_v56 = vadd.f32 %v1931_v37, %v1930_v33  ;;  %v1948_v23 = vadd.f32 %v1947_v63, %v1946_v14  ;;  %v4757_v4 = vpack.c.bf16 %v2046_v55, %v2045_v18  ;;  %v2047_v33 = vld [vmem:[#allocation13 + $0x70] sm:$0xff]  ;;  %v2048_v14 = vld [vmem:[#allocation13 + $0x78] sm:$0xff] }
 0x732   : > { %v4308_v52 = vmul.f32 -1.442695, %v6013_v44 }
 0x733   : > { %v1918_v5 = vsel %vm1917_vm13, %v1916_v60, %v1900_v26  ;;  %v1933_v6 = vrot.slane %v1932_v56, 1  ;;  %v1949_v29 = vrot.slane %v1948_v23, 2  ;;  %v4760_v26 = vpack.c.bf16 %v2048_v14, %v2047_v33  ;;  %v2228_v33 = vld [vmem:[#allocation16 + $0x10] sm:$0xff]  ;;  %v2229_v14 = vld [vmem:[#allocation16 + $0x18] sm:$0xff] }
 0x734   : > { %5052 = vpow2.f32 %v4308_v52  ;;  %v2029_v60 = vrot.slane %v6087_v13, %v6075_v57  ;;  %v2230_v52 = vld [vmem:[#allocation16 + $0x20] sm:$0xff] }
 0x735   : > { %v1934_v53 = vadd.f32 %v1933_v6, %v1932_v56  ;;  %v1950_v20 = vadd.f32 %v1949_v29, %v1948_v23 }
 0x737   : > { %v1936_v9 = vsel %vm1935_vm14, %v1934_v53, %v1918_v5  ;;  %v1951_v10 = vrot.slane %v1950_v20, 1  ;;  %v2030_v5 = vmul.f32 %v2029_v60, %v6093_v25  ;;  %v2232_v60 = vld [vmem:[#allocation16 + $0x30] sm:$0xff] }
 0x739   : > { %v1952_v12 = vadd.f32 %v1951_v10, %v1950_v20 }
 0x73b   : > { %v1954_v3 = vsel %vm1953_vm15, %v1952_v12, %v1936_v9 }
 0x73c   : > { %4500 = vmatpush3.msra.mxu0 %v1954_v3 }
 0x73d   : > { %4502 = vmatmul.mubr.msk.f32.vlgmr.msra.gmra.mrb[14].mxu0 %vm845_vm7, %v6218_v21  ;;  %4738 = vmatprep.subr.bf16.mxu0 %v7018_v62 }
 0x73e   : > { %4740 = vmatpush3.bf16.msra.mxu0 %v4739_v36  ;;  %4536 = vmatprep.mubr.msk.f32.mxu0 %vm5511_vm1, %v7019_v1  ;;  %v5053_v37 = vpop.eup %5052 }
 0x73f   : > { %4741 = vmatprep.subr.bf16.mxu0 %v7018_v62  ;;  %v835_v63 = vadd.f32 1.0, %v5053_v37  ;;  %v2231_v37 = vld [vmem:[#allocation16 + $0x28] sm:$0xff] }
 0x741   : > { %5054 = vrcp.f32 %v835_v63  ;;  %v4775_v63 = vpack.c.bf16 %v2231_v37, %v2230_v52 }
 0x742   : > { %4743 = vmatpush3.bf16.msra.mxu0 %v4742_v61  ;;  %v2145_v61 = vld [vmem:[#allocation14 + $0x8] sm:$0xff] }
 0x743   : > { %4744 = vmatprep.subr.bf16.mxu0 %v7018_v62 }
 0x746   : > { %4746 = vmatpush3.bf16.msra.mxu0 %v4745_v59  ;;  %v2147_v59 = vld [vmem:[#allocation14 + $0x18] sm:$0xff] }
 0x747   : > { %4747 = vmatprep.subr.bf16.mxu0 %v7018_v62  ;;  %v4766_v7 = vpack.c.bf16 %v2147_v59, %v2146_v31  ;;  %v2341_v31 = vld [vmem:[#allocation7 + $0x40] sm:$0xff]  ;;  %v2343_v59 = vld [vmem:[#allocation7 + $0x50] sm:$0xff] }
 0x74a   : > { %4749 = vmatpush3.bf16.msra.mxu0 %v4748_v34 }
 0x74b   : > { %4750 = vmatprep.subr.bf16.mxu0 %v7018_v62  ;;  %v5055_v56 = vpop.eup %5054 }
 0x74c   : > { %v838_v53 = vmul.f32 %v5055_v56, %v6013_v44  ;;  %v2144_v44 = vld [vmem:[#allocation14] sm:$0xff]  ;;  %v2233_v56 = vld [vmem:[#allocation16 + $0x38] sm:$0xff] }
 0x74d   : > { %v4763_v16 = vpack.c.bf16 %v2145_v61, %v2144_v44  ;;  %v2342_v44 = vld [vmem:[#allocation7 + $0x48] sm:$0xff]  ;;  %v2344_v61 = vld [vmem:[#allocation7 + $0x58] sm:$0xff] }
 0x74e   : > { %4752 = vmatpush3.bf16.msra.mxu0 %v4751_v27 }
 0x74f   : > { %4753 = vmatprep.subr.bf16.mxu0 %v7018_v62  ;;  %4764 = vmatpush3.bf16.msra.mxu1 %v4763_v16  ;;  %v4780_v16 = vpack.c.bf16 %v2344_v61, %v2342_v44 }
 0x750   : > { %4765 = vmatprep.subr.bf16.mxu1 %v7018_v62 }
 0x752   : > { %4755 = vmatpush3.bf16.msra.mxu0 %v4754_v22  ;;  %v2227_v22 = vld [vmem:[#allocation16 + $0x8] sm:$0xff] }
 0x753   : > { %4756 = vmatprep.subr.bf16.mxu0 %v7018_v62  ;;  %4767 = vmatpush3.bf16.msra.mxu1 %v4766_v7  ;;  %v4769_v55 = vpack.c.bf16 %v2227_v22, %v2226_v54  ;;  %v2346_v7 = vld [vmem:[#allocation7 + $0x68] sm:$0xff] }
 0x754   : > { %4768 = vmatprep.subr.bf16.mxu1 %v7018_v62 }
 0x756   : > { %4758 = vmatpush3.bf16.msra.mxu0 %v4757_v4 }
 0x757   : > { %4759 = vmatprep.subr.bf16.mxu0 %v7018_v62 }
 0x75a   : > { %4761 = vmatpush3.bf16.msra.mxu0 %v4760_v26  ;;  %v4772_v26 = vpack.c.bf16 %v2229_v14, %v2228_v33 }
 0x75b   : > { %4781 = vmatprep.subr.bf16.mxu0 %v4780_v16  ;;  %v2909_v16 = vld [vmem:[#allocation10 + $0x190] sm:$0xff] }
 0x810   : > { %v2021_v23 = vpop.f32.mrb[14].mxu0 }
 0x811   : > { %v2025_v6 = vsel %vm601_vm12, %v1954_v3, %v2021_v23  ;;  %v4503_v29 = vpop.f32.mrb[15].mxu0  ;;  %v4778_v23 = vpack.c.bf16 %v2233_v56, %v2232_v60  ;;  %v2893_v60 = vld [vmem:[#allocation10 + $0x110] sm:$0xff] }
 0x812   : > { %v2031_v20 = vadd.f32 %v2030_v5, %v2025_v6  ;;  %v2151_v5 = vrot.slane %v6087_v13, %v6105_v32 }
 0x814   : > { %v2032_v9 = vmul.f32 %v2031_v20, %v838_v53 }
 0x816   : > { %4537 = vmatmul.mubr.f32.vlgmr.msra.gmra.mrb[16].mxu0 %v2032_v9  ;;  %v4320_v9 = vld [vmem:[#allocation17 + $0x10] ss:$0 sm:$0xff] }
 0x817   : > { %2416 = vmatprep.mubr.f32.mxu0 %v7019_v1 }
 0x8e9   : > { %v2115_v10 = vpop.f32.mrb[16].mxu0 }
 0x8ea   : > { %v2119_v43 = vadd.f32 %v2115_v10, %v5994_v35  ;;  %v4538_v15 = vpop.f32.mrb[17].mxu0 }
 0x8ec   : > { %v2120_v12 = vsel %vm757_vm4, %v2119_v43, 0.0 }
 0x8ed   : > { %2121 = vadd.xlane.f32.xlu0 %v2120_v12 }
 0x97a   : > { %v2122_v36 = vpop.xlane.xlu0 %2121 }
 0x97b   : > { %v2124_v25 = vmul.f32 0.03125, %v2122_v36 }
 0x97d   : > { %v2125_v17 = vsub.f32 %v2119_v43, %v2124_v25 }
 0x97f   : > { %v2126_v11 = vmul.f32 %v2125_v17, %v2125_v17 }
 0x981   : > { %v2127_v3 = vsel %vm757_vm4, %v2126_v11, 0.0 }
 0x982   : > { %2128 = vadd.xlane.f32.xlu1 %v2127_v3 }
 0xa0f   : > { %v2129_v35 = vpop.xlane.xlu1 %2128 }
 0xa10   : > { %v2130_v28 = vmul.f32 0.03125, %v2129_v35  ;;  %v2348_v35 = vld [vmem:[#allocation7 + $0x78] sm:$0xff] }
 0xa12   : > { %v2131_v34 = vadd.f32 1e-05, %v2130_v28  ;;  %v4782_v28 = vpack.c.bf16 %v2343_v59, %v2341_v31  ;;  %v2907_v31 = vld [vmem:[#allocation10 + $0x180] sm:$0xff]  ;;  %v2912_v59 = vld [vmem:[#allocation10 + $0x1a8] sm:$0xff] }
 0xa14   : > { %5056 = vrsqrt.f32 %v2131_v34  ;;  %v4784_v34 = vpack.c.bf16 %v2348_v35, %v2346_v7  ;;  %4783 = vmatpush1.bf16.msra.mxu0 %v4782_v28  ;;  %v2914_v7 = vld [vmem:[#allocation10 + $0x1b8] sm:$0xff]  ;;  %v4806_v35 = vpack.c.bf16 %v2909_v16, %v2907_v31 }
 0xa15   : > { %v4808_v28 = vpack.c.bf16 %v2914_v7, %v2912_v59 }
 0xa16   : > { %4785 = vmatprep.subr.bf16.mxu0 %v4784_v34  ;;  %v2911_v34 = vld [vmem:[#allocation10 + $0x1a0] sm:$0xff] }
 0xa1e   : > { %v5057_v30 = vpop.eup %5056 }
 0xa1f   : > { %v2133_v27 = vmul.f32 %v5057_v30, %v2125_v17  ;;  %v2347_v30 = vld [vmem:[#allocation7 + $0x70] sm:$0xff] }
 0xa21   : > { %v2138_v18 = vmul.f32 %v2137_v24, %v2133_v27  ;;  %v2345_v24 = vld [vmem:[#allocation7 + $0x60] sm:$0xff] }
 0xa22   : > { %v4786_v27 = vpack.c.bf16 %v2347_v30, %v2345_v24  ;;  %v2913_v24 = vld [vmem:[#allocation10 + $0x1b0] sm:$0xff]  ;;  %v2916_v30 = vld [vmem:[#allocation10 + $0x1c8] sm:$0xff] }
 0xa23   : > { %v2143_v4 = vadd.f32 %v2142_v19, %v2138_v18  ;;  %v5094_v18 = vld [vmem:[#allocation17] sm:$0xff] }
 0xa24   : > { %4787 = vmatpush1.bf16.msra.mxu0 %v4786_v27  ;;  %v2334_v14 = vrot.slane %v5094_v18, %v6115_v51  ;;  %v2918_v27 = vld [vmem:[#allocation10 + $0x1d8] sm:$0xff] }
 0xa25   : > { %4548 = vmatmul.mubr.msk.f32.vlgmr.msra.gmra.mrb[8].mxu1 %vm757_vm4, %v2143_v4  ;;  %4569 = vmatprep.subr.mxu0 %v7019_v1 }
 0xa26   : > { %4770 = vmatpush3.bf16.msra.mxu1 %v4769_v55  ;;  %4566 = vmatprep.mubr.msk.f32.mxu1 %vm5511_vm1, %v7019_v1  ;;  %v2329_v55 = vrot.slane %v5094_v18, %v6143_v0  ;;  %v2917_v18 = vld [vmem:[#allocation10 + $0x1d0] sm:$0xff] }
 0xa27   : > { %4771 = vmatprep.subr.bf16.mxu1 %v7018_v62 }
 0xa2a   : > { %4773 = vmatpush3.bf16.msra.mxu1 %v4772_v26 }
 0xa2b   : > { %4774 = vmatprep.subr.bf16.mxu1 %v7018_v62 }
 0xa2e   : > { %4776 = vmatpush3.bf16.msra.mxu1 %v4775_v63 }
 0xa2f   : > { %4777 = vmatprep.subr.bf16.mxu1 %v7018_v62 }
 0xa32   : > { %4779 = vmatpush3.bf16.msra.mxu1 %v4778_v23  ;;  %v2896_v23 = vld [vmem:[#allocation10 + $0x128] sm:$0xff] }
 0xa33   : > { %4574 = vmatprep.subr.mxu1 %v7019_v1 }
 0xaf8   : > { %v2221_v6 = vpop.f32.mrb[8].mxu1 }
 0xaf9   : > { %v2222_v29 = vadd.f32 %v2221_v6, %v2151_v5  ;;  %v4549_v53 = vpop.f32.mrb[9].mxu1  ;;  %v2898_v5 = vld [vmem:[#allocation10 + $0x138] sm:$0xff] }
 0xafa   : > { %v4792_v6 = vpack.c.bf16 %v2898_v5, %v2896_v23 }
 0xafb   : > { %v2225_v20 = vmax.f32 %v2222_v29, 0.0  ;;  %v2897_v29 = vld [vmem:[#allocation10 + $0x130] sm:$0xff] }
 0xafd   : > { %4567 = vmatmul.mubr.msk.f32.vlgmr.msra.gmra.mrb[10].mxu1 %vm2238_vm0, %v2225_v20  ;;  %v2902_v20 = vld [vmem:[#allocation10 + $0x158] sm:$0xff] }
 0xafe   : > { %4576 = vmatprep.mubr.msk.f32.mxu1 %vm5511_vm1, %v7019_v1 }
 0xbd0   : > { %v2308_v10 = vpop.f32.mrb[10].mxu1 }
 0xbd1   : > { %v2309_v43 = vadd.f32 %v4320_v9, %v2308_v10  ;;  %v4568_v15 = vpop.f32.mrb[11].mxu1  ;;  %v2899_v9 = vld [vmem:[#allocation10 + $0x140] sm:$0xff] }
 0xbd2   : > { %v2904_v15 = vld [vmem:[#allocation10 + $0x168] sm:$0xff] }
 0xbd3   : > { %v2312_v12 = vadd.f32 %v2309_v43, %v2143_v4  ;;  %v2901_v43 = vld [vmem:[#allocation10 + $0x150] sm:$0xff] }
 0xbd5   : > { %v2313_v36 = vsel %vm757_vm4, %v2312_v12, 0.0 }
 0xbd6   : > { %2314 = vadd.xlane.f32.xlu0 %v2313_v36  ;;  %v4798_v36 = vpack.c.bf16 %v2901_v43, %v2899_v9 }
 0xc63   : > { %v2315_v25 = vpop.xlane.xlu0 %2314 }
 0xc64   : > { %v2316_v13 = vmul.f32 0.03125, %v2315_v25 }
 0xc66   : > { %v2317_v17 = vsub.f32 %v2312_v12, %v2316_v13  ;;  %v2906_v12 = vld [vmem:[#allocation10 + $0x178] sm:$0xff]  ;;  %v2903_v13 = vld [vmem:[#allocation10 + $0x160] sm:$0xff] }
 0xc67   : > { %v4800_v25 = vpack.c.bf16 %v2906_v12, %v2904_v15 }
 0xc68   : > { %v2318_v11 = vmul.f32 %v2317_v17, %v2317_v17 }
 0xc6a   : > { %v2319_v3 = vsel %vm757_vm4, %v2318_v11, 0.0  ;;  %v2908_v11 = vld [vmem:[#allocation10 + $0x188] sm:$0xff] }
 0xc6b   : > { %2320 = vadd.xlane.f32.xlu1 %v2319_v3  ;;  %v2910_v3 = vld [vmem:[#allocation10 + $0x198] sm:$0xff] }
 0xc6c   : > { %v4804_v61 = vpack.c.bf16 %v2910_v3, %v2908_v11 }
 0xcf8   : > { %v2321_v19 = vpop.xlane.xlu1 %2320 }
 0xcf9   : > { %v2322_v54 = vmul.f32 0.03125, %v2321_v19  ;;  %v4810_v19 = vpack.c.bf16 %v2913_v24, %v2911_v34 }
 0xcfb   : > { %v2323_v22 = vadd.f32 1e-05, %v2322_v54  ;;  %v4812_v54 = vpack.c.bf16 %v2918_v27, %v2916_v30  ;;  %v2338_v27 = vld [vmem:[#allocation17 + $0x28] sm:$0xff] }
 0xcfd   : > { %5058 = vrsqrt.f32 %v2323_v22  ;;  %v2915_v22 = vld [vmem:[#allocation10 + $0x1c0] sm:$0xff] }
 0xd07   : > { %v5059_v4 = vpop.eup %5058 }
 0xd08   : > { %v2325_v33 = vmul.f32 %v5059_v4, %v2317_v17  ;;  %v2905_v17 = vld [vmem:[#allocation10 + $0x170] sm:$0xff]  ;;  %v2922_v4 = vld [vmem:[#allocation10 + $0x1f8] sm:$0xff] }
 0xd09   : > { %v4802_v44 = vpack.c.bf16 %v2905_v17, %v2903_v13  ;;  %v6527_v13 = vld [vmem:[#allocation17 + $0x20] sm:$0xff] }
 0xd0a   : > { %v2330_v26 = vmul.f32 %v2329_v55, %v2325_v33  ;;  %v2920_v55 = vld [vmem:[#allocation10 + $0x1e8] sm:$0xff]  ;;  %v4814_v33 = vpack.c.bf16 %v2917_v18, %v2915_v22  ;;  %v2881_v16 = vrot.slane %v6527_v13, %v6066_v41 }
 0xd0c   : > { %v6473_v52 = vadd.f32 %v2334_v14, %v2330_v26  ;;  %v4816_v14 = vpack.c.bf16 %v2922_v4, %v2920_v55  ;;  %v2919_v26 = vld [vmem:[#allocation10 + $0x1e0] sm:$0xff] }
 0xd0e   : > { %4322 = vmatmul.mubr.msk.f32.vlgmr.msra.gmra.mrb[18].mxu0 %vm757_vm4, %v6473_v52 }
 0xd0f   : > { %4571 = vmatprep.mubr.msk.f32.mxu0 %vm5511_vm1, %v7019_v1 }
 0xde1   : > { %v6479_v37 = vpop.f32.mrb[18].mxu0 }
 0xde2   : > { %v6481_v63 = vpop.f32.mrb[19].mxu0  ;;  %4570 = vmatpush3.msra.mxu0 %v6479_v37  ;;  %4575 = vmatpush3.msra.mxu1 %v6479_v37 }
 0xde3   : > { %4572 = vmatmul.mubr.msk.f32.vlgmr.msra.gmra.mrb[20].mxu0 %vm845_vm7, %v6009_v42  ;;  %4577 = vmatmul.mubr.msk.f32.vlgmr.msra.gmra.mrb[12].mxu1 %vm845_vm7, %v6026_v46  ;;  %v2892_v42 = vld [vmem:[#allocation10 + $0x108] sm:$0xff] }
 0xde4   : > { %4579 = vmatprep.subr.mxu0 %v7019_v1  ;;  %4584 = vmatprep.subr.mxu1 %v7019_v1 }
 0xde5   : > { %4580 = vmatpush3.msra.mxu0 %v6479_v37  ;;  %4585 = vmatpush3.msra.mxu1 %v6479_v37 }
 0xde6   : > { %4581 = vmatprep.mubr.msk.f32.mxu0 %vm5511_vm1, %v7019_v1  ;;  %4586 = vmatprep.mubr.msk.f32.mxu1 %vm5511_vm1, %v7019_v1 }
 0xde7   : > { %4589 = vmatprep.subr.mxu0 %v7019_v1  ;;  %4594 = vmatprep.subr.mxu1 %v7019_v1 }
 0xde8   : > { %4582 = vmatmul.mubr.msk.f32.vlgmr.msra.gmra.mrb[22].mxu0 %vm845_vm7, %v6018_v45  ;;  %4587 = vmatmul.mubr.msk.f32.vlgmr.msra.gmra.mrb[14].mxu1 %vm845_vm7, %v6045_v48  ;;  %v2894_v45 = vld [vmem:[#allocation10 + $0x118] sm:$0xff]  ;;  %v2891_v48 = vld [vmem:[#allocation10 + $0x100] sm:$0xff] }
 0xde9   : > { %4590 = vmatpush3.msra.mxu0 %v6479_v37  ;;  %4595 = vmatpush3.msra.mxu1 %v6479_v37  ;;  %v4788_v46 = vpack.c.bf16 %v2894_v45, %v2892_v42  ;;  %v4790_v56 = vpack.c.bf16 %v2893_v60, %v2891_v48  ;;  %v2921_v42 = vld [vmem:[#allocation10 + $0x1f0] sm:$0xff] }
 0xdea   : > { %4591 = vmatprep.mubr.msk.f32.mxu0 %vm5511_vm1, %v7019_v1  ;;  %4596 = vmatprep.mubr.msk.f32.mxu1 %vm5511_vm1, %v7019_v1  ;;  %v4818_v45 = vpack.c.bf16 %v2921_v42, %v2919_v26 }
 0xdeb   : > { %4599 = vmatprep.subr.mxu1 %v7019_v1  ;;  %4789 = vmatprep.subr.bf16.mxu0 %v4788_v46  ;;  %v2431_v46 = vld [vmem:[#allocation8 + $0x4] sm:$0xf] }
 0xdec   : > { %4592 = vmatmul.mubr.msk.f32.vlgmr.msra.gmra.mrb[24].mxu0 %vm845_vm7, %v6035_v47  ;;  %4597 = vmatmul.mubr.msk.f32.vlgmr.msra.gmra.mrb[16].mxu1 %vm845_vm7, %v6057_v49  ;;  %v2895_v47 = vld [vmem:[#allocation10 + $0x120] sm:$0xff]  ;;  %v2900_v49 = vld [vmem:[#allocation10 + $0x148] sm:$0xff]  ;;  %v2435_v48 = vrot.slane %v2431_v46, %v6066_v41  ;;  %v2581_v60 = vrot.slane %v2431_v46, %v6069_v50 }
 0xded   : > { %2995 = vmatprep.mubr.f32.mxu0 %v7019_v1  ;;  %4601 = vmatprep.mubr.msk.f32.mxu1 %vm5511_vm1, %v7019_v1  ;;  %v4794_v53 = vpack.c.bf16 %v2897_v29, %v2895_v47  ;;  %v4796_v10 = vpack.c.bf16 %v2902_v20, %v2900_v49  ;;  %v2728_v49 = vrot.slane %v2431_v46, %v6075_v57 }
 0xdee   : > { %4791 = vmatpush1.bf16.msra.mxu0 %v4790_v56  ;;  %v2436_v29 = vmul.f32 %v2435_v48, %v6479_v37 }
 0xdef   : > { %4793 = vmatprep.subr.bf16.mxu0 %v4792_v6 }
 0xdf2   : > { %4795 = vmatpush1.bf16.msra.mxu0 %v4794_v53 }
 0xdf3   : > { %4797 = vmatprep.subr.bf16.mxu0 %v4796_v10 }
 0xdf6   : > { %4799 = vmatpush1.bf16.msra.mxu0 %v4798_v36 }
 0xdf7   : > { %4801 = vmatprep.subr.bf16.mxu0 %v4800_v25  ;;  %v2875_v25 = vrot.slane %v2431_v46, %v6082_v2 }
 0xdfa   : > { %4803 = vmatpush1.bf16.msra.mxu0 %v4802_v44 }
 0xdfb   : > { %4805 = vmatprep.subr.bf16.mxu0 %v4804_v61 }
 0xdfe   : > { %4807 = vmatpush1.bf16.msra.mxu0 %v4806_v35 }
 0xdff   : > { %4809 = vmatprep.subr.bf16.mxu0 %v4808_v28 }
 0xe02   : > { %4811 = vmatpush1.bf16.msra.mxu0 %v4810_v19  ;;  %v2926_v19 = vrot.slane %v6527_v13, %v6069_v50 }
 0xe03   : > { %4813 = vmatprep.subr.bf16.mxu0 %v4812_v54  ;;  %v2930_v54 = vrot.slane %v2338_v27, %v6069_v50 }
 0xe06   : > { %4815 = vmatpush1.bf16.msra.mxu0 %v4814_v33 }
 0xe07   : > { %4817 = vmatprep.subr.bf16.mxu0 %v4816_v14 }
 0xe0a   : > { %4819 = vmatpush1.bf16.msra.mxu0 %v4818_v45 }
 0xe0b   : > { %4844 = vmatprep.subr.bf16.mxu0 %v7018_v62 }
 0xeb6   : > { %v2503_v56 = vpop.f32.mrb[20].mxu0  ;;  %v2573_v23 = vpop.f32.mrb[12].mxu1 }
 0xeb7   : > { %v2577_v5 = vsel %vm601_vm12, %v2503_v56, %v2573_v23  ;;  %v4573_v6 = vpop.f32.mrb[21].mxu0  ;;  %v4578_v47 = vpop.f32.mrb[13].mxu1 }
 0xeb8   : > { %v2582_v53 = vmul.f32 %v2581_v60, %v2577_v5 }
 0xeba   : > { %v2583_v20 = vadd.f32 %v2582_v53, %v2436_v29 }
 0xebb   : > { %v2650_v9 = vpop.f32.mrb[22].mxu0  ;;  %v2720_v10 = vpop.f32.mrb[14].mxu1 }
 0xebc   : > { %v2724_v43 = vsel %vm601_vm12, %v2650_v9, %v2720_v10  ;;  %v4583_v15 = vpop.f32.mrb[23].mxu0  ;;  %v4588_v12 = vpop.f32.mrb[15].mxu1 }
 0xebd   : > { %v2729_v36 = vmul.f32 %v2728_v49, %v2724_v43 }
 0xebf   : > { %v2730_v17 = vadd.f32 %v2729_v36, %v2583_v20  ;;  %v2797_v11 = vpop.f32.mrb[24].mxu0  ;;  %v2867_v3 = vpop.f32.mrb[16].mxu1 }
 0xec0   : > { %v2871_v37 = vsel %vm601_vm12, %v2797_v11, %v2867_v3  ;;  %v4593_v44 = vpop.f32.mrb[25].mxu0  ;;  %v4598_v61 = vpop.f32.mrb[17].mxu1 }
 0xec1   : > { %v2876_v31 = vmul.f32 %v2875_v25, %v2871_v37 }
 0xec3   : > { %v2877_v59 = vadd.f32 %v2876_v31, %v2730_v17 }
 0xec5   : > { %v2882_v7 = vadd.f32 %v2881_v16, %v2877_v59 }
 0xec7   : > { %v4330_v35 = vmul.f32 -1.442695, %v2882_v7 }
 0xec9   : > { %5060 = vpow2.f32 %v4330_v35 }
 0xed3   : > { %v5061_v28 = vpop.eup %5060 }
 0xed4   : > { %v2886_v34 = vadd.f32 1.0, %v5061_v28 }
 0xed6   : > { %5062 = vrcp.f32 %v2886_v34 }
 0xee0   : > { %v5063_v24 = vpop.eup %5062 }
 0xee1   : > { %v6533_v30 = vmul.f32 %v5063_v24, %v2882_v7 }
 0xee3   : > { %2996 = vmatmul.mubr.f32.vlgmr.msra.gmra.mrb[26].mxu0 %v6533_v30 }
 0xee4   : > { %4657 = vmatprep.mubr.msk.f32.mxu0 %vm5511_vm1, %v7019_v1 }
 0xfb6   : > { %v2997_v22 = vpop.f32.mrb[26].mxu0 }
 0xfb7   : > { %v6541_v18 = vadd.f32 %v2997_v22, %v2926_v19  ;;  %v2999_v55 = vpop.f32.mrb[27].mxu0 }
 0xfb8   : > { %v3000_v4 = vadd.f32 %v2999_v55, %v2930_v54  ;;  %v7020_v55 = vld [vmem:[#allocation32_spill] sm:$0xff] }
 0xfb9   : > { %v3005_v33 = vand.u32 2147483647, %v6541_v18  ;;  %vm3003_vm3 = vcmp.ne.f32.partialorder %v6541_v18, %v6541_v18 }
 0xfba   : > { %v6545_v14 = vrot.slane %v3000_v4, %v6105_v32  ;;  %v6548_v26 = vrot.slane %v3000_v4, %v6066_v41  ;;  %v6551_v42 = vrot.slane %v3000_v4, %v6115_v51  ;;  %v6554_v45 = vrot.slane %v3000_v4, %v6069_v50 }
 0xfbb   : > { %v3006_v46 = vsub.f32 0.0, %v3005_v33  ;;  %v6561_v23 = vrot.slane %v3000_v4, %v6143_v0  ;;  %v6564_v5 = vrot.slane %v3000_v4, %v6075_v57  ;;  %v6575_v20 = vrot.slane %v3000_v4, %v6155_v8 }
 0xfbc   : > { %v3366_v48 = vmul.f32 %v6130_v58, %v6545_v14  ;;  %v3225_v60 = vmul.f32 %v6112_v40, %v6548_v26  ;;  %v3346_v29 = vmul.f32 %v6130_v58, %v6551_v42  ;;  %v3245_v53 = vmul.f32 %v6112_v40, %v6554_v45 }
 0xfbd   : > { %v3007_v56 = vmul.f32 1.442695, %v3006_v46  ;;  %v3326_v49 = vmul.f32 %v6130_v58, %v6561_v23  ;;  %v3265_v43 = vmul.f32 %v6112_v40, %v6564_v5  ;;  %v6582_v15 = vrot.slane %v3000_v4, %v6082_v2 }
 0xfbe   : > { %v3372_v6 = vsel %vm757_vm4, %v3366_v48, 0.0  ;;  %v3229_v47 = vsel %vm757_vm4, %v3225_v60, 0.0  ;;  %v3352_v9 = vsel %vm757_vm4, %v3346_v29, 0.0  ;;  %v3249_v10 = vsel %vm757_vm4, %v3245_v53, 0.0  ;;  %v7021_v60 = vld [vmem:[#allocation31_spill] sm:$0xff] }
 0xfbf   : > { %5064 = vpow2.f32 %v3007_v56  ;;  %3373 = vadd.xlane.f32.xlu1 %v3372_v6  ;;  %3230 = vadd.xlane.f32.xlu0 %v3229_v47  ;;  %v3306_v12 = vmul.f32 %v6130_v58, %v6575_v20  ;;  %v3332_v36 = vsel %vm757_vm4, %v3326_v49, 0.0  ;;  %v3269_v25 = vsel %vm757_vm4, %v3265_v43, 0.0 }
 0xfc0   : > { %v3285_v17 = vmul.f32 %v6112_v40, %v6582_v15  ;;  %v3305_v44 = vmul.f32 %v6112_v40, %v6575_v20  ;;  %v3286_v61 = vmul.f32 %v6130_v58, %v6582_v15  ;;  %v3325_v7 = vmul.f32 %v6112_v40, %v6561_v23 }
 0xfc1   : > { %v3312_v3 = vsel %vm757_vm4, %v3306_v12, 0.0  ;;  %v3266_v35 = vmul.f32 %v6130_v58, %v6564_v5  ;;  %v3345_v27 = vmul.f32 %v6112_v40, %v6551_v42  ;;  %v3246_v19 = vmul.f32 %v6130_v58, %v6554_v45 }
 0xfc2   : > { %v3289_v37 = vsel %vm757_vm4, %v3285_v17, 0.0  ;;  %v3309_v16 = vsel %vm757_vm4, %v3305_v44, 0.0  ;;  %v3292_v59 = vsel %vm757_vm4, %v3286_v61, 0.0  ;;  %v3329_v34 = vsel %vm757_vm4, %v3325_v7, 0.0 }
 0xfc3   : > { %3353 = vadd.xlane.f32.xlu1 %v3352_v9  ;;  %3250 = vadd.xlane.f32.xlu0 %v3249_v10  ;;  %v3272_v24 = vsel %vm757_vm4, %v3266_v35, 0.0  ;;  %v3368_v4 = vmul.f32 %v7020_v55, %v6545_v14  ;;  %v3349_v46 = vsel %vm757_vm4, %v3345_v27, 0.0  ;;  %v3252_v48 = vsel %vm757_vm4, %v3246_v19, 0.0 }
 0xfc4   : > { %v3227_v56 = vmul.f32 %v7021_v60, %v6548_v26  ;;  %v3002_v29 = vmax.f32 %v6541_v18, 0.0  ;;  %v3348_v43 = vmul.f32 %v7020_v55, %v6551_v42  ;;  %v3247_v12 = vmul.f32 %v7021_v60, %v6554_v45 }
 0xfc5   : > { %v3378_v53 = vsel %vm757_vm4, %v3368_v4, 0.0  ;;  %v3287_v61 = vmul.f32 %v7021_v60, %v6582_v15  ;;  %v3365_v7 = vmul.f32 %v6112_v40, %v6545_v14  ;;  %v3308_v35 = vmul.f32 %v7020_v55, %v6575_v20 }
 0xfc6   : > { %v3235_v9 = vsel %vm757_vm4, %v3227_v56, 0.0  ;;  %v3358_v17 = vsel %vm757_vm4, %v3348_v43, 0.0  ;;  %v3327_v19 = vmul.f32 %v7021_v60, %v6561_v23  ;;  %v3248_v4 = vmul.f32 %v7020_v55, %v6554_v45 }
 0xfc7   : > { %3333 = vadd.xlane.f32.xlu1 %v3332_v36  ;;  %3270 = vadd.xlane.f32.xlu0 %v3269_v25 }
 0xfc9   : > { %v5065_v11 = vpop.eup %5064 }
 0xfca   : > { %v3009_v31 = vadd.f32 1.0, %v5065_v11  ;;  %v3012_v28 = vmul.f32 -0.5, %v5065_v11  ;;  %v3015_v22 = vand.u32 2147483647, %v5065_v11 }
 0xfcb   : > { %3313 = vadd.xlane.f32.xlu1 %v3312_v3  ;;  %3290 = vadd.xlane.f32.xlu0 %v3289_v37  ;;  %v3328_v3 = vmul.f32 %v7020_v55, %v6561_v23  ;;  %v3258_v23 = vsel %vm757_vm4, %v3248_v4, 0.0 }
 0xfcc   : > { %5066 = vlog2.f32 %v3009_v31  ;;  %v3013_v54 = vadd.f32 1.0, %v3012_v28  ;;  %vm3016_vm2 = vcmp.lt.f32.partialorder %v3015_v22, 0.0004427343  ;;  %v3226_v31 = vmul.f32 %v6130_v58, %v6548_v26 }
 0xfcd   : > { %v3338_v37 = vsel %vm757_vm4, %v3328_v3, 0.0  ;;  %v3369_v28 = vsel %vm757_vm4, %v3365_v7, 0.0  ;;  %v3318_v58 = vsel %vm757_vm4, %v3308_v35, 0.0  ;;  %v3335_v22 = vsel %vm757_vm4, %v3327_v19, 0.0  ;;  %v6706_v3 = vld [vmem:[#allocation11 + $0x8] sm:$0xff] }
 0xfce   : > { %v3014_v47 = vmul.f32 %v5065_v11, %v3013_v54  ;;  %v3255_v11 = vsel %vm757_vm4, %v3247_v12, 0.0  ;;  %v3268_v54 = vmul.f32 %v7020_v55, %v6564_v5 }
 0xfcf   : > { %3310 = vadd.xlane.f32.xlu1 %v3309_v16  ;;  %3293 = vadd.xlane.f32.xlu0 %v3292_v59  ;;  %v3295_v16 = vsel %vm757_vm4, %v3287_v61, 0.0  ;;  %v3232_v59 = vsel %vm757_vm4, %v3226_v31, 0.0 }
 0xfd3   : > { %3330 = vadd.xlane.f32.xlu1 %v3329_v34  ;;  %3273 = vadd.xlane.f32.xlu0 %v3272_v24  ;;  %v3307_v34 = vmul.f32 %v7021_v60, %v6575_v20  ;;  %v3288_v24 = vmul.f32 %v7020_v55, %v6582_v15  ;;  %v3278_v20 = vsel %vm757_vm4, %v3268_v54, 0.0  ;;  %v3347_v15 = vmul.f32 %v7021_v60, %v6551_v42 }
 0xfd5   : > { %v3315_v27 = vsel %vm757_vm4, %v3307_v34, 0.0  ;;  %v3298_v40 = vsel %vm757_vm4, %v3288_v24, 0.0 }
 0xfd6   : > { %v5067_v33 = vpop.eup %5066 }
 0xfd7   : > { %3350 = vadd.xlane.f32.xlu1 %v3349_v46  ;;  %3253 = vadd.xlane.f32.xlu0 %v3252_v48  ;;  %v3011_v6 = vmul.f32 0.6931472, %v5067_v33  ;;  %v3355_v33 = vsel %vm757_vm4, %v3347_v15, 0.0  ;;  %v3228_v46 = vmul.f32 %v7020_v55, %v6548_v26 }
 0xfd9   : > { %v3017_v49 = vsel %vm3016_vm2, %v3014_v47, %v3011_v6  ;;  %v3238_v42 = vsel %vm757_vm4, %v3228_v46, 0.0 }
 0xfda   : > { %v3018_v10 = vadd.f32 %v3017_v49, %v3002_v29 }
 0xfdb   : > { %3379 = vadd.xlane.f32.xlu1 %v3378_v53  ;;  %3236 = vadd.xlane.f32.xlu0 %v3235_v9 }
 0xfdc   : > { %v6624_v36 = vsel %vm3003_vm3, %v6541_v18, %v3018_v10  ;;  %v3267_v18 = vmul.f32 %v7021_v60, %v6564_v5  ;;  %v3367_v5 = vmul.f32 %v7021_v60, %v6545_v14 }
 0xfdd   : > { %v6628_v25 = vmul.f32 %v6624_v36, %v6533_v30  ;;  %4600 = vmatpush3.msra.mxu1 %v6624_v36 }
 0xfde   : > { %4602 = vmatmul.mubr.msk.f32.vlgmr.msra.gmra.mrb[18].mxu1 %vm845_vm7, %v6218_v21  ;;  %4604 = vmatprep.subr.mxu1 %v7019_v1  ;;  %v3275_v44 = vsel %vm757_vm4, %v3267_v18, 0.0  ;;  %v3375_v48 = vsel %vm757_vm4, %v3367_v5, 0.0 }
 0xfdf   : > { %3359 = vadd.xlane.f32.xlu1 %v3358_v17  ;;  %3256 = vadd.xlane.f32.xlu0 %v3255_v11 }
 0xfe0   : > { %4605 = vmatpush3.msra.mxu1 %v6628_v25  ;;  %4606 = vmatprep.mubr.msk.f32.mxu1 %vm5511_vm1, %v7019_v1 }
 0xfe1   : > { %4609 = vmatprep.subr.mxu1 %v7019_v1 }
 0xfe2   : > { %4607 = vmatmul.mubr.msk.f32.vlgmr.msra.gmra.mrb[20].mxu1 %vm845_vm7, %v6218_v21 }
 0xfe3   : > { %3339 = vadd.xlane.f32.xlu1 %v3338_v37  ;;  %3276 = vadd.xlane.f32.xlu0 %v3275_v44 }
 0xfe4   : > { %4611 = vmatprep.mubr.msk.f32.mxu1 %vm5511_vm1, %v7019_v1 }
 0xfe7   : > { %3296 = vadd.xlane.f32.xlu1 %v3295_v16  ;;  %3233 = vadd.xlane.f32.xlu0 %v3232_v59 }
 0xfeb   : > { %3370 = vadd.xlane.f32.xlu1 %v3369_v28  ;;  %3319 = vadd.xlane.f32.xlu0 %v3318_v58 }
 0xfef   : > { %3316 = vadd.xlane.f32.xlu1 %v3315_v27  ;;  %3299 = vadd.xlane.f32.xlu0 %v3298_v40 }
 0xff3   : > { %3336 = vadd.xlane.f32.xlu1 %v3335_v22  ;;  %3279 = vadd.xlane.f32.xlu0 %v3278_v20 }
 0xff7   : > { %3356 = vadd.xlane.f32.xlu1 %v3355_v33  ;;  %3259 = vadd.xlane.f32.xlu0 %v3258_v23 }
 0xffb   : > { %3376 = vadd.xlane.f32.xlu1 %v3375_v48  ;;  %3239 = vadd.xlane.f32.xlu0 %v3238_v42 }
0x104c   : > { %v3374_v45 = vpop.xlane.xlu1 %3373  ;;  %v3231_v56 = vpop.xlane.xlu0 %3230 }
0x1050   : > { %v3354_v6 = vpop.xlane.xlu1 %3353  ;;  %v3251_v47 = vpop.xlane.xlu0 %3250 }
0x1054   : > { %v6686_v29 = vpop.xlane.xlu1 %3333  ;;  %v6688_v53 = vpop.xlane.xlu0 %3270 }
0x1058   : > { %v6690_v14 = vpop.xlane.xlu1 %3313  ;;  %v6692_v60 = vpop.xlane.xlu0 %3290 }
0x105c   : > { %v6694_v26 = vpop.xlane.xlu1 %3310  ;;  %v6696_v55 = vpop.xlane.xlu0 %3293 }
0x1060   : > { %v6698_v49 = vpop.xlane.xlu1 %3330  ;;  %v6700_v9 = vpop.xlane.xlu0 %3273 }
0x1064   : > { %v6702_v10 = vpop.xlane.xlu1 %3350  ;;  %v6704_v43 = vpop.xlane.xlu0 %3253 }
0x1068   : > { %v3380_v12 = vpop.xlane.xlu1 %3379  ;;  %v3237_v17 = vpop.xlane.xlu0 %3236 }
0x106c   : > { %v3360_v31 = vpop.xlane.xlu1 %3359  ;;  %v3257_v28 = vpop.xlane.xlu0 %3256 }
0x1070   : > { %v3340_v40 = vpop.xlane.xlu1 %3339  ;;  %v3277_v19 = vpop.xlane.xlu0 %3276 }
0x1074   : > { %v3297_v46 = vpop.xlane.xlu1 %3296  ;;  %v6737_v48 = vpop.xlane.xlu0 %3233 }
0x10b1   : > { %v3089_v11 = vpop.f32.mrb[18].mxu1 }
0x10b2   : > { %v6711_v18 = vsel %vm601_vm12, %v6624_v36, %v3089_v11  ;;  %v4603_v37 = vpop.f32.mrb[19].mxu1  ;;  %v3381_v11 = vsel %vm601_vm12, %v3231_v56, %v3374_v45  ;;  %v3382_v45 = vsel %vm601_vm12, %v3237_v17, %v3380_v12  ;;  %v6750_v56 = vpop.xlane.xlu1 %3370  ;;  %v3415_v12 = vsel %vm601_vm12, %v6688_v53, %v6686_v29 }
0x10b3   : > { %v3168_v44 = vrot.slane %v6711_v18, %v6066_v41  ;;  %v3173_v61 = vrot.slane %v6711_v18, %v6069_v50  ;;  %v3178_v7 = vrot.slane %v6711_v18, %v6075_v57  ;;  %v3183_v24 = vrot.slane %v6711_v18, %v6082_v2 }
0x10b4   : > { %v3188_v54 = vrot.slane %v6711_v18, %v6155_v8  ;;  %v3193_v23 = vrot.slane %v6711_v18, %v6143_v0  ;;  %v3399_v17 = vsel %vm601_vm12, %v3257_v28, %v3360_v31 }
0x10b5   : > { %v3169_v16 = vmul.f32 %v3168_v44, %v6706_v3  ;;  %v3174_v59 = vmul.f32 %v3173_v61, %v6706_v3  ;;  %v3160_v35 = vpop.f32.mrb[20].mxu1  ;;  %v3179_v34 = vmul.f32 %v3178_v7, %v6706_v3  ;;  %v3184_v22 = vmul.f32 %v3183_v24, %v6706_v3 }
0x10b6   : > { %v4608_v58 = vpop.f32.mrb[21].mxu1  ;;  %v6730_v15 = vsel %vm601_vm12, %v6628_v25, %v3160_v35  ;;  %v3189_v33 = vmul.f32 %v3188_v54, %v6706_v3  ;;  %v3194_v61 = vmul.f32 %v3193_v23, %v6706_v3  ;;  %v3317_v29 = vpop.xlane.xlu1 %3316 }
0x10b7   : > { %v3205_v36 = vmul.f32 1.442695, %v3169_v16  ;;  %v3207_v27 = vmul.f32 1.442695, %v3174_v59  ;;  %v3209_v20 = vmul.f32 1.442695, %v3179_v34  ;;  %v3387_v4 = vrot.slane %v6730_v15, %v6066_v41 }
0x10b8   : > { %v3211_v5 = vmul.f32 1.442695, %v3184_v22  ;;  %v3404_v44 = vrot.slane %v6730_v15, %v6069_v50  ;;  %v3198_v16 = vrot.slane %v6711_v18, %v6115_v51  ;;  %v3213_v59 = vmul.f32 1.442695, %v3189_v33 }
0x10b9   : > { %5068 = vpow2.f32 %v3205_v36  ;;  %v3388_v25 = vmul.f32 %v3387_v4, %v3381_v11  ;;  %v3398_v58 = vsel %vm601_vm12, %v3251_v47, %v3354_v6  ;;  %v3320_v36 = vpop.xlane.xlu0 %3319  ;;  %v3421_v54 = vrot.slane %v6730_v15, %v6075_v57 }
0x10ba   : > { %5070 = vpow2.f32 %v3207_v27  ;;  %v3405_v27 = vmul.f32 %v3404_v44, %v3398_v58  ;;  %v3199_v22 = vmul.f32 %v3198_v16, %v6706_v3  ;;  %v3215_v4 = vmul.f32 1.442695, %v3194_v61 }
0x10bb   : > { %5072 = vpow2.f32 %v3209_v20  ;;  %v3203_v20 = vrot.slane %v6711_v18, %v6105_v32  ;;  %v3438_v23 = vrot.slane %v6730_v15, %v6082_v2  ;;  %v3422_v11 = vmul.f32 %v3421_v54, %v3415_v12 }
0x10bc   : > { %5074 = vpow2.f32 %v3211_v5  ;;  %v3432_v44 = vsel %vm601_vm12, %v6692_v60, %v6690_v14 }
0x10bd   : > { %5076 = vpow2.f32 %v3213_v59  ;;  %v3300_v53 = vpop.xlane.xlu0 %3299  ;;  %v3416_v59 = vsel %vm601_vm12, %v3277_v19, %v3340_v40  ;;  %v3449_v40 = vsel %vm601_vm12, %v6694_v26, %v6696_v55  ;;  %v3433_v19 = vsel %vm601_vm12, %v3297_v46, %v3320_v36 }
0x10be   : > { %5078 = vpow2.f32 %v3215_v4  ;;  %v3337_v4 = vpop.xlane.xlu1 %3336  ;;  %v3466_v26 = vsel %vm601_vm12, %v6698_v49, %v6700_v9  ;;  %v3483_v49 = vsel %vm601_vm12, %v6702_v10, %v6704_v43  ;;  %v3506_v10 = vrot.slane %v6730_v15, %v6105_v32 }
0x10c3   : > { %v5069_v42 = vpop.eup %5068 }
0x10c4   : > { %v3383_v37 = vmul.f32 0.0, %v5069_v42  ;;  %v5071_v35 = vpop.eup %5070 }
0x10c5   : > { %v5073_v33 = vpop.eup %5072 }
0x10c6   : > { %v3389_v7 = vadd.f32 %v3388_v25, %v3383_v37  ;;  %v3204_v37 = vmul.f32 %v3203_v20, %v6706_v3  ;;  %v3217_v25 = vmul.f32 1.442695, %v3199_v22  ;;  %v5075_v16 = vpop.eup %5074  ;;  %v3455_v3 = vrot.slane %v6730_v15, %v6155_v8 }
0x10c7   : > { %v5077_v22 = vpop.eup %5076  ;;  %v3472_v20 = vrot.slane %v6730_v15, %v6143_v0 }
0x10c8   : > { %v3390_v34 = vmul.f32 %v3389_v7, %v3382_v45  ;;  %v3400_v24 = vmul.f32 %v5071_v35, %v3389_v7  ;;  %v3439_v7 = vmul.f32 %v3438_v23, %v3432_v44  ;;  %5080 = vpow2.f32 %v3217_v25  ;;  %v5079_v36 = vpop.eup %5078 }
0x10ca   : > { %v3391_v6 = vrot.slane %v3390_v34, 4  ;;  %v3406_v47 = vadd.f32 %v3405_v27, %v3400_v24  ;;  %v3219_v24 = vmul.f32 1.442695, %v3204_v37  ;;  %v3489_v37 = vrot.slane %v6730_v15, %v6115_v51 }
0x10cc   : > { %v3407_v5 = vmul.f32 %v3406_v47, %v3399_v17  ;;  %v3417_v42 = vmul.f32 %v5073_v33, %v3406_v47  ;;  %v3392_v18 = vadd.f32 %v3391_v6, %v3390_v34  ;;  %v3280_v6 = vpop.xlane.xlu0 %3279  ;;  %v3456_v33 = vmul.f32 %v3455_v3, %v3449_v40 }
0x10cd   : > { %5082 = vpow2.f32 %v3219_v24 }
0x10ce   : > { %v3408_v61 = vrot.slane %v3407_v5, 4  ;;  %v3423_v31 = vadd.f32 %v3422_v11, %v3417_v42  ;;  %v3393_v28 = vrot.slane %v3392_v18, 2  ;;  %v3450_v11 = vsel %vm601_vm12, %v3317_v29, %v3300_v53 }
0x10d0   : > { %v3424_v35 = vmul.f32 %v3423_v31, %v3416_v59  ;;  %v3434_v58 = vmul.f32 %v5075_v16, %v3423_v31  ;;  %v3394_v45 = vadd.f32 %v3393_v28, %v3392_v18  ;;  %v3409_v34 = vadd.f32 %v3408_v61, %v3407_v5  ;;  %v3357_v59 = vpop.xlane.xlu1 %3356  ;;  %v3260_v29 = vpop.xlane.xlu0 %3259 }
0x10d1   : > { %v3473_v18 = vmul.f32 %v3472_v20, %v3466_v26  ;;  %v3484_v15 = vsel %vm601_vm12, %v3357_v59, %v3260_v29 }
0x10d2   : > { %v3440_v14 = vadd.f32 %v3439_v7, %v3434_v58  ;;  %v3395_v60 = vrot.slane %v3394_v45, 1  ;;  %v3410_v27 = vrot.slane %v3409_v34, 2  ;;  %v3425_v54 = vrot.slane %v3424_v35, 4  ;;  %v5081_v58 = vpop.eup %5080 }
0x10d4   : > { %v3451_v47 = vmul.f32 %v5077_v22, %v3440_v14  ;;  %v3411_v12 = vadd.f32 %v3410_v27, %v3409_v34  ;;  %v3426_v17 = vadd.f32 %v3425_v54, %v3424_v35  ;;  %v3396_v23 = vadd.f32 %v3395_v60, %v3394_v45 }
0x10d5   : > { %v3441_v5 = vmul.f32 %v3440_v14, %v3433_v19  ;;  %v3467_v45 = vsel %vm601_vm12, %v3337_v4, %v3280_v6  ;;  %v3490_v34 = vmul.f32 %v3489_v37, %v3483_v49  ;;  %v3500_v54 = vsel %vm601_vm12, %v6750_v56, %v6737_v48 }
0x10d6   : > { %v3457_v55 = vadd.f32 %v3456_v33, %v3451_v47  ;;  %v3412_v42 = vrot.slane %v3411_v12, 1  ;;  %v3427_v46 = vrot.slane %v3426_v17, 2  ;;  %v3397_v9 = vsel %vm1827_vm6, %v3396_v23, 0.0 }
0x10d7   : > { %v3442_v25 = vrot.slane %v3441_v5, 4  ;;  %v5083_v6 = vpop.eup %5082  ;;  %v3507_v33 = vmul.f32 %v3506_v10, %v3500_v54  ;;  %v3596_v10 = vld [vmem:[#allocation13 + $0x80] sm:$0xff]  ;;  %v3599_v54 = vld [vmem:[#allocation13 + $0x98] sm:$0xff] }
0x10d8   : > { %v3413_v44 = vadd.f32 %v3412_v42, %v3411_v12  ;;  %v3428_v61 = vadd.f32 %v3427_v46, %v3426_v17  ;;  %v3458_v31 = vmul.f32 %v3457_v55, %v3450_v11  ;;  %v3468_v28 = vmul.f32 %v5079_v36, %v3457_v55  ;;  %v3377_v12 = vpop.xlane.xlu1 %3376  ;;  %v3240_v17 = vpop.xlane.xlu0 %3239 }
0x10d9   : > { %v3443_v16 = vadd.f32 %v3442_v25, %v3441_v5  ;;  %v3501_v11 = vsel %vm601_vm12, %v3377_v12, %v3240_v17  ;;  %v3607_v12 = vld [vmem:[#allocation13 + $0xd8] sm:$0xff] }
0x10da   : > { %v3414_v53 = vsel %vm1845_vm8, %v3413_v44, %v3397_v9  ;;  %v3429_v7 = vrot.slane %v3428_v61, 1  ;;  %v3459_v3 = vrot.slane %v3458_v31, 4  ;;  %v3474_v35 = vadd.f32 %v3473_v18, %v3468_v28 }
0x10db   : > { %v3444_v43 = vrot.slane %v3443_v16, 2 }
0x10dc   : > { %v3430_v24 = vadd.f32 %v3429_v7, %v3428_v61  ;;  %v3460_v14 = vadd.f32 %v3459_v3, %v3458_v31  ;;  %v3475_v60 = vmul.f32 %v3474_v35, %v3467_v45  ;;  %v3485_v27 = vmul.f32 %v5081_v58, %v3474_v35 }
0x10dd   : > { %v3445_v22 = vadd.f32 %v3444_v43, %v3443_v16  ;;  %v3597_v43 = vld [vmem:[#allocation13 + $0x88] sm:$0xff] }
0x10de   : > { %v3431_v40 = vsel %vm1863_vm9, %v3430_v24, %v3414_v53  ;;  %v3461_v19 = vrot.slane %v3460_v14, 2  ;;  %v3476_v20 = vrot.slane %v3475_v60, 4  ;;  %v3491_v4 = vadd.f32 %v3490_v34, %v3485_v27  ;;  %v3598_v27 = vld [vmem:[#allocation13 + $0x90] sm:$0xff] }
0x10df   : > { %v3446_v47 = vrot.slane %v3445_v22, 1 }
0x10e0   : > { %v3462_v23 = vadd.f32 %v3461_v19, %v3460_v14  ;;  %v3477_v5 = vadd.f32 %v3476_v20, %v3475_v60  ;;  %v3492_v26 = vmul.f32 %v3491_v4, %v3484_v15  ;;  %v3502_v55 = vmul.f32 %v5083_v6, %v3491_v4  ;;  %v3601_v19 = vld [vmem:[#allocation13 + $0xa8] sm:$0xff]  ;;  %v3602_v20 = vld [vmem:[#allocation13 + $0xb0] sm:$0xff]  ;;  %v3603_v4 = vld [vmem:[#allocation13 + $0xb8] sm:$0xff] }
0x10e1   : > { %v3447_v48 = vadd.f32 %v3446_v47, %v3445_v22  ;;  %v4821_v14 = vpack.c.bf16 %v3597_v43, %v3596_v10  ;;  %v4824_v22 = vpack.c.bf16 %v3599_v54, %v3598_v27  ;;  %v4830_v6 = vpack.c.bf16 %v3603_v4, %v3602_v20  ;;  %v3605_v15 = vld [vmem:[#allocation13 + $0xc8] sm:$0xff]  ;;  %v3790_v54 = vld [vmem:[#allocation16 + $0x40] sm:$0xff]  ;;  %v3792_v20 = vld [vmem:[#allocation16 + $0x50] sm:$0xff] }
0x10e2   : > { %v3463_v56 = vrot.slane %v3462_v23, 1  ;;  %v3478_v42 = vrot.slane %v3477_v5, 2  ;;  %v3493_v46 = vrot.slane %v3492_v26, 4  ;;  %v3508_v36 = vadd.f32 %v3507_v33, %v3502_v55  ;;  %v3606_v33 = vld [vmem:[#allocation13 + $0xd0] sm:$0xff]  ;;  %v3793_v4 = vld [vmem:[#allocation16 + $0x58] sm:$0xff] }
0x10e3   : > { %v3448_v18 = vsel %vm1881_vm10, %v3447_v48, %v3431_v40  ;;  %v3600_v40 = vld [vmem:[#allocation13 + $0xa0] sm:$0xff]  ;;  %v4836_v17 = vpack.c.bf16 %v3607_v12, %v3606_v33  ;;  %v3610_v55 = vld [vmem:[#allocation13 + $0xf0] sm:$0xff]  ;;  %v3611_v48 = vld [vmem:[#allocation13 + $0xf8] sm:$0xff]  ;;  %v3704_v27 = vrot.slane %v6527_v13, %v6155_v8  ;;  %v3714_v12 = vrot.slane %v6527_v13, %v6105_v32 }
0x10e4   : > { %v3464_v37 = vadd.f32 %v3463_v56, %v3462_v23  ;;  %v3479_v25 = vadd.f32 %v3478_v42, %v3477_v5  ;;  %v3494_v44 = vadd.f32 %v3493_v46, %v3492_v26  ;;  %v3509_v61 = vmul.f32 %v3508_v36, %v3501_v11  ;;  %v3608_v23 = vld [vmem:[#allocation13 + $0xe0] sm:$0xff]  ;;  %v3609_v5 = vld [vmem:[#allocation13 + $0xe8] sm:$0xff] }
0x10e5   : > { %v4827_v39 = vpack.c.bf16 %v3601_v19, %v3600_v40  ;;  %v4839_v26 = vpack.c.bf16 %v3609_v5, %v3608_v23  ;;  %v4842_v56 = vpack.c.bf16 %v3611_v48, %v3610_v55  ;;  %v4323_v42 = vmul.f32 -1.442695, %v6481_v63  ;;  %v4335_v55 = vld [vmem:[#allocation17 + $0x30] ss:$0 sm:$0xff] }
0x10e6   : > { %v3465_v31 = vsel %vm1899_vm11, %v3464_v37, %v3448_v18  ;;  %v3480_v28 = vrot.slane %v3479_v25, 1  ;;  %v3495_v49 = vrot.slane %v3494_v44, 2  ;;  %v3510_v9 = vrot.slane %v3509_v61, 4 }
0x10e7   : > { %5084 = vpow2.f32 %v4323_v42  ;;  %v3591_v11 = vrot.slane %v6527_v13, %v6075_v57 }
0x10e8   : > { %v3481_v16 = vadd.f32 %v3480_v28, %v3479_v25  ;;  %v3496_v59 = vadd.f32 %v3495_v49, %v3494_v44  ;;  %v3511_v29 = vadd.f32 %v3510_v9, %v3509_v61 }
0x10e9   : > { %v3592_v25 = vmul.f32 %v3591_v11, %v6533_v30 }
0x10ea   : > { %v3482_v53 = vsel %vm1917_vm13, %v3481_v16, %v3465_v31  ;;  %v3497_v7 = vrot.slane %v3496_v59, 1  ;;  %v3512_v3 = vrot.slane %v3511_v29, 2 }
0x10ec   : > { %v3498_v35 = vadd.f32 %v3497_v7, %v3496_v59  ;;  %v3513_v58 = vadd.f32 %v3512_v3, %v3511_v29  ;;  %v3708_v3 = vld [vmem:[#allocation14 + $0x28] sm:$0xff] }
0x10ee   : > { %v3499_v45 = vsel %vm1935_vm14, %v3498_v35, %v3482_v53  ;;  %v3514_v34 = vrot.slane %v3513_v58, 1  ;;  %v3709_v35 = vld [vmem:[#allocation14 + $0x30] sm:$0xff] }
0x10f0   : > { %v3515_v24 = vadd.f32 %v3514_v34, %v3513_v58 }
0x10f1   : > { %v5085_v46 = vpop.eup %5084 }
0x10f2   : > { %v3516_v60 = vsel %vm1953_vm15, %v3515_v24, %v3499_v45  ;;  %v2426_v36 = vadd.f32 1.0, %v5085_v46  ;;  %v3710_v45 = vld [vmem:[#allocation14 + $0x38] sm:$0xff]  ;;  %v3699_v24 = vrot.slane %v6527_v13, %v6082_v2  ;;  %v3794_v2 = vld [vmem:[#allocation16 + $0x60] sm:$0xff] }
0x10f3   : > { %4610 = vmatpush3.msra.mxu1 %v3516_v60  ;;  %v4848_v34 = vpack.c.bf16 %v3710_v45, %v3709_v35  ;;  %v3926_v35 = vld [vmem:[%s7022_s18 + $0x18] sm:$0xff] }
0x10f4   : > { %4612 = vmatmul.mubr.msk.f32.vlgmr.msra.gmra.mrb[22].mxu1 %vm845_vm7, %v6218_v21  ;;  %4820 = vmatprep.subr.bf16.mxu1 %v7018_v62  ;;  %v3604_v21 = vld [vmem:[#allocation13 + $0xc0] sm:$0xff]  ;;  %5086 = vrcp.f32 %v2426_v36 }
0x10f5   : > { %4822 = vmatpush3.bf16.msra.mxu1 %v4821_v14  ;;  %4646 = vmatprep.mubr.msk.f32.mxu1 %vm5511_vm1, %v7019_v1  ;;  %v4833_v47 = vpack.c.bf16 %v3605_v15, %v3604_v21  ;;  %v3795_v21 = vld [vmem:[#allocation16 + $0x68] sm:$0xff]  ;;  %v3796_v15 = vld [vmem:[#allocation16 + $0x70] sm:$0xff] }
0x10f6   : > { %4823 = vmatprep.subr.bf16.mxu1 %v7018_v62  ;;  %v4857_v8 = vpack.c.bf16 %v3795_v21, %v3794_v2 }
0x10f9   : > { %4825 = vmatpush3.bf16.msra.mxu1 %v4824_v22  ;;  %v3791_v22 = vld [vmem:[#allocation16 + $0x48] sm:$0xff] }
0x10fa   : > { %4826 = vmatprep.subr.bf16.mxu1 %v7018_v62  ;;  %v4851_v19 = vpack.c.bf16 %v3791_v22, %v3790_v54  ;;  %v5513_v22 = vmov 8  }
0x10fb   : > { %5025 = vset.pattern.permute.xlu0 %v5513_v22 }
0x10fd   : > { %4828 = vmatpush3.bf16.msra.mxu1 %v4827_v39 }
0x10fe   : > { %4829 = vmatprep.subr.bf16.mxu1 %v7018_v62  ;;  %v5087_v18 = vpop.eup %5086 }
0x10ff   : > { %v2429_v31 = vmul.f32 %v5087_v18, %v6481_v63  ;;  %v3707_v63 = vld [vmem:[#allocation14 + $0x20] sm:$0xff] }
0x1100   : > { %v4845_v58 = vpack.c.bf16 %v3708_v3, %v3707_v63 }
0x1101   : > { %4831 = vmatpush3.bf16.msra.mxu1 %v4830_v6  ;;  %v4854_v6 = vpack.c.bf16 %v3793_v4, %v3792_v20  ;;  %v7025_v4 = vld [vmem:[#allocation29_spill] sm:$0xff] }
0x1102   : > { %4832 = vmatprep.subr.bf16.mxu1 %v7018_v62  ;;  %4846 = vmatpush3.bf16.msra.mxu0 %v4845_v58 }
0x1103   : > { %4847 = vmatprep.subr.bf16.mxu0 %v7018_v62 }
0x1105   : > { %4834 = vmatpush3.bf16.msra.mxu1 %v4833_v47  ;;  %v3797_v47 = vld [vmem:[#allocation16 + $0x78] sm:$0xff] }
0x1106   : > { %4835 = vmatprep.subr.bf16.mxu1 %v7018_v62  ;;  %4849 = vmatpush3.bf16.msra.mxu0 %v4848_v34  ;;  %v4860_v33 = vpack.c.bf16 %v3797_v47, %v3796_v15 }
0x1107   : > { %4850 = vmatprep.subr.bf16.mxu0 %v7018_v62 }
0x1109   : > { %4837 = vmatpush3.bf16.msra.mxu1 %v4836_v17 }
0x110a   : > { %4838 = vmatprep.subr.bf16.mxu1 %v7018_v62 }
0x110d   : > { %4840 = vmatpush3.bf16.msra.mxu1 %v4839_v26 }
0x110e   : > { %4841 = vmatprep.subr.bf16.mxu1 %v7018_v62 }
0x1111   : > { %4843 = vmatpush3.bf16.msra.mxu1 %v4842_v56 }
0x1112   : > { %4862 = vmatprep.subr.bf16.mxu1 %v7018_v62 }
0x11c7   : > { %v3583_v37 = vpop.f32.mrb[22].mxu1 }
0x11c8   : > { %v3587_v44 = vsel %vm601_vm12, %v3516_v60, %v3583_v37  ;;  %v4613_v61 = vpop.f32.mrb[23].mxu1 }
0x11c9   : > { %v3593_v28 = vadd.f32 %v3592_v25, %v3587_v44 }
0x11cb   : > { %v3594_v49 = vmul.f32 %v3593_v28, %v2429_v31  ;;  %v3892_v28 = vrot.slane %v6527_v13, %v6143_v0  ;;  %v3923_v0 = vld [vmem:[%s7022_s18] sm:$0xff] }
0x11cd   : > { %4647 = vmatmul.mubr.f32.vlgmr.msra.gmra.mrb[24].mxu1 %v3594_v49 }
0x11ce   : > { %4687 = vmatprep.mubr.msk.f32.mxu1 %vm5511_vm1, %v7019_v1 }
0x12a0   : > { %v3678_v9 = vpop.f32.mrb[24].mxu1 }
0x12a1   : > { %v3682_v16 = vadd.f32 %v3678_v9, %v6473_v52  ;;  %v4648_v57 = vpop.f32.mrb[25].mxu1 }
0x12a3   : > { %v3683_v59 = vsel %vm757_vm4, %v3682_v16, 0.0 }
0x12a4   : > { %3684 = vadd.xlane.f32.xlu0 %v3683_v59 }
0x1331   : > { %v3685_v30 = vpop.xlane.xlu0 %3684 }
0x1332   : > { %v3686_v29 = vmul.f32 0.03125, %v3685_v30 }
0x1334   : > { %v3687_v38 = vsub.f32 %v3682_v16, %v3686_v29  ;;  %v3897_v16 = vrot.slane %v6527_v13, %v6115_v51  ;;  %v3924_v51 = vld [vmem:[%s7022_s18 + $0x8] sm:$0xff]  ;;  %v3925_v13 = vld [vmem:[%s7022_s18 + $0x10] sm:$0xff] }
0x1335   : > { %v4863_v3 = vpack.c.bf16 %v3924_v51, %v3923_v0  ;;  %v4866_v58 = vpack.c.bf16 %v3926_v35, %v3925_v13 }
0x1336   : > { %v3688_v53 = vmul.f32 %v3687_v38, %v3687_v38 }
0x1337   : > { %4864 = vmatpush3.bf16.msra.mxu1 %v4863_v3 }
0x1338   : > { %v3689_v7 = vsel %vm757_vm4, %v3688_v53, 0.0  ;;  %4865 = vmatprep.subr.bf16.mxu1 %v7018_v62 }
0x1339   : > { %3690 = vadd.xlane.f32.xlu1 %v3689_v7 }
0x133b   : > { %4867 = vmatpush3.bf16.msra.mxu1 %v4866_v58 }
0x133c   : > { %4690 = vmatprep.subr.mxu1 %v7019_v1 }
0x13c6   : > { %v3691_v52 = vpop.xlane.xlu1 %3690 }
0x13c7   : > { %v3692_v10 = vmul.f32 0.03125, %v3691_v52 }
0x13c9   : > { %v3693_v43 = vadd.f32 1e-05, %v3692_v10  ;;  %v3899_v10 = vld [vmem:[#allocation19] sm:$0x3] }
0x13cb   : > { %5088 = vrsqrt.f32 %v3693_v43  ;;  %v3916_v43 = vrot.slane %v3899_v10, %v6066_v41  ;;  %v4337_v41 = vld [vmem:[%s7022_s18 + $0x20] ss:$0 sm:$0xff] }
0x13d5   : > { %v5089_v14 = vpop.eup %5088 }
0x13d6   : > { %v3695_v60 = vmul.f32 %v5089_v14, %v3687_v38 }
0x13d8   : > { %v3700_v40 = vmul.f32 %v3699_v24, %v3695_v60  ;;  %v3921_v60 = vrot.slane %v3899_v10, %v6069_v50 }
0x13da   : > { %v3705_v39 = vadd.f32 %v3704_v27, %v3700_v40 }
0x13dc   : > { %4658 = vmatmul.mubr.msk.f32.vlgmr.msra.gmra.mrb[28].mxu0 %vm757_vm4, %v3705_v39 }
0x13dd   : > { %4852 = vmatpush3.bf16.msra.mxu0 %v4851_v19  ;;  %4676 = vmatprep.mubr.msk.f32.mxu0 %vm5511_vm1, %v7019_v1 }
0x13de   : > { %4853 = vmatprep.subr.bf16.mxu0 %v7018_v62 }
0x13e1   : > { %4855 = vmatpush3.bf16.msra.mxu0 %v4854_v6 }
0x13e2   : > { %4856 = vmatprep.subr.bf16.mxu0 %v7018_v62 }
0x13e5   : > { %4858 = vmatpush3.bf16.msra.mxu0 %v4857_v8 }
0x13e6   : > { %4859 = vmatprep.subr.bf16.mxu0 %v7018_v62  ;;  %v4007_v62 = vld [vmem:[%s7023_s12] sm:$0xf]  ;;  %s4088_s12 = scalar_lea.sflag [#allocation4], %s5950_s29 }
0x13e9   : > { %4861 = vmatpush3.bf16.msra.mxu0 %v4860_v33 }
0x14af   : > { %v3784_v17 = vpop.f32.mrb[28].mxu0 }
0x14b0   : > { %v3785_v23 = vadd.f32 %v3784_v17, %v3714_v12  ;;  %v4659_v5 = vpop.f32.mrb[29].mxu0 }
0x14b2   : > { %v3788_v26 = vmax.f32 %v3785_v23, 0.0 }
0x14b4   : > { %4677 = vmatmul.mubr.msk.f32.vlgmr.msra.gmra.mrb[30].mxu0 %vm2238_vm0, %v3788_v26 }
0x1587   : > { %v3871_v48 = vpop.f32.mrb[30].mxu0 }
0x1588   : > { %v3872_v56 = vadd.f32 %v4335_v55, %v3871_v48  ;;  %v4678_v42 = vpop.f32.mrb[31].mxu0 }
0x158a   : > { %v3875_v46 = vadd.f32 %v3872_v56, %v3705_v39  ;;  %v7024_v39 = vld [vmem:[#allocation30_spill] sm:$0xff] }
0x158c   : > { %v3876_v36 = vsel %vm757_vm4, %v3875_v46, 0.0 }
0x158d   : > { %3877 = vadd.xlane.f32.xlu0 %v3876_v36 }
0x161a   : > { %v3878_v11 = vpop.xlane.xlu0 %3877 }
0x161b   : > { %v3879_v18 = vmul.f32 0.03125, %v3878_v11 }
0x161d   : > { %v3880_v37 = vsub.f32 %v3875_v46, %v3879_v18 }
0x161f   : > { %v3881_v25 = vmul.f32 %v3880_v37, %v3880_v37 }
0x1621   : > { %v3882_v32 = vsel %vm757_vm4, %v3881_v25, 0.0 }
0x1622   : > { %3883 = vadd.xlane.f32.xlu1 %v3882_v32 }
0x16af   : > { %v3884_v44 = vpop.xlane.xlu1 %3883 }
0x16b0   : > { %v3885_v61 = vmul.f32 0.03125, %v3884_v44 }
0x16b2   : > { %v3886_v31 = vadd.f32 1e-05, %v3885_v61 }
0x16b4   : > { %5090 = vrsqrt.f32 %v3886_v31 }
0x16be   : > { %v5091_v49 = vpop.eup %5090 }
0x16bf   : > { %v3888_v9 = vmul.f32 %v5091_v49, %v3880_v37 }
0x16c1   : > { %v3893_v57 = vmul.f32 %v3892_v28, %v3888_v9 }
0x16c3   : > { %v3898_v59 = vadd.f32 %v3897_v16, %v3893_v57 }
0x16c5   : > { %v3900_v30 = vsel %vm757_vm4, %v3898_v59, 0.0 }
0x16c6   : > { %3901 = vadd.xlane.f32.xlu0 %v3900_v30 }
0x16dc   : > { %4010 = vperm.xlu0 %5025, %v4007_v62  }
0x1753   : > { %v3902_v29 = vpop.xlane.xlu0 %3901 }
0x1754   : > { %v3903_v38 = vmul.f32 0.03125, %v3902_v29 }
0x1756   : > { %v3904_v53 = vsub.f32 %v3898_v59, %v3903_v38 }
0x1758   : > { %v3905_v7 = vmul.f32 %v3904_v53, %v3904_v53 }
0x175a   : > { %v3906_v63 = vsel %vm757_vm4, %v3905_v7, 0.0 }
0x175b   : > { %3907 = vadd.xlane.f32.xlu1 %v3906_v63 }
0x17e8   : > { %v3908_v45 = vpop.xlane.xlu1 %3907 }
0x17e9   : > { %v3909_v34 = vmul.f32 0.03125, %v3908_v45 }
0x17eb   : > { %v3910_v52 = vadd.f32 1e-05, %v3909_v34 }
0x17ed   : > { %5092 = vrsqrt.f32 %v3910_v52 }
0x17f7   : > { %v5093_v24 = vpop.eup %5092 }
0x17f8   : > { %v3912_v14 = vmul.f32 %v5093_v24, %v3904_v53 }
0x17fa   : > { %v3917_v27 = vmul.f32 %v3916_v43, %v3912_v14 }
0x17fc   : > { %v3922_v54 = vadd.f32 %v3921_v60, %v3917_v27 }
0x17fe   : > { %4688 = vmatmul.mubr.msk.f32.vlgmr.msra.gmra.mrb[26].mxu1 %vm757_vm4, %v3922_v54 }
0x17ff   : > { %4692 = vmatprep.mubr.msk.f32.mxu1 %vm5511_vm1, %v7019_v1  ;;  %v4011_v1 = vpop.permute.xlu0 %4010  ;;  %vm4085_vm1 = vcmask 60416  }
0x18d1   : > { %v4001_v50 = vpop.f32.mrb[26].mxu1 }
0x18d2   : > { %v4002_v40 = vadd.f32 %v4337_v41, %v4001_v50  ;;  %v4689_v19 = vpop.f32.mrb[27].mxu1 }
0x18d4   : > { %v4005_v20 = vmul.f32 %v4002_v40, %v7024_v39 }
0x18d6   : > { %v4006_v6 = vadd.f32 %v4005_v20, %v7025_v4 }
0x18d8   : > { %4691 = vmatpush3.msra.mxu1 %v4006_v6 }
0x18d9   : > { %4693 = vmatmul.mubr.msk.f32.vlgmr.msra.gmra.mrb[28].mxu1 %vm845_vm7, %v4007_v62 }
0x19ac   : > { %v4081_v2 = vpop.f32.mrb[28].mxu1 }
0x19ad   : > { %v4082_v21 = vadd.f32 %v4081_v2, %v4011_v1  ;;  %v4694_v8 = vpop.f32.mrb[29].mxu1 }
0x19af   : > { %4086 = vst.msk [vmem:[%s598_s21] sm:$0xf] %vm4085_vm1, %v4082_v21 }
0x19b0   : > { %5418 = shalt.err (!%p5415_p8)
}
0x19b1   : > { %s5419_s29 = scalar_lea.hbm %s6903_s0, 64  ;;  %s5423_s13 = scalar_lea.hbm %s7026_s1, 128 }
0x19b2   : > { %p5420_p0 = scmp.ne.s32.totalorder %s6903_s0, %s5419_s29  ;;  %p5424_p5 = scmp.lt.u32.totalorder %s6903_s0, %s7026_s1 }
0x19b3   : > { %p5425_p10 = scmp.lt.u32.totalorder %s5423_s13, %s5419_s29  ;;  %p5427_p11 = scmp.lt.u32.totalorder %s5419_s29, %s6903_s0 }
0x19b4   : > { %p5421_p2 = pnand %p5420_p0, %p7027_p12 }
0x19b5   : > { %p5426_p1 = por %p5425_p10, %p5424_p5 }
0x19b6   : > { %p5422_p6 = pneg %p5421_p2 }
0x19b7   : > { %p5428_p13 = por %p5427_p11, %p5426_p1 }
0x19b9   : > { %p5429_p3 = pnand %p5428_p13, %p5422_p6 }
0x19bb   : > { %5432 = shalt.err (!%p5429_p3)
}
0x19bc   : > { %4910 = dma.vmem_to_hbm [thread:$0]  (%p7027_p12), %s6905_s23, 64, %s6903_s0, %s4088_s12  }
0x19bd PF: > { %s4113_s22 = sand.u32 1, %s5479_s25   ;;  %p7028_p7 = scmp.ne.s32.totalorder %s6999_s11, 0 }
0x19be   : > { %p7029_p9 = scmp.ge.s32.totalorder %s5491_s28, 2  ;;  %s4114_s24 = scalar_lea.sflag [#allocation4], %s4113_s22 }
0x19c0   : > { %p4948_p4 = pnand %p7029_p9, %p7028_p7 }
0x19c2   : > { %5474 = dma.done.wait (!%p4948_p4), %s4114_s24, 64  }
0x19c3   : > { %5476 = vsyncadd (!%p4948_p4), %s4114_s24, 4294967232  ;;  %p31_p8 = scmp.ge.s32.totalorder %s5874_s16, 4   ;;  %s7030_s25 = smov %s5483_s26 }
0x19c4   : > { %s7031_s26 = smov %s5487_s27  ;;  %s7032_s27 = smov %s5885_s19 }
0x19c5   : > { %s7033_s28 = smov %s5874_s16  ;;  %33 = sbr.rel (!%p31_p8) target bundleno = 17 (0x11), region = 165 }
0x19cc   :  { %4119 = vsyncpa [#allocation3], 1 }
0x19cd   :  { %4121 = vsyncpa [#allocation3 + $0x1], 1 }
0x19ce   :  { %4122 = vsyncpa [#allocation6], 1 }
0x19cf   :  { %4123 = vsyncpa [#allocation9], 1 }
0x19d0   :  { %4124 = vsyncpa [#allocation12], 1 }
0x19d1   :  { %4125 = vsyncpa [#allocation15], 1 }
0x19d2   :  { %4126 = vsyncpa [#allocation18], 1 }
0x19d3   :  { %4127 = vsyncpa [#allocation4], 1 }
0x19d4   :  { %4129 = vsyncpa [#allocation4 + $0x1], 1 }

</bundles_post_ra>
